<compile_context>
chip_gen: v5e
topology: v5e:2x2
jax: 0.10.0
libtpu: 0.0.40
codegen_flags: <defaults>
</compile_context>

<pallas_src>
import functools

import jax
import jax.numpy as jnp
from jax.experimental import pallas as pl
from jax.experimental.pallas import tpu as pltpu

SEQ_LEN = 12   # configs.seq_len
ENC_IN = 10    # configs.enc_in
D_MODEL = 32   # configs.d_model


def _round_up(x, m):
    return (x + m - 1) // m * m


def resblock_kernel(x_ref,
                    tw1_ref, tb1_ref, tw2_ref, tb2_ref,
                    cw1_ref, cb1_ref, cw2_ref, cb2_ref,
                    o_ref):
    """One (C*S, TB) slab; TB batch elements live on the lane axis.

    Weights arrive pre-expanded to block-structured form, so the whole
    residual block is four lane-dense 2-D MXU matmuls.
    """
    x = x_ref[...].astype(jnp.float32)                                   # [C*S, TB]

    # ---- temporal mixing: x1 = x + W2t' @ relu(W1t' @ x + b1t') + b2t' ------
    h = jnp.dot(tw1_ref[...], x, preferred_element_type=jnp.float32)     # [C*D, TB]
    h = jnp.maximum(h + tb1_ref[...], 0.0)
    x1 = x + jnp.dot(tw2_ref[...], h,
                     preferred_element_type=jnp.float32) + tb2_ref[...]  # [C*S, TB]

    # ---- channel mixing: out = x1 + W2c' @ relu(W1c' @ x1 + b1c') + b2c' ----
    h2 = jnp.dot(cw1_ref[...], x1, preferred_element_type=jnp.float32)   # [S*D, TB]
    h2 = jnp.maximum(h2 + cb1_ref[...], 0.0)
    out = x1 + jnp.dot(cw2_ref[...], h2,
                       preferred_element_type=jnp.float32) + cb2_ref[...]  # [C*S, TB]

    o_ref[...] = out.astype(o_ref.dtype)


def make_params(key):
    """Deterministic PyTorch-style uniform(-1/sqrt(fan_in), +1/sqrt(fan_in)) init."""
    ks = jax.random.split(key, 8)

    def lin(kw, kb, out_f, in_f):
        bound = 1.0 / jnp.sqrt(jnp.float32(in_f))
        w = jax.random.uniform(kw, (out_f, in_f), jnp.float32, -bound, bound)
        b = jax.random.uniform(kb, (out_f,), jnp.float32, -bound, bound)
        return w, b

    # temporal: Linear(seq_len -> d_model), Linear(d_model -> seq_len)
    tw1, tb1 = lin(ks[0], ks[1], D_MODEL, SEQ_LEN)
    tw2, tb2 = lin(ks[2], ks[3], SEQ_LEN, D_MODEL)
    # channel: Linear(enc_in -> d_model), Linear(d_model -> enc_in)
    cw1, cb1 = lin(ks[4], ks[5], D_MODEL, ENC_IN)
    cw2, cb2 = lin(ks[6], ks[7], ENC_IN, D_MODEL)
    return (tw1, tb1, tw2, tb2, cw1, cb1, cw2, cb2)


def _expand_params(params):
    """Expand per-slice weights into block-structured matrices (trace-time).

    Flat index convention matches the kernel layout x_flat[c*S + s, b] = x[b, s, c].
    """
    (tw1, tb1, tw2, tb2, cw1, cb1, cw2, cb2) = params
    S, C, D = SEQ_LEN, ENC_IN, D_MODEL
    eye_c = jnp.eye(C, dtype=jnp.float32)
    eye_s = jnp.eye(S, dtype=jnp.float32)

    # Temporal mix acts per channel -> block-diagonal over c.
    tw1b = jnp.kron(eye_c, tw1)                                  # [C*D, C*S]
    tw2b = jnp.kron(eye_c, tw2)                                  # [C*S, C*D]
    tb1b = jnp.tile(tb1, C)[:, None]                             # [C*D, 1]
    tb2b = jnp.tile(tb2, C)[:, None]                             # [C*S, 1]

    # Channel mix acts per timestep -> striped block structure over s.
    # cw1b[s*D + d, c*S + s'] = cw1[d, c] * (s == s')
    cw1b = (cw1[None, :, :, None] * eye_s[:, None, None, :]).reshape(S * D, C * S)
    # cw2b[c*S + s, s'*D + d] = cw2[c, d] * (s == s')
    cw2b = (cw2[:, None, None, :] * eye_s[None, :, :, None]).reshape(C * S, S * D)
    cb1b = jnp.tile(cb1, S)[:, None]                             # [S*D, 1]
    cb2b = jnp.repeat(cb2, S)[:, None]                           # [C*S, 1]

    return (tw1b, tb1b, tw2b, tb2b, cw1b, cb1b, cw2b, cb2b)


def resblock_forward(x, params, *, batch_tile=None):
    B, S, C = x.shape
    assert S == SEQ_LEN and C == ENC_IN
    CS = C * S

    # Lane-dense batch tile (multiple of 128).  Block bytes stay small
    # (~0.5 MiB per x/out buffer at TB=1024, ~0.7 MiB of weights), far below
    # the scoped VMEM limit on v5e (16 MiB), v6e (32 MiB) and v7x (32 MiB).
    if batch_tile is None:
        batch_tile = min(1024, _round_up(B, 128))
    tb = batch_tile
    b_pad = _round_up(max(B, tb), tb)

    # Layout plumbing (trace-time XLA ops outside the kernel):
    #   [B, S, C] -> [C, S, B_pad] -> [C*S, B_pad]; batch on the lane axis.
    xt = jnp.transpose(x, (2, 1, 0)).reshape(CS, B)
    if b_pad != B:
        xt = jnp.pad(xt, ((0, 0), (0, b_pad - B)))

    tw1b, tb1b, tw2b, tb2b, cw1b, cb1b, cw2b, cb2b = _expand_params(params)

    def full(arr):
        return pl.BlockSpec(arr.shape, lambda i: tuple(0 for _ in arr.shape))

    out_flat = pl.pallas_call(
        resblock_kernel,
        out_shape=jax.ShapeDtypeStruct((CS, b_pad), x.dtype),
        grid_spec=pltpu.PrefetchScalarGridSpec(
            num_scalar_prefetch=0,
            grid=(b_pad // tb,),
            in_specs=[
                pl.BlockSpec((CS, tb), lambda i: (0, i)),   # x slab (lane-dense)
                full(tw1b), full(tb1b), full(tw2b), full(tb2b),
                full(cw1b), full(cb1b), full(cw2b), full(cb2b),
            ],
            out_specs=pl.BlockSpec((CS, tb), lambda i: (0, i)),
        ),
        compiler_params=pltpu.CompilerParams(
            dimension_semantics=("parallel",)),
    )(xt, tw1b, tb1b, tw2b, tb2b, cw1b, cb1b, cw2b, cb2b)

    # [C*S, B_pad] -> [B, S, C]
    return jnp.transpose(out_flat.reshape(C, S, b_pad), (2, 1, 0))[:B]


def resblock_reference(x, params):
    """Pure-JAX reference mirroring the PyTorch forward (eval mode)."""
    (tw1, tb1, tw2, tb2, cw1, cb1, cw2, cb2) = params
    xt = jnp.swapaxes(x, 1, 2)                      # [B, C, S]
    h = jnp.maximum(xt @ tw1.T + tb1, 0.0)          # [B, C, D]
    t = h @ tw2.T + tb2                             # [B, C, S]
    x = x + jnp.swapaxes(t, 1, 2)
    h2 = jnp.maximum(x @ cw1.T + cb1, 0.0)          # [B, S, D]
    c = h2 @ cw2.T + cb2                            # [B, S, C]
    return x + c


if __name__ == "__main__":
    key = jax.random.PRNGKey(0)
    kp, kx = jax.random.split(key)
    params = make_params(kp)

    # Small demo batch; pads to 384 -> 3 lane-dense tiles of 128 (multi-step grid).
    B = 300
    x = jax.random.normal(kx, (B, SEQ_LEN, ENC_IN), jnp.float32)

    fwd = jax.jit(functools.partial(resblock_forward, batch_tile=128))
    out = jax.block_until_ready(fwd(x, params))

    ref = resblock_reference(x, params)
    assert out.shape == (B, SEQ_LEN, ENC_IN)
    assert jnp.allclose(out, ref, atol=1e-4, rtol=1e-4), "mismatch vs reference"

    print("KERNEL_OK")
</pallas_src>

<mosaic_0001>
module attributes {stable_mosaic.version = 11 : i64} {
  func.func @resblock_kernel(%arg0: i32, %arg1: memref<120x128xf32, #tpu.memory_space<vmem>>, %arg2: memref<320x120xf32, #tpu.memory_space<vmem>>, %arg3: memref<320x1xf32, #tpu.memory_space<vmem>>, %arg4: memref<120x320xf32, #tpu.memory_space<vmem>>, %arg5: memref<120x1xf32, #tpu.memory_space<vmem>>, %arg6: memref<384x120xf32, #tpu.memory_space<vmem>>, %arg7: memref<384x1xf32, #tpu.memory_space<vmem>>, %arg8: memref<120x384xf32, #tpu.memory_space<vmem>>, %arg9: memref<120x1xf32, #tpu.memory_space<vmem>>, %arg10: memref<120x128xf32, #tpu.memory_space<vmem>>) attributes {dimension_semantics = [#tpu.dimension_semantics<parallel>], iteration_bounds = array<i64: 3>, scalar_prefetch = 0 : i64, scratch_operands = 0 : i64, tpu.core_type = #tpu.core_type<tc>, window_params = [{transform_indices = @transform_0, window_bounds = array<i64: 120, 128>}, {pipeline_mode = #tpu.pipeline_mode<synchronous>, transform_indices = @transform_1, window_bounds = array<i64: 320, 120>}, {pipeline_mode = #tpu.pipeline_mode<synchronous>, transform_indices = @transform_2, window_bounds = array<i64: 320, 1>}, {pipeline_mode = #tpu.pipeline_mode<synchronous>, transform_indices = @transform_3, window_bounds = array<i64: 120, 320>}, {pipeline_mode = #tpu.pipeline_mode<synchronous>, transform_indices = @transform_4, window_bounds = array<i64: 120, 1>}, {pipeline_mode = #tpu.pipeline_mode<synchronous>, transform_indices = @transform_5, window_bounds = array<i64: 384, 120>}, {pipeline_mode = #tpu.pipeline_mode<synchronous>, transform_indices = @transform_6, window_bounds = array<i64: 384, 1>}, {pipeline_mode = #tpu.pipeline_mode<synchronous>, transform_indices = @transform_7, window_bounds = array<i64: 120, 384>}, {pipeline_mode = #tpu.pipeline_mode<synchronous>, transform_indices = @transform_8, window_bounds = array<i64: 120, 1>}, {transform_indices = @transform_9, window_bounds = array<i64: 120, 128>}]} {
    %c0 = arith.constant 0 : index
    %c0_0 = arith.constant 0 : index
    %0 = vector.load %arg1[%c0, %c0_0] : memref<120x128xf32, #tpu.memory_space<vmem>>, vector<120x128xf32>
    %c0_1 = arith.constant 0 : index
    %c0_2 = arith.constant 0 : index
    %1 = vector.load %arg2[%c0_1, %c0_2] : memref<320x120xf32, #tpu.memory_space<vmem>>, vector<320x120xf32>
    %cst = arith.constant dense<0.000000e+00> : vector<320x128xf32>
    %2 = tpu.matmul %1, %0, %cst {dimension_numbers = #tpu.dot_dimension_numbers<[1], [0], [0], [1], [0, 0, 1, 1], [], []>} : vector<320x120xf32>, vector<120x128xf32>, vector<320x128xf32> -> vector<320x128xf32>
    %c0_3 = arith.constant 0 : index
    %c0_4 = arith.constant 0 : index
    %3 = vector.load %arg3[%c0_3, %c0_4] : memref<320x1xf32, #tpu.memory_space<vmem>>, vector<320x1xf32>
    %4 = vector.broadcast %3 : vector<320x1xf32> to vector<320x128xf32>
    %5 = arith.addf %2, %4 : vector<320x128xf32>
    %cst_5 = arith.constant 0.000000e+00 : f32
    %6 = vector.broadcast %cst_5 : f32 to vector<320x128xf32>
    %7 = arith.maximumf %5, %6 : vector<320x128xf32>
    %c0_6 = arith.constant 0 : index
    %c0_7 = arith.constant 0 : index
    %8 = vector.load %arg4[%c0_6, %c0_7] : memref<120x320xf32, #tpu.memory_space<vmem>>, vector<120x320xf32>
    %cst_8 = arith.constant dense<0.000000e+00> : vector<120x128xf32>
    %9 = tpu.matmul %8, %7, %cst_8 {dimension_numbers = #tpu.dot_dimension_numbers<[1], [0], [0], [1], [0, 0, 1, 1], [], []>} : vector<120x320xf32>, vector<320x128xf32>, vector<120x128xf32> -> vector<120x128xf32>
    %10 = arith.addf %0, %9 : vector<120x128xf32>
    %c0_9 = arith.constant 0 : index
    %c0_10 = arith.constant 0 : index
    %11 = vector.load %arg5[%c0_9, %c0_10] : memref<120x1xf32, #tpu.memory_space<vmem>>, vector<120x1xf32>
    %12 = vector.broadcast %11 : vector<120x1xf32> to vector<120x128xf32>
    %13 = arith.addf %10, %12 : vector<120x128xf32>
    %c0_11 = arith.constant 0 : index
    %c0_12 = arith.constant 0 : index
    %14 = vector.load %arg6[%c0_11, %c0_12] : memref<384x120xf32, #tpu.memory_space<vmem>>, vector<384x120xf32>
    %cst_13 = arith.constant dense<0.000000e+00> : vector<384x128xf32>
    %15 = tpu.matmul %14, %13, %cst_13 {dimension_numbers = #tpu.dot_dimension_numbers<[1], [0], [0], [1], [0, 0, 1, 1], [], []>} : vector<384x120xf32>, vector<120x128xf32>, vector<384x128xf32> -> vector<384x128xf32>
    %c0_14 = arith.constant 0 : index
    %c0_15 = arith.constant 0 : index
    %16 = vector.load %arg7[%c0_14, %c0_15] : memref<384x1xf32, #tpu.memory_space<vmem>>, vector<384x1xf32>
    %17 = vector.broadcast %16 : vector<384x1xf32> to vector<384x128xf32>
    %18 = arith.addf %15, %17 : vector<384x128xf32>
    %cst_16 = arith.constant 0.000000e+00 : f32
    %19 = vector.broadcast %cst_16 : f32 to vector<384x128xf32>
    %20 = arith.maximumf %18, %19 : vector<384x128xf32>
    %c0_17 = arith.constant 0 : index
    %c0_18 = arith.constant 0 : index
    %21 = vector.load %arg8[%c0_17, %c0_18] : memref<120x384xf32, #tpu.memory_space<vmem>>, vector<120x384xf32>
    %cst_19 = arith.constant dense<0.000000e+00> : vector<120x128xf32>
    %22 = tpu.matmul %21, %20, %cst_19 {dimension_numbers = #tpu.dot_dimension_numbers<[1], [0], [0], [1], [0, 0, 1, 1], [], []>} : vector<120x384xf32>, vector<384x128xf32>, vector<120x128xf32> -> vector<120x128xf32>
    %23 = arith.addf %13, %22 : vector<120x128xf32>
    %c0_20 = arith.constant 0 : index
    %c0_21 = arith.constant 0 : index
    %24 = vector.load %arg9[%c0_20, %c0_21] : memref<120x1xf32, #tpu.memory_space<vmem>>, vector<120x1xf32>
    %25 = vector.broadcast %24 : vector<120x1xf32> to vector<120x128xf32>
    %26 = arith.addf %23, %25 : vector<120x128xf32>
    %c0_22 = arith.constant 0 : index
    %c0_23 = arith.constant 0 : index
    %27 = vector.load %arg10[%c0_22, %c0_23] : memref<120x128xf32, #tpu.memory_space<vmem>>, vector<120x128xf32>
    tpu.vector_store %arg10[%c0_22, %c0_23], %26 {strides = array<i32>} : memref<120x128xf32, #tpu.memory_space<vmem>>, vector<120x128xf32>,
    return
  }
  func.func @transform_0(%arg0: i32) -> (i32, i32) {
    %c0_i32 = arith.constant 0 : i32
    %c0_i32_0 = arith.constant 0 : i32
    return %c0_i32, %arg0 : i32, i32
  }
  func.func @transform_1(%arg0: i32) -> (i32, i32) {
    %c0_i32 = arith.constant 0 : i32
    %c0_i32_0 = arith.constant 0 : i32
    %c0_i32_1 = arith.constant 0 : i32
    return %c0_i32, %c0_i32_0 : i32, i32
  }
  func.func @transform_2(%arg0: i32) -> (i32, i32) {
    %c0_i32 = arith.constant 0 : i32
    %c0_i32_0 = arith.constant 0 : i32
    %c0_i32_1 = arith.constant 0 : i32
    return %c0_i32, %c0_i32_0 : i32, i32
  }
  func.func @transform_3(%arg0: i32) -> (i32, i32) {
    %c0_i32 = arith.constant 0 : i32
    %c0_i32_0 = arith.constant 0 : i32
    %c0_i32_1 = arith.constant 0 : i32
    return %c0_i32, %c0_i32_0 : i32, i32
  }
  func.func @transform_4(%arg0: i32) -> (i32, i32) {
    %c0_i32 = arith.constant 0 : i32
    %c0_i32_0 = arith.constant 0 : i32
    %c0_i32_1 = arith.constant 0 : i32
    return %c0_i32, %c0_i32_0 : i32, i32
  }
  func.func @transform_5(%arg0: i32) -> (i32, i32) {
    %c0_i32 = arith.constant 0 : i32
    %c0_i32_0 = arith.constant 0 : i32
    %c0_i32_1 = arith.constant 0 : i32
    return %c0_i32, %c0_i32_0 : i32, i32
  }
  func.func @transform_6(%arg0: i32) -> (i32, i32) {
    %c0_i32 = arith.constant 0 : i32
    %c0_i32_0 = arith.constant 0 : i32
    %c0_i32_1 = arith.constant 0 : i32
    return %c0_i32, %c0_i32_0 : i32, i32
  }
  func.func @transform_7(%arg0: i32) -> (i32, i32) {
    %c0_i32 = arith.constant 0 : i32
    %c0_i32_0 = arith.constant 0 : i32
    %c0_i32_1 = arith.constant 0 : i32
    return %c0_i32, %c0_i32_0 : i32, i32
  }
  func.func @transform_8(%arg0: i32) -> (i32, i32) {
    %c0_i32 = arith.constant 0 : i32
    %c0_i32_0 = arith.constant 0 : i32
    %c0_i32_1 = arith.constant 0 : i32
    return %c0_i32, %c0_i32_0 : i32, i32
  }
  func.func @transform_9(%arg0: i32) -> (i32, i32) {
    %c0_i32 = arith.constant 0 : i32
    %c0_i32_0 = arith.constant 0 : i32
    return %c0_i32, %arg0 : i32, i32
  }
}

</mosaic_0001>

<bundles_post_ra>
// kernel: tile.28
= control target key start
LH: loop header
LB: loop body
LE: loop exit
PB: predicated region body
PF: predicated region fallthrough
CT: control target
= control target key end

     0   :  { %s28_s0 = inlined_call_operand.vmem [shape: f32[32], index: 0, kind: input, shape index: {}]   ;;  %s29_s1 = inlined_call_operand.vmem [shape: f32[12,32], index: 1, kind: output, shape index: {}]  }
   0x1   :  { %v4_v0 = vld [vmem:[%s28_s0] ss:$0 sm:$0xff] }
   0x2   :  { %5 = vst [vmem:[%s29_s1] sm:$0xff] %v4_v0 }
   0x3   :  { %8 = vst [vmem:[%s29_s1 + $0x8] sm:$0xff] %v4_v0 }

// kernel: tile.18
= control target key start
LH: loop header
LB: loop body
LE: loop exit
PB: predicated region body
PF: predicated region fallthrough
CT: control target
= control target key end

     0   :  { %s28_s0 = inlined_call_operand.vmem [shape: f32[32], index: 0, kind: input, shape index: {}]   ;;  %s29_s1 = inlined_call_operand.vmem [shape: f32[10,32], index: 1, kind: output, shape index: {}]  }
   0x1   :  { %v4_v0 = vld [vmem:[%s28_s0] ss:$0 sm:$0xff] }
   0x2   :  { %5 = vst [vmem:[%s29_s1] sm:$0xff] %v4_v0 }
   0x3   :  { %8 = vst [vmem:[%s29_s1 + $0x8] sm:$0xff] %v4_v0 }

// kernel: tile.2
= control target key start
LH: loop header
LB: loop body
LE: loop exit
PB: predicated region body
PF: predicated region fallthrough
CT: control target
= control target key end

     0   :  { %s1499_s8 = smov 126   ;;  %s1500_s9 = smov 127   ;;  %vm3_vm0 = vcmask 7168   ;;  %s3231_s0 = inlined_call_operand.vmem [shape: f32[12,32], index: 0, kind: input, shape index: {}]   ;;  %s3232_s1 = inlined_call_operand.vmem [shape: f32[384,1], index: 1, kind: output, shape index: {}]  }
   0x1   :  { %v1543_v0 = vld [vmem:[%s3231_s0] sm:$0xff]   ;;  %s1501_s10 = smov 125   ;;  %v1086_v1 = vld [vmem:[%s3231_s0 + $0x8] sm:$0xf]   ;;  %s1502_s19 = smov 124  }
   0x2   :  { %64 = vrot.lane.b32.xlu1 %v1543_v0, %s1499_s8  ;;  %31 = vrot.lane.b32.xlu0 %v1543_v0, %s1500_s9  ;;  %v1073_v2 = vld [vmem:[%s3231_s0 + $0x8] sm:$0xf]   ;;  %s1503_s20 = smov 123   ;;  %s1504_s25 = smov 122  }
   0x3   :  { %97 = vrot.lane.b32.xlu2 %v1543_v0, %s1501_s10  ;;  %v1099_v3 = vld [vmem:[%s3231_s0 + $0x8] sm:$0xf]   ;;  %s1505_s28 = smov 121   ;;  %s1506_s29 = smov 120  }
   0x4   :  { %v1112_v4 = vld [vmem:[%s3231_s0 + $0x8] sm:$0xf]   ;;  %s1507_s5 = smov 119   ;;  %s1510_s14 = smov 116  }
   0x5   :  { %v1125_v5 = vld [vmem:[%s3231_s0 + $0x8] sm:$0xf]   ;;  %s1511_s17 = smov 115   ;;  %s1512_s18 = smov 114  }
   0x6   :  { %v1138_v6 = vld [vmem:[%s3231_s0 + $0x8] sm:$0xf]   ;;  %s1513_s23 = smov 113   ;;  %s1514_s26 = smov 112  }
   0x7   :  { %v1151_v7 = vld [vmem:[%s3231_s0 + $0x8] sm:$0xf]   ;;  %s1515_s27 = smov 111   ;;  %s1516_s30 = smov 110  }
   0x8   :  { %v1164_v8 = vld [vmem:[%s3231_s0 + $0x8] sm:$0xf]   ;;  %s1517_s4 = smov 109   ;;  %s1523_s16 = smov 103  }
   0x9   :  { %v1177_v9 = vld [vmem:[%s3231_s0 + $0x8] sm:$0xf]   ;;  %s1524_s7 = smov 101  }
   0xa   :  { %85 = vrot.lane.b32.xlu1 %v1086_v1, %s1499_s8  ;;  %52 = vrot.lane.b32.xlu0 %v1073_v2, %s1500_s9  ;;  %v1190_v10 = vld [vmem:[%s3231_s0 + $0x8] sm:$0xf]   ;;  %s1508_s8 = smov 118   ;;  %s1509_s9 = smov 117  }
   0xb   :  { %118 = vrot.lane.b32.xlu2 %v1099_v3, %s1501_s10  ;;  %v1203_v11 = vld [vmem:[%s3231_s0 + $0x8] sm:$0xf]  }
   0xc   :  { %v1216_v12 = vld [vmem:[%s3231_s0 + $0x8] sm:$0xf]  }
   0xd   :  { %v1229_v13 = vld [vmem:[%s3231_s0 + $0x8] sm:$0xf]  }
   0xe   :  { %v1242_v14 = vld [vmem:[%s3231_s0 + $0x8] sm:$0xf]  }
   0xf   :  { %v1255_v15 = vld [vmem:[%s3231_s0 + $0x8] sm:$0xf]  }
  0x10   :  { %v1268_v16 = vld [vmem:[%s3231_s0 + $0x8] sm:$0xf]  }
  0x11   :  { %v1281_v17 = vld [vmem:[%s3231_s0 + $0x8] sm:$0xf]  }
  0x12   :  { %151 = vrot.lane.b32.xlu1 %v1112_v4, %s1502_s19  ;;  %130 = vrot.lane.b32.xlu0 %v1543_v0, %s1502_s19  ;;  %v1307_v18 = vld [vmem:[%s3231_s0 + $0x8] sm:$0xf]   ;;  %s1518_s19 = smov 107  }
  0x13   :  { %163 = vrot.lane.b32.xlu2 %v1543_v0, %s1503_s20  ;;  %v1294_v19 = vld [vmem:[%s3231_s0 + $0x8] sm:$0xf]  }
  0x14   :  { %v1320_v21 = vld [vmem:[%s3231_s0 + $0x8] sm:$0xf]  }
  0x15   :  { %v1346_v23 = vld [vmem:[%s3231_s0 + $0x8] sm:$0xf]  }
  0x16   :  { %v1359_v26 = vld [vmem:[%s3231_s0 + $0x8] sm:$0xf]  }
  0x17   :  { %v1333_v27 = vld [vmem:[%s3231_s0 + $0x8] sm:$0xf]  }
  0x18   :  { %v1385_v31 = vld [vmem:[%s3231_s0 + $0x8] sm:$0xf]  }
  0x19   :  { %v1398_v34 = vld [vmem:[%s3231_s0 + $0x8] sm:$0xf]  }
  0x1a   :  { %196 = vrot.lane.b32.xlu1 %v1543_v0, %s1504_s25  ;;  %184 = vrot.lane.b32.xlu0 %v1125_v5, %s1503_s20  ;;  %s1519_s20 = smov 108   ;;  %v1424_v38 = vld [vmem:[%s3231_s0 + $0x8] sm:$0xf]  }
  0x1b   :  { %217 = vrot.lane.b32.xlu2 %v1138_v6, %s1504_s25  ;;  %s1521_s25 = smov 104   ;;  %v1372_v41 = vld [vmem:[%s3231_s0 + $0x8] sm:$0xf]  }
  0x1c   :  { %v1437_v42 = vld [vmem:[%s3231_s0 + $0x8] sm:$0xf]  }
  0x1d   :  { %v1463_v46 = vld [vmem:[%s3231_s0 + $0x8] sm:$0xf]  }
  0x1e   :  { %v1411_v50 = vld [vmem:[%s3231_s0 + $0x8] sm:$0xf]  }
  0x1f   :  { %v1450_v57 = vld [vmem:[%s3231_s0 + $0x8] sm:$0xf]  }
  0x22   :  { %250 = vrot.lane.b32.xlu1 %v1151_v7, %s1505_s28  ;;  %229 = vrot.lane.b32.xlu0 %v1543_v0, %s1505_s28  ;;  %s1526_s28 = smov 100  }
  0x23   :  { %262 = vrot.lane.b32.xlu2 %v1543_v0, %s1506_s29 }
  0x2a   :  { %295 = vrot.lane.b32.xlu1 %v1543_v0, %s1507_s5  ;;  %283 = vrot.lane.b32.xlu0 %v1164_v8, %s1506_s29 }
  0x2b   :  { %316 = vrot.lane.b32.xlu2 %v1177_v9, %s1507_s5 }
  0x32   :  { %349 = vrot.lane.b32.xlu1 %v1190_v10, %s1508_s8  ;;  %328 = vrot.lane.b32.xlu0 %v1543_v0, %s1508_s8  ;;  %s1520_s8 = smov 106  }
  0x33   :  { %361 = vrot.lane.b32.xlu2 %v1543_v0, %s1509_s9 }
  0x3a   :  { %394 = vrot.lane.b32.xlu1 %v1543_v0, %s1510_s14  ;;  %382 = vrot.lane.b32.xlu0 %v1203_v11, %s1509_s9 }
  0x3b   :  { %415 = vrot.lane.b32.xlu2 %v1216_v12, %s1510_s14 }
  0x42   :  { %448 = vrot.lane.b32.xlu1 %v1229_v13, %s1511_s17  ;;  %427 = vrot.lane.b32.xlu0 %v1543_v0, %s1511_s17 }
  0x43   :  { %460 = vrot.lane.b32.xlu2 %v1543_v0, %s1512_s18 }
  0x4a   :  { %493 = vrot.lane.b32.xlu1 %v1543_v0, %s1513_s23  ;;  %481 = vrot.lane.b32.xlu0 %v1242_v14, %s1512_s18  ;;  %s1527_s18 = smov 98  }
  0x4b   :  { %514 = vrot.lane.b32.xlu2 %v1255_v15, %s1513_s23 }
  0x52   :  { %547 = vrot.lane.b32.xlu1 %v1268_v16, %s1514_s26  ;;  %526 = vrot.lane.b32.xlu0 %v1543_v0, %s1514_s26  ;;  %s1522_s26 = smov 105  }
  0x53   :  { %559 = vrot.lane.b32.xlu2 %v1543_v0, %s1515_s27 }
  0x5a   :  { %592 = vrot.lane.b32.xlu1 %v1543_v0, %s1516_s30  ;;  %580 = vrot.lane.b32.xlu0 %v1281_v17, %s1515_s27 }
  0x5b   :  { %613 = vrot.lane.b32.xlu2 %v1294_v19, %s1516_s30 }
  0x5d   :  { %v98_v20 = vpop.permute.xlu2 %97  }
  0x5e   :  { %1091 = vst.msk [vmem:[%s3232_s1 + $0x3] sm:$0x1] %vm3_vm0, %v98_v20  }
  0x5f   :  { %1092 = vst.msk [vmem:[%s3232_s1 + $0x22] sm:$0x2] %vm3_vm0, %v98_v20  }
  0x60   :  { %1093 = vst.msk [vmem:[%s3232_s1 + $0x41] sm:$0x4] %vm3_vm0, %v98_v20  }
  0x61   :  { %1094 = vst.msk [vmem:[%s3232_s1 + $0x60] sm:$0x8] %vm3_vm0, %v98_v20  }
  0x62   :  { %646 = vrot.lane.b32.xlu1 %v1307_v18, %s1517_s4  ;;  %625 = vrot.lane.b32.xlu0 %v1543_v0, %s1517_s4  ;;  %1095 = vst.msk [vmem:[%s3232_s1 + $0x7f] sm:$0x10] %vm3_vm0, %v98_v20  }
  0x63   :  { %1096 = vst.msk [vmem:[%s3232_s1 + $0x9e] sm:$0x20] %vm3_vm0, %v98_v20   ;;  %658 = vrot.lane.b32.xlu2 %v1543_v0, %s1519_s20 }
  0x64   :  { %1097 = vst.msk [vmem:[%s3232_s1 + $0xbd] sm:$0x40] %vm3_vm0, %v98_v20  }
  0x65   :  { %1098 = vst.msk [vmem:[%s3232_s1 + $0xdc] sm:$0x80] %vm3_vm0, %v98_v20   ;;  %v119_v22 = vpop.permute.xlu2 %118  }
  0x66   :  { %1100 = vst.msk [vmem:[%s3232_s1 + $0x103] sm:$0x1] %vm3_vm0, %v119_v22  }
  0x67   :  { %1101 = vst.msk [vmem:[%s3232_s1 + $0x122] sm:$0x2] %vm3_vm0, %v119_v22  }
  0x68   :  { %1102 = vst.msk [vmem:[%s3232_s1 + $0x141] sm:$0x4] %vm3_vm0, %v119_v22  }
  0x69   :  { %1103 = vst.msk [vmem:[%s3232_s1 + $0x160] sm:$0x8] %vm3_vm0, %v119_v22  }
  0x6a   :  { %691 = vrot.lane.b32.xlu1 %v1543_v0, %s1518_s19  ;;  %679 = vrot.lane.b32.xlu0 %v1320_v21, %s1519_s20 }
  0x6b   :  { %712 = vrot.lane.b32.xlu2 %v1333_v27, %s1518_s19 }
  0x6d   :  { %v1700_v28 = vpop.permute.xlu2 %163  }
  0x6e   :  { %1117 = vst.msk [vmem:[%s3232_s1 + $0x5] sm:$0x1] %vm3_vm0, %v1700_v28  }
  0x6f   :  { %1118 = vst.msk [vmem:[%s3232_s1 + $0x24] sm:$0x2] %vm3_vm0, %v1700_v28  }
  0x70   :  { %1119 = vst.msk [vmem:[%s3232_s1 + $0x43] sm:$0x4] %vm3_vm0, %v1700_v28  }
  0x71   :  { %1120 = vst.msk [vmem:[%s3232_s1 + $0x62] sm:$0x8] %vm3_vm0, %v1700_v28  }
  0x72   :  { %745 = vrot.lane.b32.xlu1 %v1346_v23, %s1520_s8  ;;  %724 = vrot.lane.b32.xlu0 %v1543_v0, %s1520_s8  ;;  %s1525_s8 = smov 102   ;;  %1121 = vst.msk [vmem:[%s3232_s1 + $0x81] sm:$0x10] %vm3_vm0, %v1700_v28  }
  0x73   :  { %757 = vrot.lane.b32.xlu2 %v1543_v0, %s1522_s26  ;;  %1122 = vst.msk [vmem:[%s3232_s1 + $0xa0] sm:$0x20] %vm3_vm0, %v1700_v28  }
  0x74   :  { %v65_v24 = vpop.permute.xlu1 %64   ;;  %v32_v25 = vpop.permute.xlu0 %31   ;;  %1123 = vst.msk [vmem:[%s3232_s1 + $0xbf] sm:$0x40] %vm3_vm0, %v1700_v28  }
  0x75   :  { %1078 = vst.msk [vmem:[%s3232_s1 + $0x2] sm:$0x1] %vm3_vm0, %v65_v24   ;;  %v218_v37 = vpop.permute.xlu2 %217  }
  0x76   :  { %1079 = vst.msk [vmem:[%s3232_s1 + $0x21] sm:$0x2] %vm3_vm0, %v65_v24  }
  0x77   :  { %1080 = vst.msk [vmem:[%s3232_s1 + $0x40] sm:$0x4] %vm3_vm0, %v65_v24  }
  0x78   :  { %1081 = vst.msk [vmem:[%s3232_s1 + $0x5f] sm:$0x8] %vm3_vm0, %v65_v24  }
  0x79   :  { %1082 = vst.msk [vmem:[%s3232_s1 + $0x7e] sm:$0x10] %vm3_vm0, %v65_v24  }
  0x7a   :  { %1083 = vst.msk [vmem:[%s3232_s1 + $0x9d] sm:$0x20] %vm3_vm0, %v65_v24   ;;  %790 = vrot.lane.b32.xlu1 %v1543_v0, %s1521_s25  ;;  %778 = vrot.lane.b32.xlu0 %v1359_v26, %s1522_s26 }
  0x7b   :  { %1084 = vst.msk [vmem:[%s3232_s1 + $0xbc] sm:$0x40] %vm3_vm0, %v65_v24   ;;  %811 = vrot.lane.b32.xlu2 %v1372_v41, %s1521_s25  ;;  %s1528_s25 = smov 99  }
  0x7c   :  { %1085 = vst.msk [vmem:[%s3232_s1 + $0xdb] sm:$0x80] %vm3_vm0, %v65_v24   ;;  %v86_v29 = vpop.permute.xlu1 %85   ;;  %v53_v30 = vpop.permute.xlu0 %52  }
  0x7d   :  { %1065 = vst.msk [vmem:[%s3232_s1 + $0x1] sm:$0x1] %vm3_vm0, %v32_v25   ;;  %v263_v43 = vpop.permute.xlu2 %262  }
  0x7e   :  { %1066 = vst.msk [vmem:[%s3232_s1 + $0x20] sm:$0x2] %vm3_vm0, %v32_v25  }
  0x7f   :  { %1067 = vst.msk [vmem:[%s3232_s1 + $0x3f] sm:$0x4] %vm3_vm0, %v32_v25  }
  0x80   :  { %1068 = vst.msk [vmem:[%s3232_s1 + $0x5e] sm:$0x8] %vm3_vm0, %v32_v25  }
  0x81   :  { %1069 = vst.msk [vmem:[%s3232_s1 + $0x7d] sm:$0x10] %vm3_vm0, %v32_v25  }
  0x82   :  { %1070 = vst.msk [vmem:[%s3232_s1 + $0x9c] sm:$0x20] %vm3_vm0, %v32_v25   ;;  %844 = vrot.lane.b32.xlu1 %v1385_v31, %s1523_s16  ;;  %823 = vrot.lane.b32.xlu0 %v1543_v0, %s1523_s16  ;;  %v1060_v31 = vld [vmem:[%s3231_s0 + $0x8] sm:$0xf]  }
  0x83   :  { %1071 = vst.msk [vmem:[%s3232_s1 + $0xbb] sm:$0x40] %vm3_vm0, %v32_v25   ;;  %856 = vrot.lane.b32.xlu2 %v1543_v0, %s1525_s8 }
  0x84   :  { %1072 = vst.msk [vmem:[%s3232_s1 + $0xda] sm:$0x80] %vm3_vm0, %v32_v25   ;;  %v152_v32 = vpop.permute.xlu1 %151   ;;  %v131_v33 = vpop.permute.xlu0 %130  }
  0x85   :  { %1087 = vst.msk [vmem:[%s3232_s1 + $0x102] sm:$0x1] %vm3_vm0, %v86_v29   ;;  %v317_v47 = vpop.permute.xlu2 %316  }
  0x86   :  { %1088 = vst.msk [vmem:[%s3232_s1 + $0x121] sm:$0x2] %vm3_vm0, %v86_v29  }
  0x87   :  { %1089 = vst.msk [vmem:[%s3232_s1 + $0x140] sm:$0x4] %vm3_vm0, %v86_v29  }
  0x88   :  { %1090 = vst.msk [vmem:[%s3232_s1 + $0x15f] sm:$0x8] %vm3_vm0, %v86_v29  }
  0x89   :  { %1074 = vst.msk [vmem:[%s3232_s1 + $0x101] sm:$0x1] %vm3_vm0, %v53_v30  }
  0x8a   :  { %1075 = vst.msk [vmem:[%s3232_s1 + $0x120] sm:$0x2] %vm3_vm0, %v53_v30   ;;  %889 = vrot.lane.b32.xlu1 %v1543_v0, %s1524_s7  ;;  %877 = vrot.lane.b32.xlu0 %v1398_v34, %s1525_s8  ;;  %s1529_s8 = smov 97  }
  0x8b   :  { %1076 = vst.msk [vmem:[%s3232_s1 + $0x13f] sm:$0x4] %vm3_vm0, %v53_v30   ;;  %910 = vrot.lane.b32.xlu2 %v1411_v50, %s1524_s7 }
  0x8c   :  { %1077 = vst.msk [vmem:[%s3232_s1 + $0x15e] sm:$0x8] %vm3_vm0, %v53_v30   ;;  %v197_v35 = vpop.permute.xlu1 %196   ;;  %v185_v36 = vpop.permute.xlu0 %184   ;;  %v2_v30 = vld [vmem:[%s3231_s0] sm:$0xff]  }
  0x8d   :  { %1113 = vst.msk [vmem:[%s3232_s1 + $0x104] sm:$0x1] %vm3_vm0, %v152_v32   ;;  %v362_v51 = vpop.permute.xlu2 %361  }
  0x8e   :  { %1114 = vst.msk [vmem:[%s3232_s1 + $0x123] sm:$0x2] %vm3_vm0, %v152_v32  }
  0x8f   :  { %1115 = vst.msk [vmem:[%s3232_s1 + $0x142] sm:$0x4] %vm3_vm0, %v152_v32  }
  0x90   :  { %1116 = vst.msk [vmem:[%s3232_s1 + $0x161] sm:$0x8] %vm3_vm0, %v152_v32  }
  0x91   :  { %1104 = vst.msk [vmem:[%s3232_s1 + $0x4] sm:$0x1] %vm3_vm0, %v131_v33  }
  0x92   :  { %1105 = vst.msk [vmem:[%s3232_s1 + $0x23] sm:$0x2] %vm3_vm0, %v131_v33   ;;  %943 = vrot.lane.b32.xlu1 %v1424_v38, %s1526_s28  ;;  %922 = vrot.lane.b32.xlu0 %v1543_v0, %s1526_s28 }
  0x93   :  { %1106 = vst.msk [vmem:[%s3232_s1 + $0x42] sm:$0x4] %vm3_vm0, %v131_v33   ;;  %955 = vrot.lane.b32.xlu2 %v1543_v0, %s1528_s25 }
  0x94   :  { %1107 = vst.msk [vmem:[%s3232_s1 + $0x61] sm:$0x8] %vm3_vm0, %v131_v33   ;;  %v251_v39 = vpop.permute.xlu1 %250   ;;  %v230_v40 = vpop.permute.xlu0 %229  }
  0x95   :  { %1108 = vst.msk [vmem:[%s3232_s1 + $0x80] sm:$0x10] %vm3_vm0, %v131_v33   ;;  %v416_v54 = vpop.permute.xlu2 %415  }
  0x96   :  { %1109 = vst.msk [vmem:[%s3232_s1 + $0x9f] sm:$0x20] %vm3_vm0, %v131_v33  }
  0x97   :  { %1110 = vst.msk [vmem:[%s3232_s1 + $0xbe] sm:$0x40] %vm3_vm0, %v131_v33  }
  0x98   :  { %1111 = vst.msk [vmem:[%s3232_s1 + $0xdd] sm:$0x80] %vm3_vm0, %v131_v33  }
  0x99   :  { %1124 = vst.msk [vmem:[%s3232_s1 + $0xde] sm:$0x80] %vm3_vm0, %v1700_v28  }
  0x9a   :  { %988 = vrot.lane.b32.xlu1 %v1543_v0, %s1527_s18  ;;  %976 = vrot.lane.b32.xlu0 %v1437_v42, %s1528_s25  ;;  %1130 = vst.msk [vmem:[%s3232_s1 + $0x6] sm:$0x1] %vm3_vm0, %v197_v35  }
  0x9b   :  { %1131 = vst.msk [vmem:[%s3232_s1 + $0x25] sm:$0x2] %vm3_vm0, %v197_v35   ;;  %1009 = vrot.lane.b32.xlu2 %v1450_v57, %s1527_s18 }
  0x9c   :  { %1132 = vst.msk [vmem:[%s3232_s1 + $0x44] sm:$0x4] %vm3_vm0, %v197_v35   ;;  %v296_v44 = vpop.permute.xlu1 %295   ;;  %v284_v45 = vpop.permute.xlu0 %283  }
  0x9d   :  { %1133 = vst.msk [vmem:[%s3232_s1 + $0x63] sm:$0x8] %vm3_vm0, %v197_v35   ;;  %v461_v58 = vpop.permute.xlu2 %460  }
  0x9e   :  { %1134 = vst.msk [vmem:[%s3232_s1 + $0x82] sm:$0x10] %vm3_vm0, %v197_v35  }
  0x9f   :  { %1135 = vst.msk [vmem:[%s3232_s1 + $0xa1] sm:$0x20] %vm3_vm0, %v197_v35  }
  0xa0   :  { %1136 = vst.msk [vmem:[%s3232_s1 + $0xc0] sm:$0x40] %vm3_vm0, %v197_v35  }
  0xa1   :  { %1137 = vst.msk [vmem:[%s3232_s1 + $0xdf] sm:$0x80] %vm3_vm0, %v197_v35  }
  0xa2   :  { %1021 = vrot.lane.b32.xlu0 %v1543_v0, %s1529_s8  ;;  %1126 = vst.msk [vmem:[%s3232_s1 + $0x105] sm:$0x1] %vm3_vm0, %v185_v36   ;;  %1042 = vrot.lane.b32.xlu1 %v1463_v46, %s1529_s8 }
  0xa3   :  { %1127 = vst.msk [vmem:[%s3232_s1 + $0x124] sm:$0x2] %vm3_vm0, %v185_v36  }
  0xa4   :  { %1128 = vst.msk [vmem:[%s3232_s1 + $0x143] sm:$0x4] %vm3_vm0, %v185_v36   ;;  %v350_v48 = vpop.permute.xlu1 %349   ;;  %v329_v49 = vpop.permute.xlu0 %328  }
  0xa5   :  { %1129 = vst.msk [vmem:[%s3232_s1 + $0x162] sm:$0x8] %vm3_vm0, %v185_v36   ;;  %v515_v61 = vpop.permute.xlu2 %514  }
  0xa6   :  { %1139 = vst.msk [vmem:[%s3232_s1 + $0x106] sm:$0x1] %vm3_vm0, %v218_v37  }
  0xa7   :  { %1140 = vst.msk [vmem:[%s3232_s1 + $0x125] sm:$0x2] %vm3_vm0, %v218_v37  }
  0xa8   :  { %1141 = vst.msk [vmem:[%s3232_s1 + $0x144] sm:$0x4] %vm3_vm0, %v218_v37  }
  0xa9   :  { %1142 = vst.msk [vmem:[%s3232_s1 + $0x163] sm:$0x8] %vm3_vm0, %v218_v37  }
  0xaa   :  { %1152 = vst.msk [vmem:[%s3232_s1 + $0x107] sm:$0x1] %vm3_vm0, %v251_v39  }
  0xab   :  { %1153 = vst.msk [vmem:[%s3232_s1 + $0x126] sm:$0x2] %vm3_vm0, %v251_v39  }
  0xac   :  { %1154 = vst.msk [vmem:[%s3232_s1 + $0x145] sm:$0x4] %vm3_vm0, %v251_v39   ;;  %v395_v52 = vpop.permute.xlu1 %394   ;;  %v383_v53 = vpop.permute.xlu0 %382  }
  0xad   :  { %1155 = vst.msk [vmem:[%s3232_s1 + $0x164] sm:$0x8] %vm3_vm0, %v251_v39   ;;  %v560_v0 = vpop.permute.xlu2 %559  }
  0xae   :  { %1143 = vst.msk [vmem:[%s3232_s1 + $0x7] sm:$0x1] %vm3_vm0, %v230_v40  }
  0xaf   :  { %1144 = vst.msk [vmem:[%s3232_s1 + $0x26] sm:$0x2] %vm3_vm0, %v230_v40  }
  0xb0   :  { %1145 = vst.msk [vmem:[%s3232_s1 + $0x45] sm:$0x4] %vm3_vm0, %v230_v40  }
  0xb1   :  { %1146 = vst.msk [vmem:[%s3232_s1 + $0x64] sm:$0x8] %vm3_vm0, %v230_v40  }
  0xb2   :  { %1147 = vst.msk [vmem:[%s3232_s1 + $0x83] sm:$0x10] %vm3_vm0, %v230_v40  }
  0xb3   :  { %1148 = vst.msk [vmem:[%s3232_s1 + $0xa2] sm:$0x20] %vm3_vm0, %v230_v40  }
  0xb4   :  { %1149 = vst.msk [vmem:[%s3232_s1 + $0xc1] sm:$0x40] %vm3_vm0, %v230_v40   ;;  %v449_v55 = vpop.permute.xlu1 %448   ;;  %v428_v56 = vpop.permute.xlu0 %427  }
  0xb5   :  { %1150 = vst.msk [vmem:[%s3232_s1 + $0xe0] sm:$0x80] %vm3_vm0, %v230_v40   ;;  %v614_v3 = vpop.permute.xlu2 %613  }
  0xb6   :  { %1156 = vst.msk [vmem:[%s3232_s1 + $0x8] sm:$0x1] %vm3_vm0, %v263_v43  }
  0xb7   :  { %1157 = vst.msk [vmem:[%s3232_s1 + $0x27] sm:$0x2] %vm3_vm0, %v263_v43  }
  0xb8   :  { %1158 = vst.msk [vmem:[%s3232_s1 + $0x46] sm:$0x4] %vm3_vm0, %v263_v43  }
  0xb9   :  { %1159 = vst.msk [vmem:[%s3232_s1 + $0x65] sm:$0x8] %vm3_vm0, %v263_v43  }
  0xba   :  { %1160 = vst.msk [vmem:[%s3232_s1 + $0x84] sm:$0x10] %vm3_vm0, %v263_v43  }
  0xbb   :  { %1161 = vst.msk [vmem:[%s3232_s1 + $0xa3] sm:$0x20] %vm3_vm0, %v263_v43  }
  0xbc   :  { %1162 = vst.msk [vmem:[%s3232_s1 + $0xc2] sm:$0x40] %vm3_vm0, %v263_v43   ;;  %v494_v59 = vpop.permute.xlu1 %493   ;;  %v482_v60 = vpop.permute.xlu0 %481  }
  0xbd   :  { %1163 = vst.msk [vmem:[%s3232_s1 + $0xe1] sm:$0x80] %vm3_vm0, %v263_v43   ;;  %v659_v6 = vpop.permute.xlu2 %658  }
  0xbe   :  { %1169 = vst.msk [vmem:[%s3232_s1 + $0x9] sm:$0x1] %vm3_vm0, %v296_v44  }
  0xbf   :  { %1170 = vst.msk [vmem:[%s3232_s1 + $0x28] sm:$0x2] %vm3_vm0, %v296_v44  }
  0xc0   :  { %1171 = vst.msk [vmem:[%s3232_s1 + $0x47] sm:$0x4] %vm3_vm0, %v296_v44  }
  0xc1   :  { %1172 = vst.msk [vmem:[%s3232_s1 + $0x66] sm:$0x8] %vm3_vm0, %v296_v44  }
  0xc2   :  { %1173 = vst.msk [vmem:[%s3232_s1 + $0x85] sm:$0x10] %vm3_vm0, %v296_v44  }
  0xc3   :  { %1174 = vst.msk [vmem:[%s3232_s1 + $0xa4] sm:$0x20] %vm3_vm0, %v296_v44  }
  0xc4   :  { %1175 = vst.msk [vmem:[%s3232_s1 + $0xc3] sm:$0x40] %vm3_vm0, %v296_v44   ;;  %v548_v62 = vpop.permute.xlu1 %547   ;;  %v527_v63 = vpop.permute.xlu0 %526  }
  0xc5   :  { %1176 = vst.msk [vmem:[%s3232_s1 + $0xe2] sm:$0x80] %vm3_vm0, %v296_v44   ;;  %v713_v9 = vpop.permute.xlu2 %712  }
  0xc6   :  { %1165 = vst.msk [vmem:[%s3232_s1 + $0x108] sm:$0x1] %vm3_vm0, %v284_v45  }
  0xc7   :  { %1166 = vst.msk [vmem:[%s3232_s1 + $0x127] sm:$0x2] %vm3_vm0, %v284_v45  }
  0xc8   :  { %1167 = vst.msk [vmem:[%s3232_s1 + $0x146] sm:$0x4] %vm3_vm0, %v284_v45  }
  0xc9   :  { %1168 = vst.msk [vmem:[%s3232_s1 + $0x165] sm:$0x8] %vm3_vm0, %v284_v45  }
  0xca   :  { %1178 = vst.msk [vmem:[%s3232_s1 + $0x109] sm:$0x1] %vm3_vm0, %v317_v47  }
  0xcb   :  { %1179 = vst.msk [vmem:[%s3232_s1 + $0x128] sm:$0x2] %vm3_vm0, %v317_v47  }
  0xcc   :  { %1180 = vst.msk [vmem:[%s3232_s1 + $0x147] sm:$0x4] %vm3_vm0, %v317_v47   ;;  %v593_v1 = vpop.permute.xlu1 %592   ;;  %v581_v2 = vpop.permute.xlu0 %580  }
  0xcd   :  { %1181 = vst.msk [vmem:[%s3232_s1 + $0x166] sm:$0x8] %vm3_vm0, %v317_v47   ;;  %v758_v12 = vpop.permute.xlu2 %757  }
  0xce   :  { %1191 = vst.msk [vmem:[%s3232_s1 + $0x10a] sm:$0x1] %vm3_vm0, %v350_v48  }
  0xcf   :  { %1192 = vst.msk [vmem:[%s3232_s1 + $0x129] sm:$0x2] %vm3_vm0, %v350_v48  }
  0xd0   :  { %1193 = vst.msk [vmem:[%s3232_s1 + $0x148] sm:$0x4] %vm3_vm0, %v350_v48  }
  0xd1   :  { %1194 = vst.msk [vmem:[%s3232_s1 + $0x167] sm:$0x8] %vm3_vm0, %v350_v48  }
  0xd2   :  { %1182 = vst.msk [vmem:[%s3232_s1 + $0xa] sm:$0x1] %vm3_vm0, %v329_v49  }
  0xd3   :  { %1183 = vst.msk [vmem:[%s3232_s1 + $0x29] sm:$0x2] %vm3_vm0, %v329_v49  }
  0xd4   :  { %1184 = vst.msk [vmem:[%s3232_s1 + $0x48] sm:$0x4] %vm3_vm0, %v329_v49   ;;  %v647_v4 = vpop.permute.xlu1 %646   ;;  %v626_v5 = vpop.permute.xlu0 %625  }
  0xd5   :  { %1185 = vst.msk [vmem:[%s3232_s1 + $0x67] sm:$0x8] %vm3_vm0, %v329_v49   ;;  %v812_v15 = vpop.permute.xlu2 %811  }
  0xd6   :  { %1186 = vst.msk [vmem:[%s3232_s1 + $0x86] sm:$0x10] %vm3_vm0, %v329_v49  }
  0xd7   :  { %1187 = vst.msk [vmem:[%s3232_s1 + $0xa5] sm:$0x20] %vm3_vm0, %v329_v49  }
  0xd8   :  { %1188 = vst.msk [vmem:[%s3232_s1 + $0xc4] sm:$0x40] %vm3_vm0, %v329_v49  }
  0xd9   :  { %1189 = vst.msk [vmem:[%s3232_s1 + $0xe3] sm:$0x80] %vm3_vm0, %v329_v49  }
  0xda   :  { %1195 = vst.msk [vmem:[%s3232_s1 + $0xb] sm:$0x1] %vm3_vm0, %v362_v51  }
  0xdb   :  { %1196 = vst.msk [vmem:[%s3232_s1 + $0x2a] sm:$0x2] %vm3_vm0, %v362_v51  }
  0xdc   :  { %1197 = vst.msk [vmem:[%s3232_s1 + $0x49] sm:$0x4] %vm3_vm0, %v362_v51   ;;  %v692_v7 = vpop.permute.xlu1 %691   ;;  %v680_v8 = vpop.permute.xlu0 %679  }
  0xdd   :  { %1198 = vst.msk [vmem:[%s3232_s1 + $0x68] sm:$0x8] %vm3_vm0, %v362_v51   ;;  %v857_v18 = vpop.permute.xlu2 %856  }
  0xde   :  { %1199 = vst.msk [vmem:[%s3232_s1 + $0x87] sm:$0x10] %vm3_vm0, %v362_v51  }
  0xdf   :  { %1200 = vst.msk [vmem:[%s3232_s1 + $0xa6] sm:$0x20] %vm3_vm0, %v362_v51  }
  0xe0   :  { %1201 = vst.msk [vmem:[%s3232_s1 + $0xc5] sm:$0x40] %vm3_vm0, %v362_v51  }
  0xe1   :  { %1202 = vst.msk [vmem:[%s3232_s1 + $0xe4] sm:$0x80] %vm3_vm0, %v362_v51  }
  0xe2   :  { %1208 = vst.msk [vmem:[%s3232_s1 + $0xc] sm:$0x1] %vm3_vm0, %v395_v52  }
  0xe3   :  { %1209 = vst.msk [vmem:[%s3232_s1 + $0x2b] sm:$0x2] %vm3_vm0, %v395_v52  }
  0xe4   :  { %1210 = vst.msk [vmem:[%s3232_s1 + $0x4a] sm:$0x4] %vm3_vm0, %v395_v52   ;;  %v746_v10 = vpop.permute.xlu1 %745   ;;  %v725_v11 = vpop.permute.xlu0 %724  }
  0xe5   :  { %1211 = vst.msk [vmem:[%s3232_s1 + $0x69] sm:$0x8] %vm3_vm0, %v395_v52   ;;  %v911_v21 = vpop.permute.xlu2 %910  }
  0xe6   :  { %1212 = vst.msk [vmem:[%s3232_s1 + $0x88] sm:$0x10] %vm3_vm0, %v395_v52  }
  0xe7   :  { %1213 = vst.msk [vmem:[%s3232_s1 + $0xa7] sm:$0x20] %vm3_vm0, %v395_v52  }
  0xe8   :  { %1214 = vst.msk [vmem:[%s3232_s1 + $0xc6] sm:$0x40] %vm3_vm0, %v395_v52  }
  0xe9   :  { %1215 = vst.msk [vmem:[%s3232_s1 + $0xe5] sm:$0x80] %vm3_vm0, %v395_v52  }
  0xea   :  { %1204 = vst.msk [vmem:[%s3232_s1 + $0x10b] sm:$0x1] %vm3_vm0, %v383_v53  }
  0xeb   :  { %1205 = vst.msk [vmem:[%s3232_s1 + $0x12a] sm:$0x2] %vm3_vm0, %v383_v53  }
  0xec   :  { %1206 = vst.msk [vmem:[%s3232_s1 + $0x149] sm:$0x4] %vm3_vm0, %v383_v53   ;;  %v791_v13 = vpop.permute.xlu1 %790   ;;  %v779_v14 = vpop.permute.xlu0 %778  }
  0xed   :  { %1207 = vst.msk [vmem:[%s3232_s1 + $0x168] sm:$0x8] %vm3_vm0, %v383_v53   ;;  %v956_v24 = vpop.permute.xlu2 %955  }
  0xee   :  { %1217 = vst.msk [vmem:[%s3232_s1 + $0x10c] sm:$0x1] %vm3_vm0, %v416_v54  }
  0xef   :  { %1218 = vst.msk [vmem:[%s3232_s1 + $0x12b] sm:$0x2] %vm3_vm0, %v416_v54  }
  0xf0   :  { %1219 = vst.msk [vmem:[%s3232_s1 + $0x14a] sm:$0x4] %vm3_vm0, %v416_v54  }
  0xf1   :  { %1220 = vst.msk [vmem:[%s3232_s1 + $0x169] sm:$0x8] %vm3_vm0, %v416_v54  }
  0xf2   :  { %1230 = vst.msk [vmem:[%s3232_s1 + $0x10d] sm:$0x1] %vm3_vm0, %v449_v55  }
  0xf3   :  { %1231 = vst.msk [vmem:[%s3232_s1 + $0x12c] sm:$0x2] %vm3_vm0, %v449_v55  }
  0xf4   :  { %1232 = vst.msk [vmem:[%s3232_s1 + $0x14b] sm:$0x4] %vm3_vm0, %v449_v55   ;;  %v845_v16 = vpop.permute.xlu1 %844   ;;  %v824_v17 = vpop.permute.xlu0 %823  }
  0xf5   :  { %1233 = vst.msk [vmem:[%s3232_s1 + $0x16a] sm:$0x8] %vm3_vm0, %v449_v55   ;;  %v1010_v27 = vpop.permute.xlu2 %1009  }
  0xf6   :  { %1221 = vst.msk [vmem:[%s3232_s1 + $0xd] sm:$0x1] %vm3_vm0, %v428_v56  }
  0xf7   :  { %1222 = vst.msk [vmem:[%s3232_s1 + $0x2c] sm:$0x2] %vm3_vm0, %v428_v56  }
  0xf8   :  { %1223 = vst.msk [vmem:[%s3232_s1 + $0x4b] sm:$0x4] %vm3_vm0, %v428_v56  }
  0xf9   :  { %1224 = vst.msk [vmem:[%s3232_s1 + $0x6a] sm:$0x8] %vm3_vm0, %v428_v56  }
  0xfa   :  { %1225 = vst.msk [vmem:[%s3232_s1 + $0x89] sm:$0x10] %vm3_vm0, %v428_v56  }
  0xfb   :  { %1226 = vst.msk [vmem:[%s3232_s1 + $0xa8] sm:$0x20] %vm3_vm0, %v428_v56  }
  0xfc   :  { %1227 = vst.msk [vmem:[%s3232_s1 + $0xc7] sm:$0x40] %vm3_vm0, %v428_v56   ;;  %v890_v19 = vpop.permute.xlu1 %889   ;;  %v878_v20 = vpop.permute.xlu0 %877  }
  0xfd   :  { %1228 = vst.msk [vmem:[%s3232_s1 + $0xe6] sm:$0x80] %vm3_vm0, %v428_v56  }
  0xfe   :  { %1234 = vst.msk [vmem:[%s3232_s1 + $0xe] sm:$0x1] %vm3_vm0, %v461_v58  }
  0xff   :  { %1235 = vst.msk [vmem:[%s3232_s1 + $0x2d] sm:$0x2] %vm3_vm0, %v461_v58  }
 0x100   :  { %1236 = vst.msk [vmem:[%s3232_s1 + $0x4c] sm:$0x4] %vm3_vm0, %v461_v58  }
 0x101   :  { %1237 = vst.msk [vmem:[%s3232_s1 + $0x6b] sm:$0x8] %vm3_vm0, %v461_v58  }
 0x102   :  { %1238 = vst.msk [vmem:[%s3232_s1 + $0x8a] sm:$0x10] %vm3_vm0, %v461_v58  }
 0x103   :  { %1239 = vst.msk [vmem:[%s3232_s1 + $0xa9] sm:$0x20] %vm3_vm0, %v461_v58  }
 0x104   :  { %1240 = vst.msk [vmem:[%s3232_s1 + $0xc8] sm:$0x40] %vm3_vm0, %v461_v58   ;;  %v944_v22 = vpop.permute.xlu1 %943   ;;  %v923_v23 = vpop.permute.xlu0 %922  }
 0x105   :  { %1241 = vst.msk [vmem:[%s3232_s1 + $0xe7] sm:$0x80] %vm3_vm0, %v461_v58  }
 0x106   :  { %1247 = vst.msk [vmem:[%s3232_s1 + $0xf] sm:$0x1] %vm3_vm0, %v494_v59  }
 0x107   :  { %1248 = vst.msk [vmem:[%s3232_s1 + $0x2e] sm:$0x2] %vm3_vm0, %v494_v59  }
 0x108   :  { %1249 = vst.msk [vmem:[%s3232_s1 + $0x4d] sm:$0x4] %vm3_vm0, %v494_v59  }
 0x109   :  { %1250 = vst.msk [vmem:[%s3232_s1 + $0x6c] sm:$0x8] %vm3_vm0, %v494_v59  }
 0x10a   :  { %1251 = vst.msk [vmem:[%s3232_s1 + $0x8b] sm:$0x10] %vm3_vm0, %v494_v59  }
 0x10b   :  { %1252 = vst.msk [vmem:[%s3232_s1 + $0xaa] sm:$0x20] %vm3_vm0, %v494_v59  }
 0x10c   :  { %1253 = vst.msk [vmem:[%s3232_s1 + $0xc9] sm:$0x40] %vm3_vm0, %v494_v59   ;;  %v989_v25 = vpop.permute.xlu1 %988   ;;  %v977_v26 = vpop.permute.xlu0 %976  }
 0x10d   :  { %1254 = vst.msk [vmem:[%s3232_s1 + $0xe8] sm:$0x80] %vm3_vm0, %v494_v59  }
 0x10e   :  { %1243 = vst.msk [vmem:[%s3232_s1 + $0x10e] sm:$0x1] %vm3_vm0, %v482_v60  }
 0x10f   :  { %1244 = vst.msk [vmem:[%s3232_s1 + $0x12d] sm:$0x2] %vm3_vm0, %v482_v60  }
 0x110   :  { %1245 = vst.msk [vmem:[%s3232_s1 + $0x14c] sm:$0x4] %vm3_vm0, %v482_v60  }
 0x111   :  { %1246 = vst.msk [vmem:[%s3232_s1 + $0x16b] sm:$0x8] %vm3_vm0, %v482_v60  }
 0x112   :  { %1256 = vst.msk [vmem:[%s3232_s1 + $0x10f] sm:$0x1] %vm3_vm0, %v515_v61  }
 0x113   :  { %1257 = vst.msk [vmem:[%s3232_s1 + $0x12e] sm:$0x2] %vm3_vm0, %v515_v61  }
 0x114   :  { %1258 = vst.msk [vmem:[%s3232_s1 + $0x14d] sm:$0x4] %vm3_vm0, %v515_v61   ;;  %v1043_v28 = vpop.permute.xlu1 %1042   ;;  %v1022_v29 = vpop.permute.xlu0 %1021  }
 0x115   :  { %1259 = vst.msk [vmem:[%s3232_s1 + $0x16c] sm:$0x8] %vm3_vm0, %v515_v61  }
 0x116   :  { %1269 = vst.msk [vmem:[%s3232_s1 + $0x110] sm:$0x1] %vm3_vm0, %v548_v62  }
 0x117   :  { %1270 = vst.msk [vmem:[%s3232_s1 + $0x12f] sm:$0x2] %vm3_vm0, %v548_v62  }
 0x118   :  { %1271 = vst.msk [vmem:[%s3232_s1 + $0x14e] sm:$0x4] %vm3_vm0, %v548_v62  }
 0x119   :  { %1272 = vst.msk [vmem:[%s3232_s1 + $0x16d] sm:$0x8] %vm3_vm0, %v548_v62  }
 0x11a   :  { %1260 = vst.msk [vmem:[%s3232_s1 + $0x10] sm:$0x1] %vm3_vm0, %v527_v63  }
 0x11b   :  { %1261 = vst.msk [vmem:[%s3232_s1 + $0x2f] sm:$0x2] %vm3_vm0, %v527_v63  }
 0x11c   :  { %1262 = vst.msk [vmem:[%s3232_s1 + $0x4e] sm:$0x4] %vm3_vm0, %v527_v63  }
 0x11d   :  { %1263 = vst.msk [vmem:[%s3232_s1 + $0x6d] sm:$0x8] %vm3_vm0, %v527_v63  }
 0x11e   :  { %1264 = vst.msk [vmem:[%s3232_s1 + $0x8c] sm:$0x10] %vm3_vm0, %v527_v63  }
 0x11f   :  { %1265 = vst.msk [vmem:[%s3232_s1 + $0xab] sm:$0x20] %vm3_vm0, %v527_v63  }
 0x120   :  { %1266 = vst.msk [vmem:[%s3232_s1 + $0xca] sm:$0x40] %vm3_vm0, %v527_v63  }
 0x121   :  { %1267 = vst.msk [vmem:[%s3232_s1 + $0xe9] sm:$0x80] %vm3_vm0, %v527_v63  }
 0x122   :  { %1273 = vst.msk [vmem:[%s3232_s1 + $0x11] sm:$0x1] %vm3_vm0, %v560_v0  }
 0x123   :  { %1274 = vst.msk [vmem:[%s3232_s1 + $0x30] sm:$0x2] %vm3_vm0, %v560_v0  }
 0x124   :  { %1275 = vst.msk [vmem:[%s3232_s1 + $0x4f] sm:$0x4] %vm3_vm0, %v560_v0  }
 0x125   :  { %1276 = vst.msk [vmem:[%s3232_s1 + $0x6e] sm:$0x8] %vm3_vm0, %v560_v0  }
 0x126   :  { %1277 = vst.msk [vmem:[%s3232_s1 + $0x8d] sm:$0x10] %vm3_vm0, %v560_v0  }
 0x127   :  { %1278 = vst.msk [vmem:[%s3232_s1 + $0xac] sm:$0x20] %vm3_vm0, %v560_v0  }
 0x128   :  { %1279 = vst.msk [vmem:[%s3232_s1 + $0xcb] sm:$0x40] %vm3_vm0, %v560_v0  }
 0x129   :  { %1280 = vst.msk [vmem:[%s3232_s1 + $0xea] sm:$0x80] %vm3_vm0, %v560_v0  }
 0x12a   :  { %1286 = vst.msk [vmem:[%s3232_s1 + $0x12] sm:$0x1] %vm3_vm0, %v593_v1  }
 0x12b   :  { %1287 = vst.msk [vmem:[%s3232_s1 + $0x31] sm:$0x2] %vm3_vm0, %v593_v1  }
 0x12c   :  { %1288 = vst.msk [vmem:[%s3232_s1 + $0x50] sm:$0x4] %vm3_vm0, %v593_v1  }
 0x12d   :  { %1289 = vst.msk [vmem:[%s3232_s1 + $0x6f] sm:$0x8] %vm3_vm0, %v593_v1  }
 0x12e   :  { %1290 = vst.msk [vmem:[%s3232_s1 + $0x8e] sm:$0x10] %vm3_vm0, %v593_v1  }
 0x12f   :  { %1291 = vst.msk [vmem:[%s3232_s1 + $0xad] sm:$0x20] %vm3_vm0, %v593_v1  }
 0x130   :  { %1292 = vst.msk [vmem:[%s3232_s1 + $0xcc] sm:$0x40] %vm3_vm0, %v593_v1  }
 0x131   :  { %1293 = vst.msk [vmem:[%s3232_s1 + $0xeb] sm:$0x80] %vm3_vm0, %v593_v1  }
 0x132   :  { %1282 = vst.msk [vmem:[%s3232_s1 + $0x111] sm:$0x1] %vm3_vm0, %v581_v2  }
 0x133   :  { %1283 = vst.msk [vmem:[%s3232_s1 + $0x130] sm:$0x2] %vm3_vm0, %v581_v2  }
 0x134   :  { %1284 = vst.msk [vmem:[%s3232_s1 + $0x14f] sm:$0x4] %vm3_vm0, %v581_v2  }
 0x135   :  { %1285 = vst.msk [vmem:[%s3232_s1 + $0x16e] sm:$0x8] %vm3_vm0, %v581_v2  }
 0x136   :  { %1295 = vst.msk [vmem:[%s3232_s1 + $0x112] sm:$0x1] %vm3_vm0, %v614_v3  }
 0x137   :  { %1296 = vst.msk [vmem:[%s3232_s1 + $0x131] sm:$0x2] %vm3_vm0, %v614_v3  }
 0x138   :  { %1297 = vst.msk [vmem:[%s3232_s1 + $0x150] sm:$0x4] %vm3_vm0, %v614_v3  }
 0x139   :  { %1298 = vst.msk [vmem:[%s3232_s1 + $0x16f] sm:$0x8] %vm3_vm0, %v614_v3  }
 0x13a   :  { %1308 = vst.msk [vmem:[%s3232_s1 + $0x113] sm:$0x1] %vm3_vm0, %v647_v4  }
 0x13b   :  { %1309 = vst.msk [vmem:[%s3232_s1 + $0x132] sm:$0x2] %vm3_vm0, %v647_v4  }
 0x13c   :  { %1310 = vst.msk [vmem:[%s3232_s1 + $0x151] sm:$0x4] %vm3_vm0, %v647_v4  }
 0x13d   :  { %1311 = vst.msk [vmem:[%s3232_s1 + $0x170] sm:$0x8] %vm3_vm0, %v647_v4  }
 0x13e   :  { %1299 = vst.msk [vmem:[%s3232_s1 + $0x13] sm:$0x1] %vm3_vm0, %v626_v5  }
 0x13f   :  { %1300 = vst.msk [vmem:[%s3232_s1 + $0x32] sm:$0x2] %vm3_vm0, %v626_v5  }
 0x140   :  { %1301 = vst.msk [vmem:[%s3232_s1 + $0x51] sm:$0x4] %vm3_vm0, %v626_v5  }
 0x141   :  { %1302 = vst.msk [vmem:[%s3232_s1 + $0x70] sm:$0x8] %vm3_vm0, %v626_v5  }
 0x142   :  { %1303 = vst.msk [vmem:[%s3232_s1 + $0x8f] sm:$0x10] %vm3_vm0, %v626_v5  }
 0x143   :  { %1304 = vst.msk [vmem:[%s3232_s1 + $0xae] sm:$0x20] %vm3_vm0, %v626_v5  }
 0x144   :  { %1305 = vst.msk [vmem:[%s3232_s1 + $0xcd] sm:$0x40] %vm3_vm0, %v626_v5  }
 0x145   :  { %1306 = vst.msk [vmem:[%s3232_s1 + $0xec] sm:$0x80] %vm3_vm0, %v626_v5  }
 0x146   :  { %1312 = vst.msk [vmem:[%s3232_s1 + $0x14] sm:$0x1] %vm3_vm0, %v659_v6  }
 0x147   :  { %1313 = vst.msk [vmem:[%s3232_s1 + $0x33] sm:$0x2] %vm3_vm0, %v659_v6  }
 0x148   :  { %1314 = vst.msk [vmem:[%s3232_s1 + $0x52] sm:$0x4] %vm3_vm0, %v659_v6  }
 0x149   :  { %1315 = vst.msk [vmem:[%s3232_s1 + $0x71] sm:$0x8] %vm3_vm0, %v659_v6  }
 0x14a   :  { %1316 = vst.msk [vmem:[%s3232_s1 + $0x90] sm:$0x10] %vm3_vm0, %v659_v6  }
 0x14b   :  { %1317 = vst.msk [vmem:[%s3232_s1 + $0xaf] sm:$0x20] %vm3_vm0, %v659_v6  }
 0x14c   :  { %1318 = vst.msk [vmem:[%s3232_s1 + $0xce] sm:$0x40] %vm3_vm0, %v659_v6  }
 0x14d   :  { %1319 = vst.msk [vmem:[%s3232_s1 + $0xed] sm:$0x80] %vm3_vm0, %v659_v6  }
 0x14e   :  { %1325 = vst.msk [vmem:[%s3232_s1 + $0x15] sm:$0x1] %vm3_vm0, %v692_v7  }
 0x14f   :  { %1326 = vst.msk [vmem:[%s3232_s1 + $0x34] sm:$0x2] %vm3_vm0, %v692_v7  }
 0x150   :  { %1327 = vst.msk [vmem:[%s3232_s1 + $0x53] sm:$0x4] %vm3_vm0, %v692_v7  }
 0x151   :  { %1328 = vst.msk [vmem:[%s3232_s1 + $0x72] sm:$0x8] %vm3_vm0, %v692_v7  }
 0x152   :  { %1329 = vst.msk [vmem:[%s3232_s1 + $0x91] sm:$0x10] %vm3_vm0, %v692_v7  }
 0x153   :  { %1330 = vst.msk [vmem:[%s3232_s1 + $0xb0] sm:$0x20] %vm3_vm0, %v692_v7  }
 0x154   :  { %1331 = vst.msk [vmem:[%s3232_s1 + $0xcf] sm:$0x40] %vm3_vm0, %v692_v7  }
 0x155   :  { %1332 = vst.msk [vmem:[%s3232_s1 + $0xee] sm:$0x80] %vm3_vm0, %v692_v7  }
 0x156   :  { %1321 = vst.msk [vmem:[%s3232_s1 + $0x114] sm:$0x1] %vm3_vm0, %v680_v8  }
 0x157   :  { %1322 = vst.msk [vmem:[%s3232_s1 + $0x133] sm:$0x2] %vm3_vm0, %v680_v8  }
 0x158   :  { %1323 = vst.msk [vmem:[%s3232_s1 + $0x152] sm:$0x4] %vm3_vm0, %v680_v8  }
 0x159   :  { %1324 = vst.msk [vmem:[%s3232_s1 + $0x171] sm:$0x8] %vm3_vm0, %v680_v8  }
 0x15a   :  { %1334 = vst.msk [vmem:[%s3232_s1 + $0x115] sm:$0x1] %vm3_vm0, %v713_v9  }
 0x15b   :  { %1335 = vst.msk [vmem:[%s3232_s1 + $0x134] sm:$0x2] %vm3_vm0, %v713_v9  }
 0x15c   :  { %1336 = vst.msk [vmem:[%s3232_s1 + $0x153] sm:$0x4] %vm3_vm0, %v713_v9  }
 0x15d   :  { %1337 = vst.msk [vmem:[%s3232_s1 + $0x172] sm:$0x8] %vm3_vm0, %v713_v9  }
 0x15e   :  { %1347 = vst.msk [vmem:[%s3232_s1 + $0x116] sm:$0x1] %vm3_vm0, %v746_v10  }
 0x15f   :  { %1348 = vst.msk [vmem:[%s3232_s1 + $0x135] sm:$0x2] %vm3_vm0, %v746_v10  }
 0x160   :  { %1349 = vst.msk [vmem:[%s3232_s1 + $0x154] sm:$0x4] %vm3_vm0, %v746_v10  }
 0x161   :  { %1350 = vst.msk [vmem:[%s3232_s1 + $0x173] sm:$0x8] %vm3_vm0, %v746_v10  }
 0x162   :  { %1338 = vst.msk [vmem:[%s3232_s1 + $0x16] sm:$0x1] %vm3_vm0, %v725_v11  }
 0x163   :  { %1339 = vst.msk [vmem:[%s3232_s1 + $0x35] sm:$0x2] %vm3_vm0, %v725_v11  }
 0x164   :  { %1340 = vst.msk [vmem:[%s3232_s1 + $0x54] sm:$0x4] %vm3_vm0, %v725_v11  }
 0x165   :  { %1341 = vst.msk [vmem:[%s3232_s1 + $0x73] sm:$0x8] %vm3_vm0, %v725_v11  }
 0x166   :  { %1342 = vst.msk [vmem:[%s3232_s1 + $0x92] sm:$0x10] %vm3_vm0, %v725_v11  }
 0x167   :  { %1343 = vst.msk [vmem:[%s3232_s1 + $0xb1] sm:$0x20] %vm3_vm0, %v725_v11  }
 0x168   :  { %1344 = vst.msk [vmem:[%s3232_s1 + $0xd0] sm:$0x40] %vm3_vm0, %v725_v11  }
 0x169   :  { %1345 = vst.msk [vmem:[%s3232_s1 + $0xef] sm:$0x80] %vm3_vm0, %v725_v11  }
 0x16a   :  { %1351 = vst.msk [vmem:[%s3232_s1 + $0x17] sm:$0x1] %vm3_vm0, %v758_v12  }
 0x16b   :  { %1352 = vst.msk [vmem:[%s3232_s1 + $0x36] sm:$0x2] %vm3_vm0, %v758_v12  }
 0x16c   :  { %1353 = vst.msk [vmem:[%s3232_s1 + $0x55] sm:$0x4] %vm3_vm0, %v758_v12  }
 0x16d   :  { %1354 = vst.msk [vmem:[%s3232_s1 + $0x74] sm:$0x8] %vm3_vm0, %v758_v12  }
 0x16e   :  { %1355 = vst.msk [vmem:[%s3232_s1 + $0x93] sm:$0x10] %vm3_vm0, %v758_v12  }
 0x16f   :  { %1356 = vst.msk [vmem:[%s3232_s1 + $0xb2] sm:$0x20] %vm3_vm0, %v758_v12  }
 0x170   :  { %1357 = vst.msk [vmem:[%s3232_s1 + $0xd1] sm:$0x40] %vm3_vm0, %v758_v12  }
 0x171   :  { %1358 = vst.msk [vmem:[%s3232_s1 + $0xf0] sm:$0x80] %vm3_vm0, %v758_v12  }
 0x172   :  { %1364 = vst.msk [vmem:[%s3232_s1 + $0x18] sm:$0x1] %vm3_vm0, %v791_v13  }
 0x173   :  { %1365 = vst.msk [vmem:[%s3232_s1 + $0x37] sm:$0x2] %vm3_vm0, %v791_v13  }
 0x174   :  { %1366 = vst.msk [vmem:[%s3232_s1 + $0x56] sm:$0x4] %vm3_vm0, %v791_v13  }
 0x175   :  { %1367 = vst.msk [vmem:[%s3232_s1 + $0x75] sm:$0x8] %vm3_vm0, %v791_v13  }
 0x176   :  { %1368 = vst.msk [vmem:[%s3232_s1 + $0x94] sm:$0x10] %vm3_vm0, %v791_v13  }
 0x177   :  { %1369 = vst.msk [vmem:[%s3232_s1 + $0xb3] sm:$0x20] %vm3_vm0, %v791_v13  }
 0x178   :  { %1370 = vst.msk [vmem:[%s3232_s1 + $0xd2] sm:$0x40] %vm3_vm0, %v791_v13  }
 0x179   :  { %1371 = vst.msk [vmem:[%s3232_s1 + $0xf1] sm:$0x80] %vm3_vm0, %v791_v13  }
 0x17a   :  { %1360 = vst.msk [vmem:[%s3232_s1 + $0x117] sm:$0x1] %vm3_vm0, %v779_v14  }
 0x17b   :  { %1361 = vst.msk [vmem:[%s3232_s1 + $0x136] sm:$0x2] %vm3_vm0, %v779_v14  }
 0x17c   :  { %1362 = vst.msk [vmem:[%s3232_s1 + $0x155] sm:$0x4] %vm3_vm0, %v779_v14  }
 0x17d   :  { %1363 = vst.msk [vmem:[%s3232_s1 + $0x174] sm:$0x8] %vm3_vm0, %v779_v14  }
 0x17e   :  { %1373 = vst.msk [vmem:[%s3232_s1 + $0x118] sm:$0x1] %vm3_vm0, %v812_v15  }
 0x17f   :  { %1374 = vst.msk [vmem:[%s3232_s1 + $0x137] sm:$0x2] %vm3_vm0, %v812_v15  }
 0x180   :  { %1375 = vst.msk [vmem:[%s3232_s1 + $0x156] sm:$0x4] %vm3_vm0, %v812_v15  }
 0x181   :  { %1376 = vst.msk [vmem:[%s3232_s1 + $0x175] sm:$0x8] %vm3_vm0, %v812_v15  }
 0x182   :  { %1386 = vst.msk [vmem:[%s3232_s1 + $0x119] sm:$0x1] %vm3_vm0, %v845_v16  }
 0x183   :  { %1387 = vst.msk [vmem:[%s3232_s1 + $0x138] sm:$0x2] %vm3_vm0, %v845_v16  }
 0x184   :  { %1388 = vst.msk [vmem:[%s3232_s1 + $0x157] sm:$0x4] %vm3_vm0, %v845_v16  }
 0x185   :  { %1389 = vst.msk [vmem:[%s3232_s1 + $0x176] sm:$0x8] %vm3_vm0, %v845_v16  }
 0x186   :  { %1377 = vst.msk [vmem:[%s3232_s1 + $0x19] sm:$0x1] %vm3_vm0, %v824_v17  }
 0x187   :  { %1378 = vst.msk [vmem:[%s3232_s1 + $0x38] sm:$0x2] %vm3_vm0, %v824_v17  }
 0x188   :  { %1379 = vst.msk [vmem:[%s3232_s1 + $0x57] sm:$0x4] %vm3_vm0, %v824_v17  }
 0x189   :  { %1380 = vst.msk [vmem:[%s3232_s1 + $0x76] sm:$0x8] %vm3_vm0, %v824_v17  }
 0x18a   :  { %1381 = vst.msk [vmem:[%s3232_s1 + $0x95] sm:$0x10] %vm3_vm0, %v824_v17  }
 0x18b   :  { %1382 = vst.msk [vmem:[%s3232_s1 + $0xb4] sm:$0x20] %vm3_vm0, %v824_v17  }
 0x18c   :  { %1383 = vst.msk [vmem:[%s3232_s1 + $0xd3] sm:$0x40] %vm3_vm0, %v824_v17  }
 0x18d   :  { %1384 = vst.msk [vmem:[%s3232_s1 + $0xf2] sm:$0x80] %vm3_vm0, %v824_v17  }
 0x18e   :  { %1390 = vst.msk [vmem:[%s3232_s1 + $0x1a] sm:$0x1] %vm3_vm0, %v857_v18  }
 0x18f   :  { %1391 = vst.msk [vmem:[%s3232_s1 + $0x39] sm:$0x2] %vm3_vm0, %v857_v18  }
 0x190   :  { %1392 = vst.msk [vmem:[%s3232_s1 + $0x58] sm:$0x4] %vm3_vm0, %v857_v18  }
 0x191   :  { %1393 = vst.msk [vmem:[%s3232_s1 + $0x77] sm:$0x8] %vm3_vm0, %v857_v18  }
 0x192   :  { %1394 = vst.msk [vmem:[%s3232_s1 + $0x96] sm:$0x10] %vm3_vm0, %v857_v18  }
 0x193   :  { %1395 = vst.msk [vmem:[%s3232_s1 + $0xb5] sm:$0x20] %vm3_vm0, %v857_v18  }
 0x194   :  { %1396 = vst.msk [vmem:[%s3232_s1 + $0xd4] sm:$0x40] %vm3_vm0, %v857_v18  }
 0x195   :  { %1397 = vst.msk [vmem:[%s3232_s1 + $0xf3] sm:$0x80] %vm3_vm0, %v857_v18  }
 0x196   :  { %1403 = vst.msk [vmem:[%s3232_s1 + $0x1b] sm:$0x1] %vm3_vm0, %v890_v19  }
 0x197   :  { %1404 = vst.msk [vmem:[%s3232_s1 + $0x3a] sm:$0x2] %vm3_vm0, %v890_v19  }
 0x198   :  { %1405 = vst.msk [vmem:[%s3232_s1 + $0x59] sm:$0x4] %vm3_vm0, %v890_v19  }
 0x199   :  { %1406 = vst.msk [vmem:[%s3232_s1 + $0x78] sm:$0x8] %vm3_vm0, %v890_v19  }
 0x19a   :  { %1407 = vst.msk [vmem:[%s3232_s1 + $0x97] sm:$0x10] %vm3_vm0, %v890_v19  }
 0x19b   :  { %1408 = vst.msk [vmem:[%s3232_s1 + $0xb6] sm:$0x20] %vm3_vm0, %v890_v19  }
 0x19c   :  { %1409 = vst.msk [vmem:[%s3232_s1 + $0xd5] sm:$0x40] %vm3_vm0, %v890_v19  }
 0x19d   :  { %1410 = vst.msk [vmem:[%s3232_s1 + $0xf4] sm:$0x80] %vm3_vm0, %v890_v19  }
 0x19e   :  { %1399 = vst.msk [vmem:[%s3232_s1 + $0x11a] sm:$0x1] %vm3_vm0, %v878_v20  }
 0x19f   :  { %1400 = vst.msk [vmem:[%s3232_s1 + $0x139] sm:$0x2] %vm3_vm0, %v878_v20  }
 0x1a0   :  { %1401 = vst.msk [vmem:[%s3232_s1 + $0x158] sm:$0x4] %vm3_vm0, %v878_v20  }
 0x1a1   :  { %1402 = vst.msk [vmem:[%s3232_s1 + $0x177] sm:$0x8] %vm3_vm0, %v878_v20  }
 0x1a2   :  { %1412 = vst.msk [vmem:[%s3232_s1 + $0x11b] sm:$0x1] %vm3_vm0, %v911_v21  }
 0x1a3   :  { %1413 = vst.msk [vmem:[%s3232_s1 + $0x13a] sm:$0x2] %vm3_vm0, %v911_v21  }
 0x1a4   :  { %1414 = vst.msk [vmem:[%s3232_s1 + $0x159] sm:$0x4] %vm3_vm0, %v911_v21  }
 0x1a5   :  { %1415 = vst.msk [vmem:[%s3232_s1 + $0x178] sm:$0x8] %vm3_vm0, %v911_v21  }
 0x1a6   :  { %1425 = vst.msk [vmem:[%s3232_s1 + $0x11c] sm:$0x1] %vm3_vm0, %v944_v22  }
 0x1a7   :  { %1426 = vst.msk [vmem:[%s3232_s1 + $0x13b] sm:$0x2] %vm3_vm0, %v944_v22  }
 0x1a8   :  { %1427 = vst.msk [vmem:[%s3232_s1 + $0x15a] sm:$0x4] %vm3_vm0, %v944_v22  }
 0x1a9   :  { %1428 = vst.msk [vmem:[%s3232_s1 + $0x179] sm:$0x8] %vm3_vm0, %v944_v22  }
 0x1aa   :  { %1416 = vst.msk [vmem:[%s3232_s1 + $0x1c] sm:$0x1] %vm3_vm0, %v923_v23  }
 0x1ab   :  { %1417 = vst.msk [vmem:[%s3232_s1 + $0x3b] sm:$0x2] %vm3_vm0, %v923_v23  }
 0x1ac   :  { %1418 = vst.msk [vmem:[%s3232_s1 + $0x5a] sm:$0x4] %vm3_vm0, %v923_v23  }
 0x1ad   :  { %1419 = vst.msk [vmem:[%s3232_s1 + $0x79] sm:$0x8] %vm3_vm0, %v923_v23  }
 0x1ae   :  { %1420 = vst.msk [vmem:[%s3232_s1 + $0x98] sm:$0x10] %vm3_vm0, %v923_v23  }
 0x1af   :  { %1421 = vst.msk [vmem:[%s3232_s1 + $0xb7] sm:$0x20] %vm3_vm0, %v923_v23  }
 0x1b0   :  { %1422 = vst.msk [vmem:[%s3232_s1 + $0xd6] sm:$0x40] %vm3_vm0, %v923_v23  }
 0x1b1   :  { %1423 = vst.msk [vmem:[%s3232_s1 + $0xf5] sm:$0x80] %vm3_vm0, %v923_v23  }
 0x1b2   :  { %1429 = vst.msk [vmem:[%s3232_s1 + $0x1d] sm:$0x1] %vm3_vm0, %v956_v24  }
 0x1b3   :  { %1430 = vst.msk [vmem:[%s3232_s1 + $0x3c] sm:$0x2] %vm3_vm0, %v956_v24  }
 0x1b4   :  { %1431 = vst.msk [vmem:[%s3232_s1 + $0x5b] sm:$0x4] %vm3_vm0, %v956_v24  }
 0x1b5   :  { %1432 = vst.msk [vmem:[%s3232_s1 + $0x7a] sm:$0x8] %vm3_vm0, %v956_v24  }
 0x1b6   :  { %1433 = vst.msk [vmem:[%s3232_s1 + $0x99] sm:$0x10] %vm3_vm0, %v956_v24  }
 0x1b7   :  { %1434 = vst.msk [vmem:[%s3232_s1 + $0xb8] sm:$0x20] %vm3_vm0, %v956_v24  }
 0x1b8   :  { %1435 = vst.msk [vmem:[%s3232_s1 + $0xd7] sm:$0x40] %vm3_vm0, %v956_v24  }
 0x1b9   :  { %1436 = vst.msk [vmem:[%s3232_s1 + $0xf6] sm:$0x80] %vm3_vm0, %v956_v24  }
 0x1ba   :  { %1442 = vst.msk [vmem:[%s3232_s1 + $0x1e] sm:$0x1] %vm3_vm0, %v989_v25  }
 0x1bb   :  { %1443 = vst.msk [vmem:[%s3232_s1 + $0x3d] sm:$0x2] %vm3_vm0, %v989_v25  }
 0x1bc   :  { %1444 = vst.msk [vmem:[%s3232_s1 + $0x5c] sm:$0x4] %vm3_vm0, %v989_v25  }
 0x1bd   :  { %1445 = vst.msk [vmem:[%s3232_s1 + $0x7b] sm:$0x8] %vm3_vm0, %v989_v25  }
 0x1be   :  { %1446 = vst.msk [vmem:[%s3232_s1 + $0x9a] sm:$0x10] %vm3_vm0, %v989_v25  }
 0x1bf   :  { %1447 = vst.msk [vmem:[%s3232_s1 + $0xb9] sm:$0x20] %vm3_vm0, %v989_v25  }
 0x1c0   :  { %1448 = vst.msk [vmem:[%s3232_s1 + $0xd8] sm:$0x40] %vm3_vm0, %v989_v25  }
 0x1c1   :  { %1449 = vst.msk [vmem:[%s3232_s1 + $0xf7] sm:$0x80] %vm3_vm0, %v989_v25  }
 0x1c2   :  { %1438 = vst.msk [vmem:[%s3232_s1 + $0x11d] sm:$0x1] %vm3_vm0, %v977_v26  }
 0x1c3   :  { %1439 = vst.msk [vmem:[%s3232_s1 + $0x13c] sm:$0x2] %vm3_vm0, %v977_v26  }
 0x1c4   :  { %1440 = vst.msk [vmem:[%s3232_s1 + $0x15b] sm:$0x4] %vm3_vm0, %v977_v26  }
 0x1c5   :  { %1441 = vst.msk [vmem:[%s3232_s1 + $0x17a] sm:$0x8] %vm3_vm0, %v977_v26  }
 0x1c6   :  { %1451 = vst.msk [vmem:[%s3232_s1 + $0x11e] sm:$0x1] %vm3_vm0, %v1010_v27  }
 0x1c7   :  { %1452 = vst.msk [vmem:[%s3232_s1 + $0x13d] sm:$0x2] %vm3_vm0, %v1010_v27  }
 0x1c8   :  { %1453 = vst.msk [vmem:[%s3232_s1 + $0x15c] sm:$0x4] %vm3_vm0, %v1010_v27  }
 0x1c9   :  { %1454 = vst.msk [vmem:[%s3232_s1 + $0x17b] sm:$0x8] %vm3_vm0, %v1010_v27  }
 0x1ca   :  { %1464 = vst.msk [vmem:[%s3232_s1 + $0x11f] sm:$0x1] %vm3_vm0, %v1043_v28  }
 0x1cb   :  { %1465 = vst.msk [vmem:[%s3232_s1 + $0x13e] sm:$0x2] %vm3_vm0, %v1043_v28  }
 0x1cc   :  { %1466 = vst.msk [vmem:[%s3232_s1 + $0x15d] sm:$0x4] %vm3_vm0, %v1043_v28  }
 0x1cd   :  { %1467 = vst.msk [vmem:[%s3232_s1 + $0x17c] sm:$0x8] %vm3_vm0, %v1043_v28  }
 0x1ce   :  { %1455 = vst.msk [vmem:[%s3232_s1 + $0x1f] sm:$0x1] %vm3_vm0, %v1022_v29  }
 0x1cf   :  { %1456 = vst.msk [vmem:[%s3232_s1 + $0x3e] sm:$0x2] %vm3_vm0, %v1022_v29  }
 0x1d0   :  { %1457 = vst.msk [vmem:[%s3232_s1 + $0x5d] sm:$0x4] %vm3_vm0, %v1022_v29  }
 0x1d1   :  { %1458 = vst.msk [vmem:[%s3232_s1 + $0x7c] sm:$0x8] %vm3_vm0, %v1022_v29  }
 0x1d2   :  { %1459 = vst.msk [vmem:[%s3232_s1 + $0x9b] sm:$0x10] %vm3_vm0, %v1022_v29  }
 0x1d3   :  { %1460 = vst.msk [vmem:[%s3232_s1 + $0xba] sm:$0x20] %vm3_vm0, %v1022_v29  }
 0x1d4   :  { %1461 = vst.msk [vmem:[%s3232_s1 + $0xd9] sm:$0x40] %vm3_vm0, %v1022_v29  }
 0x1d5   :  { %1462 = vst.msk [vmem:[%s3232_s1 + $0xf8] sm:$0x80] %vm3_vm0, %v1022_v29  }
 0x1d6   :  { %4 = vst.msk [vmem:[%s3232_s1] sm:$0x1] %vm3_vm0, %v2_v30  }
 0x1d7   :  { %1053 = vst.msk [vmem:[%s3232_s1 + $0x1f] sm:$0x2] %vm3_vm0, %v2_v30  }
 0x1d8   :  { %1054 = vst.msk [vmem:[%s3232_s1 + $0x3e] sm:$0x4] %vm3_vm0, %v2_v30  }
 0x1d9   :  { %1055 = vst.msk [vmem:[%s3232_s1 + $0x5d] sm:$0x8] %vm3_vm0, %v2_v30  }
 0x1da   :  { %1056 = vst.msk [vmem:[%s3232_s1 + $0x7c] sm:$0x10] %vm3_vm0, %v2_v30  }
 0x1db   :  { %1057 = vst.msk [vmem:[%s3232_s1 + $0x9b] sm:$0x20] %vm3_vm0, %v2_v30  }
 0x1dc   :  { %1058 = vst.msk [vmem:[%s3232_s1 + $0xba] sm:$0x40] %vm3_vm0, %v2_v30  }
 0x1dd   :  { %1059 = vst.msk [vmem:[%s3232_s1 + $0xd9] sm:$0x80] %vm3_vm0, %v2_v30  }
 0x1de   :  { %1061 = vst.msk [vmem:[%s3232_s1 + $0x100] sm:$0x1] %vm3_vm0, %v1060_v31  }
 0x1df   :  { %1062 = vst.msk [vmem:[%s3232_s1 + $0x11f] sm:$0x2] %vm3_vm0, %v1060_v31  }
 0x1e0   :  { %1063 = vst.msk [vmem:[%s3232_s1 + $0x13e] sm:$0x4] %vm3_vm0, %v1060_v31  }
 0x1e1   :  { %1064 = vst.msk [vmem:[%s3232_s1 + $0x15d] sm:$0x8] %vm3_vm0, %v1060_v31  }

// kernel: tile.0
= control target key start
LH: loop header
LB: loop body
LE: loop exit
PB: predicated region body
PF: predicated region fallthrough
CT: control target
= control target key end

     0   :  { %s1307_s8 = smov 126   ;;  %s1308_s9 = smov 127   ;;  %vm3_vm0 = vcmask 7168   ;;  %s2795_s0 = inlined_call_operand.vmem [shape: f32[10,32], index: 0, kind: input, shape index: {}]   ;;  %s2796_s1 = inlined_call_operand.vmem [shape: f32[320,1], index: 1, kind: output, shape index: {}]  }
   0x1   :  { %v1351_v0 = vld [vmem:[%s2795_s0] sm:$0xff]   ;;  %s1309_s10 = smov 125   ;;  %v954_v1 = vld [vmem:[%s2795_s0 + $0x8] sm:$0x3]   ;;  %s1310_s19 = smov 124  }
   0x2   :  { %56 = vrot.lane.b32.xlu1 %v1351_v0, %s1307_s8  ;;  %27 = vrot.lane.b32.xlu0 %v1351_v0, %s1308_s9  ;;  %v943_v2 = vld [vmem:[%s2795_s0 + $0x8] sm:$0x3]   ;;  %s1311_s20 = smov 123   ;;  %s1312_s25 = smov 122  }
   0x3   :  { %85 = vrot.lane.b32.xlu2 %v1351_v0, %s1309_s10  ;;  %v965_v3 = vld [vmem:[%s2795_s0 + $0x8] sm:$0x3]   ;;  %s1313_s28 = smov 121   ;;  %s1314_s29 = smov 120  }
   0x4   :  { %v976_v4 = vld [vmem:[%s2795_s0 + $0x8] sm:$0x3]   ;;  %s1315_s5 = smov 119   ;;  %s1318_s14 = smov 116  }
   0x5   :  { %v987_v5 = vld [vmem:[%s2795_s0 + $0x8] sm:$0x3]   ;;  %s1319_s17 = smov 115   ;;  %s1320_s18 = smov 114  }
   0x6   :  { %v998_v6 = vld [vmem:[%s2795_s0 + $0x8] sm:$0x3]   ;;  %s1321_s23 = smov 113   ;;  %s1322_s26 = smov 112  }
   0x7   :  { %v1009_v7 = vld [vmem:[%s2795_s0 + $0x8] sm:$0x3]   ;;  %s1323_s27 = smov 111   ;;  %s1324_s30 = smov 110  }
   0x8   :  { %v1020_v8 = vld [vmem:[%s2795_s0 + $0x8] sm:$0x3]   ;;  %s1325_s4 = smov 109   ;;  %s1329_s21 = smov 104  }
   0x9   :  { %v1031_v9 = vld [vmem:[%s2795_s0 + $0x8] sm:$0x3]   ;;  %s1330_s22 = smov 105   ;;  %s1331_s12 = smov 103  }
   0xa   :  { %77 = vrot.lane.b32.xlu1 %v954_v1, %s1307_s8  ;;  %48 = vrot.lane.b32.xlu0 %v943_v2, %s1308_s9  ;;  %v1042_v10 = vld [vmem:[%s2795_s0 + $0x8] sm:$0x3]   ;;  %s1316_s8 = smov 118   ;;  %s1317_s9 = smov 117  }
   0xb   :  { %106 = vrot.lane.b32.xlu2 %v965_v3, %s1309_s10  ;;  %v1053_v11 = vld [vmem:[%s2795_s0 + $0x8] sm:$0x3]   ;;  %s1332_s3 = smov 101   ;;  %s1335_s16 = smov 98  }
   0xc   :  { %v1064_v12 = vld [vmem:[%s2795_s0 + $0x8] sm:$0x3]  }
   0xd   :  { %v1075_v13 = vld [vmem:[%s2795_s0 + $0x8] sm:$0x3]  }
   0xe   :  { %v1086_v14 = vld [vmem:[%s2795_s0 + $0x8] sm:$0x3]  }
   0xf   :  { %v1097_v15 = vld [vmem:[%s2795_s0 + $0x8] sm:$0x3]  }
  0x10   :  { %v1108_v16 = vld [vmem:[%s2795_s0 + $0x8] sm:$0x3]  }
  0x11   :  { %v1119_v17 = vld [vmem:[%s2795_s0 + $0x8] sm:$0x3]  }
  0x12   :  { %135 = vrot.lane.b32.xlu1 %v976_v4, %s1310_s19  ;;  %114 = vrot.lane.b32.xlu0 %v1351_v0, %s1310_s19  ;;  %v1141_v18 = vld [vmem:[%s2795_s0 + $0x8] sm:$0x3]   ;;  %s1326_s19 = smov 107  }
  0x13   :  { %143 = vrot.lane.b32.xlu2 %v1351_v0, %s1311_s20  ;;  %v1130_v19 = vld [vmem:[%s2795_s0 + $0x8] sm:$0x3]  }
  0x14   :  { %v1152_v21 = vld [vmem:[%s2795_s0 + $0x8] sm:$0x3]  }
  0x15   :  { %v1174_v23 = vld [vmem:[%s2795_s0 + $0x8] sm:$0x3]  }
  0x16   :  { %v1163_v24 = vld [vmem:[%s2795_s0 + $0x8] sm:$0x3]  }
  0x17   :  { %v1185_v28 = vld [vmem:[%s2795_s0 + $0x8] sm:$0x3]  }
  0x18   :  { %v1207_v31 = vld [vmem:[%s2795_s0 + $0x8] sm:$0x3]  }
  0x19   :  { %v1218_v35 = vld [vmem:[%s2795_s0 + $0x8] sm:$0x3]  }
  0x1a   :  { %172 = vrot.lane.b32.xlu1 %v1351_v0, %s1312_s25  ;;  %164 = vrot.lane.b32.xlu0 %v987_v5, %s1311_s20  ;;  %s1327_s20 = smov 108   ;;  %v1240_v38 = vld [vmem:[%s2795_s0 + $0x8] sm:$0x3]  }
  0x1b   :  { %193 = vrot.lane.b32.xlu2 %v998_v6, %s1312_s25  ;;  %v1196_v39 = vld [vmem:[%s2795_s0 + $0x8] sm:$0x3]   ;;  %s1334_s25 = smov 100  }
  0x1c   :  { %v1251_v43 = vld [vmem:[%s2795_s0 + $0x8] sm:$0x3]  }
  0x1d   :  { %v1273_v46 = vld [vmem:[%s2795_s0 + $0x8] sm:$0x3]  }
  0x1e   :  { %v1229_v50 = vld [vmem:[%s2795_s0 + $0x8] sm:$0x3]  }
  0x1f   :  { %v1262_v57 = vld [vmem:[%s2795_s0 + $0x8] sm:$0x3]  }
  0x22   :  { %222 = vrot.lane.b32.xlu1 %v1009_v7, %s1313_s28  ;;  %201 = vrot.lane.b32.xlu0 %v1351_v0, %s1313_s28 }
  0x23   :  { %230 = vrot.lane.b32.xlu2 %v1351_v0, %s1314_s29 }
  0x2a   :  { %259 = vrot.lane.b32.xlu1 %v1351_v0, %s1315_s5  ;;  %251 = vrot.lane.b32.xlu0 %v1020_v8, %s1314_s29 }
  0x2b   :  { %280 = vrot.lane.b32.xlu2 %v1031_v9, %s1315_s5 }
  0x32   :  { %309 = vrot.lane.b32.xlu1 %v1042_v10, %s1316_s8  ;;  %288 = vrot.lane.b32.xlu0 %v1351_v0, %s1316_s8 }
  0x33   :  { %317 = vrot.lane.b32.xlu2 %v1351_v0, %s1317_s9 }
  0x3a   :  { %346 = vrot.lane.b32.xlu1 %v1351_v0, %s1318_s14  ;;  %338 = vrot.lane.b32.xlu0 %v1053_v11, %s1317_s9  ;;  %s1337_s9 = smov 97  }
  0x3b   :  { %367 = vrot.lane.b32.xlu2 %v1064_v12, %s1318_s14 }
  0x42   :  { %396 = vrot.lane.b32.xlu1 %v1075_v13, %s1319_s17  ;;  %375 = vrot.lane.b32.xlu0 %v1351_v0, %s1319_s17  ;;  %s1336_s17 = smov 99  }
  0x43   :  { %404 = vrot.lane.b32.xlu2 %v1351_v0, %s1320_s18 }
  0x4a   :  { %433 = vrot.lane.b32.xlu1 %v1351_v0, %s1321_s23  ;;  %425 = vrot.lane.b32.xlu0 %v1086_v14, %s1320_s18 }
  0x4b   :  { %454 = vrot.lane.b32.xlu2 %v1097_v15, %s1321_s23 }
  0x52   :  { %483 = vrot.lane.b32.xlu1 %v1108_v16, %s1322_s26  ;;  %462 = vrot.lane.b32.xlu0 %v1351_v0, %s1322_s26 }
  0x53   :  { %491 = vrot.lane.b32.xlu2 %v1351_v0, %s1323_s27 }
  0x5a   :  { %520 = vrot.lane.b32.xlu1 %v1351_v0, %s1324_s30  ;;  %512 = vrot.lane.b32.xlu0 %v1119_v17, %s1323_s27 }
  0x5b   :  { %541 = vrot.lane.b32.xlu2 %v1130_v19, %s1324_s30 }
  0x5d   :  { %v86_v20 = vpop.permute.xlu2 %85  }
  0x5e   :  { %957 = vst.msk [vmem:[%s2796_s1 + $0x3] sm:$0x1] %vm3_vm0, %v86_v20  }
  0x5f   :  { %958 = vst.msk [vmem:[%s2796_s1 + $0x22] sm:$0x2] %vm3_vm0, %v86_v20  }
  0x60   :  { %959 = vst.msk [vmem:[%s2796_s1 + $0x41] sm:$0x4] %vm3_vm0, %v86_v20  }
  0x61   :  { %960 = vst.msk [vmem:[%s2796_s1 + $0x60] sm:$0x8] %vm3_vm0, %v86_v20  }
  0x62   :  { %570 = vrot.lane.b32.xlu1 %v1141_v18, %s1325_s4  ;;  %549 = vrot.lane.b32.xlu0 %v1351_v0, %s1325_s4  ;;  %961 = vst.msk [vmem:[%s2796_s1 + $0x7f] sm:$0x10] %vm3_vm0, %v86_v20   ;;  %s1328_s4 = smov 106  }
  0x63   :  { %962 = vst.msk [vmem:[%s2796_s1 + $0x9e] sm:$0x20] %vm3_vm0, %v86_v20   ;;  %578 = vrot.lane.b32.xlu2 %v1351_v0, %s1327_s20 }
  0x64   :  { %963 = vst.msk [vmem:[%s2796_s1 + $0xbd] sm:$0x40] %vm3_vm0, %v86_v20  }
  0x65   :  { %964 = vst.msk [vmem:[%s2796_s1 + $0xdc] sm:$0x80] %vm3_vm0, %v86_v20   ;;  %v107_v22 = vpop.permute.xlu2 %106  }
  0x66   :  { %966 = vst.msk [vmem:[%s2796_s1 + $0x103] sm:$0x1] %vm3_vm0, %v107_v22  }
  0x67   :  { %967 = vst.msk [vmem:[%s2796_s1 + $0x122] sm:$0x2] %vm3_vm0, %v107_v22  }
  0x6a   :  { %607 = vrot.lane.b32.xlu1 %v1351_v0, %s1326_s19  ;;  %599 = vrot.lane.b32.xlu0 %v1152_v21, %s1327_s20 }
  0x6b   :  { %628 = vrot.lane.b32.xlu2 %v1163_v24, %s1326_s19 }
  0x6d   :  { %v1485_v27 = vpop.permute.xlu2 %143  }
  0x6e   :  { %979 = vst.msk [vmem:[%s2796_s1 + $0x5] sm:$0x1] %vm3_vm0, %v1485_v27  }
  0x6f   :  { %980 = vst.msk [vmem:[%s2796_s1 + $0x24] sm:$0x2] %vm3_vm0, %v1485_v27  }
  0x70   :  { %981 = vst.msk [vmem:[%s2796_s1 + $0x43] sm:$0x4] %vm3_vm0, %v1485_v27  }
  0x71   :  { %982 = vst.msk [vmem:[%s2796_s1 + $0x62] sm:$0x8] %vm3_vm0, %v1485_v27  }
  0x72   :  { %657 = vrot.lane.b32.xlu1 %v1174_v23, %s1328_s4  ;;  %636 = vrot.lane.b32.xlu0 %v1351_v0, %s1328_s4  ;;  %s1333_s4 = smov 102   ;;  %983 = vst.msk [vmem:[%s2796_s1 + $0x81] sm:$0x10] %vm3_vm0, %v1485_v27  }
  0x73   :  { %665 = vrot.lane.b32.xlu2 %v1351_v0, %s1330_s22  ;;  %984 = vst.msk [vmem:[%s2796_s1 + $0xa0] sm:$0x20] %vm3_vm0, %v1485_v27  }
  0x74   :  { %v57_v25 = vpop.permute.xlu1 %56   ;;  %v28_v26 = vpop.permute.xlu0 %27   ;;  %985 = vst.msk [vmem:[%s2796_s1 + $0xbf] sm:$0x40] %vm3_vm0, %v1485_v27  }
  0x75   :  { %946 = vst.msk [vmem:[%s2796_s1 + $0x2] sm:$0x1] %vm3_vm0, %v57_v25   ;;  %v1561_v34 = vpop.permute.xlu2 %193  }
  0x76   :  { %947 = vst.msk [vmem:[%s2796_s1 + $0x21] sm:$0x2] %vm3_vm0, %v57_v25  }
  0x77   :  { %948 = vst.msk [vmem:[%s2796_s1 + $0x40] sm:$0x4] %vm3_vm0, %v57_v25  }
  0x78   :  { %949 = vst.msk [vmem:[%s2796_s1 + $0x5f] sm:$0x8] %vm3_vm0, %v57_v25  }
  0x79   :  { %950 = vst.msk [vmem:[%s2796_s1 + $0x7e] sm:$0x10] %vm3_vm0, %v57_v25  }
  0x7a   :  { %951 = vst.msk [vmem:[%s2796_s1 + $0x9d] sm:$0x20] %vm3_vm0, %v57_v25   ;;  %694 = vrot.lane.b32.xlu1 %v1351_v0, %s1329_s21  ;;  %686 = vrot.lane.b32.xlu0 %v1185_v28, %s1330_s22 }
  0x7b   :  { %952 = vst.msk [vmem:[%s2796_s1 + $0xbc] sm:$0x40] %vm3_vm0, %v57_v25   ;;  %715 = vrot.lane.b32.xlu2 %v1196_v39, %s1329_s21 }
  0x7c   :  { %953 = vst.msk [vmem:[%s2796_s1 + $0xdb] sm:$0x80] %vm3_vm0, %v57_v25   ;;  %v78_v29 = vpop.permute.xlu1 %77   ;;  %v49_v30 = vpop.permute.xlu0 %48  }
  0x7d   :  { %935 = vst.msk [vmem:[%s2796_s1 + $0x1] sm:$0x1] %vm3_vm0, %v28_v26   ;;  %v1618_v40 = vpop.permute.xlu2 %230  }
  0x7e   :  { %936 = vst.msk [vmem:[%s2796_s1 + $0x20] sm:$0x2] %vm3_vm0, %v28_v26  }
  0x7f   :  { %937 = vst.msk [vmem:[%s2796_s1 + $0x3f] sm:$0x4] %vm3_vm0, %v28_v26  }
  0x80   :  { %938 = vst.msk [vmem:[%s2796_s1 + $0x5e] sm:$0x8] %vm3_vm0, %v28_v26  }
  0x81   :  { %939 = vst.msk [vmem:[%s2796_s1 + $0x7d] sm:$0x10] %vm3_vm0, %v28_v26  }
  0x82   :  { %940 = vst.msk [vmem:[%s2796_s1 + $0x9c] sm:$0x20] %vm3_vm0, %v28_v26   ;;  %744 = vrot.lane.b32.xlu1 %v1207_v31, %s1331_s12  ;;  %723 = vrot.lane.b32.xlu0 %v1351_v0, %s1331_s12  ;;  %v932_v31 = vld [vmem:[%s2795_s0 + $0x8] sm:$0x3]  }
  0x83   :  { %941 = vst.msk [vmem:[%s2796_s1 + $0xbb] sm:$0x40] %vm3_vm0, %v28_v26   ;;  %752 = vrot.lane.b32.xlu2 %v1351_v0, %s1333_s4 }
  0x84   :  { %942 = vst.msk [vmem:[%s2796_s1 + $0xda] sm:$0x80] %vm3_vm0, %v28_v26   ;;  %v136_v32 = vpop.permute.xlu1 %135   ;;  %v115_v33 = vpop.permute.xlu0 %114  }
  0x85   :  { %955 = vst.msk [vmem:[%s2796_s1 + $0x102] sm:$0x1] %vm3_vm0, %v78_v29   ;;  %v281_v47 = vpop.permute.xlu2 %280  }
  0x86   :  { %956 = vst.msk [vmem:[%s2796_s1 + $0x121] sm:$0x2] %vm3_vm0, %v78_v29  }
  0x87   :  { %944 = vst.msk [vmem:[%s2796_s1 + $0x101] sm:$0x1] %vm3_vm0, %v49_v30  }
  0x88   :  { %945 = vst.msk [vmem:[%s2796_s1 + $0x120] sm:$0x2] %vm3_vm0, %v49_v30   ;;  %v2_v30 = vld [vmem:[%s2795_s0] sm:$0xff]  }
  0x89   :  { %977 = vst.msk [vmem:[%s2796_s1 + $0x104] sm:$0x1] %vm3_vm0, %v136_v32  }
  0x8a   :  { %978 = vst.msk [vmem:[%s2796_s1 + $0x123] sm:$0x2] %vm3_vm0, %v136_v32   ;;  %781 = vrot.lane.b32.xlu1 %v1351_v0, %s1332_s3  ;;  %773 = vrot.lane.b32.xlu0 %v1218_v35, %s1333_s4 }
  0x8b   :  { %968 = vst.msk [vmem:[%s2796_s1 + $0x4] sm:$0x1] %vm3_vm0, %v115_v33   ;;  %802 = vrot.lane.b32.xlu2 %v1229_v50, %s1332_s3 }
  0x8c   :  { %969 = vst.msk [vmem:[%s2796_s1 + $0x23] sm:$0x2] %vm3_vm0, %v115_v33   ;;  %v173_v36 = vpop.permute.xlu1 %172   ;;  %v165_v37 = vpop.permute.xlu0 %164  }
  0x8d   :  { %970 = vst.msk [vmem:[%s2796_s1 + $0x42] sm:$0x4] %vm3_vm0, %v115_v33   ;;  %v318_v51 = vpop.permute.xlu2 %317  }
  0x8e   :  { %971 = vst.msk [vmem:[%s2796_s1 + $0x61] sm:$0x8] %vm3_vm0, %v115_v33  }
  0x8f   :  { %972 = vst.msk [vmem:[%s2796_s1 + $0x80] sm:$0x10] %vm3_vm0, %v115_v33  }
  0x90   :  { %973 = vst.msk [vmem:[%s2796_s1 + $0x9f] sm:$0x20] %vm3_vm0, %v115_v33  }
  0x91   :  { %974 = vst.msk [vmem:[%s2796_s1 + $0xbe] sm:$0x40] %vm3_vm0, %v115_v33  }
  0x92   :  { %975 = vst.msk [vmem:[%s2796_s1 + $0xdd] sm:$0x80] %vm3_vm0, %v115_v33   ;;  %831 = vrot.lane.b32.xlu1 %v1240_v38, %s1334_s25  ;;  %810 = vrot.lane.b32.xlu0 %v1351_v0, %s1334_s25 }
  0x93   :  { %986 = vst.msk [vmem:[%s2796_s1 + $0xde] sm:$0x80] %vm3_vm0, %v1485_v27   ;;  %839 = vrot.lane.b32.xlu2 %v1351_v0, %s1336_s17 }
  0x94   :  { %v223_v41 = vpop.permute.xlu1 %222   ;;  %v202_v42 = vpop.permute.xlu0 %201   ;;  %990 = vst.msk [vmem:[%s2796_s1 + $0x6] sm:$0x1] %vm3_vm0, %v173_v36  }
  0x95   :  { %991 = vst.msk [vmem:[%s2796_s1 + $0x25] sm:$0x2] %vm3_vm0, %v173_v36   ;;  %v368_v54 = vpop.permute.xlu2 %367  }
  0x96   :  { %992 = vst.msk [vmem:[%s2796_s1 + $0x44] sm:$0x4] %vm3_vm0, %v173_v36  }
  0x97   :  { %993 = vst.msk [vmem:[%s2796_s1 + $0x63] sm:$0x8] %vm3_vm0, %v173_v36  }
  0x98   :  { %994 = vst.msk [vmem:[%s2796_s1 + $0x82] sm:$0x10] %vm3_vm0, %v173_v36  }
  0x99   :  { %995 = vst.msk [vmem:[%s2796_s1 + $0xa1] sm:$0x20] %vm3_vm0, %v173_v36  }
  0x9a   :  { %868 = vrot.lane.b32.xlu1 %v1351_v0, %s1335_s16  ;;  %860 = vrot.lane.b32.xlu0 %v1251_v43, %s1336_s17  ;;  %996 = vst.msk [vmem:[%s2796_s1 + $0xc0] sm:$0x40] %vm3_vm0, %v173_v36  }
  0x9b   :  { %997 = vst.msk [vmem:[%s2796_s1 + $0xdf] sm:$0x80] %vm3_vm0, %v173_v36   ;;  %889 = vrot.lane.b32.xlu2 %v1262_v57, %s1335_s16 }
  0x9c   :  { %v260_v44 = vpop.permute.xlu1 %259   ;;  %v252_v45 = vpop.permute.xlu0 %251   ;;  %988 = vst.msk [vmem:[%s2796_s1 + $0x105] sm:$0x1] %vm3_vm0, %v165_v37  }
  0x9d   :  { %989 = vst.msk [vmem:[%s2796_s1 + $0x124] sm:$0x2] %vm3_vm0, %v165_v37   ;;  %v405_v58 = vpop.permute.xlu2 %404  }
  0x9e   :  { %999 = vst.msk [vmem:[%s2796_s1 + $0x106] sm:$0x1] %vm3_vm0, %v1561_v34  }
  0x9f   :  { %1000 = vst.msk [vmem:[%s2796_s1 + $0x125] sm:$0x2] %vm3_vm0, %v1561_v34  }
  0xa0   :  { %1010 = vst.msk [vmem:[%s2796_s1 + $0x107] sm:$0x1] %vm3_vm0, %v223_v41  }
  0xa1   :  { %1011 = vst.msk [vmem:[%s2796_s1 + $0x126] sm:$0x2] %vm3_vm0, %v223_v41  }
  0xa2   :  { %897 = vrot.lane.b32.xlu0 %v1351_v0, %s1337_s9  ;;  %918 = vrot.lane.b32.xlu1 %v1273_v46, %s1337_s9  ;;  %1001 = vst.msk [vmem:[%s2796_s1 + $0x7] sm:$0x1] %vm3_vm0, %v202_v42  }
  0xa3   :  { %1002 = vst.msk [vmem:[%s2796_s1 + $0x26] sm:$0x2] %vm3_vm0, %v202_v42  }
  0xa4   :  { %v310_v48 = vpop.permute.xlu1 %309   ;;  %v289_v49 = vpop.permute.xlu0 %288   ;;  %1003 = vst.msk [vmem:[%s2796_s1 + $0x45] sm:$0x4] %vm3_vm0, %v202_v42  }
  0xa5   :  { %1004 = vst.msk [vmem:[%s2796_s1 + $0x64] sm:$0x8] %vm3_vm0, %v202_v42   ;;  %v455_v61 = vpop.permute.xlu2 %454  }
  0xa6   :  { %1005 = vst.msk [vmem:[%s2796_s1 + $0x83] sm:$0x10] %vm3_vm0, %v202_v42  }
  0xa7   :  { %1006 = vst.msk [vmem:[%s2796_s1 + $0xa2] sm:$0x20] %vm3_vm0, %v202_v42  }
  0xa8   :  { %1007 = vst.msk [vmem:[%s2796_s1 + $0xc1] sm:$0x40] %vm3_vm0, %v202_v42  }
  0xa9   :  { %1008 = vst.msk [vmem:[%s2796_s1 + $0xe0] sm:$0x80] %vm3_vm0, %v202_v42  }
  0xaa   :  { %1012 = vst.msk [vmem:[%s2796_s1 + $0x8] sm:$0x1] %vm3_vm0, %v1618_v40  }
  0xab   :  { %1013 = vst.msk [vmem:[%s2796_s1 + $0x27] sm:$0x2] %vm3_vm0, %v1618_v40  }
  0xac   :  { %1014 = vst.msk [vmem:[%s2796_s1 + $0x46] sm:$0x4] %vm3_vm0, %v1618_v40   ;;  %v347_v52 = vpop.permute.xlu1 %346   ;;  %v339_v53 = vpop.permute.xlu0 %338  }
  0xad   :  { %1015 = vst.msk [vmem:[%s2796_s1 + $0x65] sm:$0x8] %vm3_vm0, %v1618_v40   ;;  %v492_v0 = vpop.permute.xlu2 %491  }
  0xae   :  { %1016 = vst.msk [vmem:[%s2796_s1 + $0x84] sm:$0x10] %vm3_vm0, %v1618_v40  }
  0xaf   :  { %1017 = vst.msk [vmem:[%s2796_s1 + $0xa3] sm:$0x20] %vm3_vm0, %v1618_v40  }
  0xb0   :  { %1018 = vst.msk [vmem:[%s2796_s1 + $0xc2] sm:$0x40] %vm3_vm0, %v1618_v40  }
  0xb1   :  { %1019 = vst.msk [vmem:[%s2796_s1 + $0xe1] sm:$0x80] %vm3_vm0, %v1618_v40  }
  0xb2   :  { %1023 = vst.msk [vmem:[%s2796_s1 + $0x9] sm:$0x1] %vm3_vm0, %v260_v44  }
  0xb3   :  { %1024 = vst.msk [vmem:[%s2796_s1 + $0x28] sm:$0x2] %vm3_vm0, %v260_v44  }
  0xb4   :  { %1025 = vst.msk [vmem:[%s2796_s1 + $0x47] sm:$0x4] %vm3_vm0, %v260_v44   ;;  %v397_v55 = vpop.permute.xlu1 %396   ;;  %v376_v56 = vpop.permute.xlu0 %375  }
  0xb5   :  { %1026 = vst.msk [vmem:[%s2796_s1 + $0x66] sm:$0x8] %vm3_vm0, %v260_v44   ;;  %v542_v3 = vpop.permute.xlu2 %541  }
  0xb6   :  { %1027 = vst.msk [vmem:[%s2796_s1 + $0x85] sm:$0x10] %vm3_vm0, %v260_v44  }
  0xb7   :  { %1028 = vst.msk [vmem:[%s2796_s1 + $0xa4] sm:$0x20] %vm3_vm0, %v260_v44  }
  0xb8   :  { %1029 = vst.msk [vmem:[%s2796_s1 + $0xc3] sm:$0x40] %vm3_vm0, %v260_v44  }
  0xb9   :  { %1030 = vst.msk [vmem:[%s2796_s1 + $0xe2] sm:$0x80] %vm3_vm0, %v260_v44  }
  0xba   :  { %1021 = vst.msk [vmem:[%s2796_s1 + $0x108] sm:$0x1] %vm3_vm0, %v252_v45  }
  0xbb   :  { %1022 = vst.msk [vmem:[%s2796_s1 + $0x127] sm:$0x2] %vm3_vm0, %v252_v45  }
  0xbc   :  { %1032 = vst.msk [vmem:[%s2796_s1 + $0x109] sm:$0x1] %vm3_vm0, %v281_v47   ;;  %v434_v59 = vpop.permute.xlu1 %433   ;;  %v426_v60 = vpop.permute.xlu0 %425  }
  0xbd   :  { %1033 = vst.msk [vmem:[%s2796_s1 + $0x128] sm:$0x2] %vm3_vm0, %v281_v47   ;;  %v579_v6 = vpop.permute.xlu2 %578  }
  0xbe   :  { %1043 = vst.msk [vmem:[%s2796_s1 + $0x10a] sm:$0x1] %vm3_vm0, %v310_v48  }
  0xbf   :  { %1044 = vst.msk [vmem:[%s2796_s1 + $0x129] sm:$0x2] %vm3_vm0, %v310_v48  }
  0xc0   :  { %1034 = vst.msk [vmem:[%s2796_s1 + $0xa] sm:$0x1] %vm3_vm0, %v289_v49  }
  0xc1   :  { %1035 = vst.msk [vmem:[%s2796_s1 + $0x29] sm:$0x2] %vm3_vm0, %v289_v49  }
  0xc2   :  { %1036 = vst.msk [vmem:[%s2796_s1 + $0x48] sm:$0x4] %vm3_vm0, %v289_v49  }
  0xc3   :  { %1037 = vst.msk [vmem:[%s2796_s1 + $0x67] sm:$0x8] %vm3_vm0, %v289_v49  }
  0xc4   :  { %1038 = vst.msk [vmem:[%s2796_s1 + $0x86] sm:$0x10] %vm3_vm0, %v289_v49   ;;  %v484_v62 = vpop.permute.xlu1 %483   ;;  %v463_v63 = vpop.permute.xlu0 %462  }
  0xc5   :  { %1039 = vst.msk [vmem:[%s2796_s1 + $0xa5] sm:$0x20] %vm3_vm0, %v289_v49   ;;  %v629_v9 = vpop.permute.xlu2 %628  }
  0xc6   :  { %1040 = vst.msk [vmem:[%s2796_s1 + $0xc4] sm:$0x40] %vm3_vm0, %v289_v49  }
  0xc7   :  { %1041 = vst.msk [vmem:[%s2796_s1 + $0xe3] sm:$0x80] %vm3_vm0, %v289_v49  }
  0xc8   :  { %1045 = vst.msk [vmem:[%s2796_s1 + $0xb] sm:$0x1] %vm3_vm0, %v318_v51  }
  0xc9   :  { %1046 = vst.msk [vmem:[%s2796_s1 + $0x2a] sm:$0x2] %vm3_vm0, %v318_v51  }
  0xca   :  { %1047 = vst.msk [vmem:[%s2796_s1 + $0x49] sm:$0x4] %vm3_vm0, %v318_v51  }
  0xcb   :  { %1048 = vst.msk [vmem:[%s2796_s1 + $0x68] sm:$0x8] %vm3_vm0, %v318_v51  }
  0xcc   :  { %1049 = vst.msk [vmem:[%s2796_s1 + $0x87] sm:$0x10] %vm3_vm0, %v318_v51   ;;  %v521_v1 = vpop.permute.xlu1 %520   ;;  %v513_v2 = vpop.permute.xlu0 %512  }
  0xcd   :  { %1050 = vst.msk [vmem:[%s2796_s1 + $0xa6] sm:$0x20] %vm3_vm0, %v318_v51   ;;  %v666_v12 = vpop.permute.xlu2 %665  }
  0xce   :  { %1051 = vst.msk [vmem:[%s2796_s1 + $0xc5] sm:$0x40] %vm3_vm0, %v318_v51  }
  0xcf   :  { %1052 = vst.msk [vmem:[%s2796_s1 + $0xe4] sm:$0x80] %vm3_vm0, %v318_v51  }
  0xd0   :  { %1056 = vst.msk [vmem:[%s2796_s1 + $0xc] sm:$0x1] %vm3_vm0, %v347_v52  }
  0xd1   :  { %1057 = vst.msk [vmem:[%s2796_s1 + $0x2b] sm:$0x2] %vm3_vm0, %v347_v52  }
  0xd2   :  { %1058 = vst.msk [vmem:[%s2796_s1 + $0x4a] sm:$0x4] %vm3_vm0, %v347_v52  }
  0xd3   :  { %1059 = vst.msk [vmem:[%s2796_s1 + $0x69] sm:$0x8] %vm3_vm0, %v347_v52  }
  0xd4   :  { %1060 = vst.msk [vmem:[%s2796_s1 + $0x88] sm:$0x10] %vm3_vm0, %v347_v52   ;;  %v571_v4 = vpop.permute.xlu1 %570   ;;  %v550_v5 = vpop.permute.xlu0 %549  }
  0xd5   :  { %1061 = vst.msk [vmem:[%s2796_s1 + $0xa7] sm:$0x20] %vm3_vm0, %v347_v52   ;;  %v716_v15 = vpop.permute.xlu2 %715  }
  0xd6   :  { %1062 = vst.msk [vmem:[%s2796_s1 + $0xc6] sm:$0x40] %vm3_vm0, %v347_v52  }
  0xd7   :  { %1063 = vst.msk [vmem:[%s2796_s1 + $0xe5] sm:$0x80] %vm3_vm0, %v347_v52  }
  0xd8   :  { %1054 = vst.msk [vmem:[%s2796_s1 + $0x10b] sm:$0x1] %vm3_vm0, %v339_v53  }
  0xd9   :  { %1055 = vst.msk [vmem:[%s2796_s1 + $0x12a] sm:$0x2] %vm3_vm0, %v339_v53  }
  0xda   :  { %1065 = vst.msk [vmem:[%s2796_s1 + $0x10c] sm:$0x1] %vm3_vm0, %v368_v54  }
  0xdb   :  { %1066 = vst.msk [vmem:[%s2796_s1 + $0x12b] sm:$0x2] %vm3_vm0, %v368_v54  }
  0xdc   :  { %1076 = vst.msk [vmem:[%s2796_s1 + $0x10d] sm:$0x1] %vm3_vm0, %v397_v55   ;;  %v608_v7 = vpop.permute.xlu1 %607   ;;  %v600_v8 = vpop.permute.xlu0 %599  }
  0xdd   :  { %1077 = vst.msk [vmem:[%s2796_s1 + $0x12c] sm:$0x2] %vm3_vm0, %v397_v55   ;;  %v753_v18 = vpop.permute.xlu2 %752  }
  0xde   :  { %1067 = vst.msk [vmem:[%s2796_s1 + $0xd] sm:$0x1] %vm3_vm0, %v376_v56  }
  0xdf   :  { %1068 = vst.msk [vmem:[%s2796_s1 + $0x2c] sm:$0x2] %vm3_vm0, %v376_v56  }
  0xe0   :  { %1069 = vst.msk [vmem:[%s2796_s1 + $0x4b] sm:$0x4] %vm3_vm0, %v376_v56  }
  0xe1   :  { %1070 = vst.msk [vmem:[%s2796_s1 + $0x6a] sm:$0x8] %vm3_vm0, %v376_v56  }
  0xe2   :  { %1071 = vst.msk [vmem:[%s2796_s1 + $0x89] sm:$0x10] %vm3_vm0, %v376_v56  }
  0xe3   :  { %1072 = vst.msk [vmem:[%s2796_s1 + $0xa8] sm:$0x20] %vm3_vm0, %v376_v56  }
  0xe4   :  { %1073 = vst.msk [vmem:[%s2796_s1 + $0xc7] sm:$0x40] %vm3_vm0, %v376_v56   ;;  %v658_v10 = vpop.permute.xlu1 %657   ;;  %v637_v11 = vpop.permute.xlu0 %636  }
  0xe5   :  { %1074 = vst.msk [vmem:[%s2796_s1 + $0xe6] sm:$0x80] %vm3_vm0, %v376_v56   ;;  %v803_v21 = vpop.permute.xlu2 %802  }
  0xe6   :  { %1078 = vst.msk [vmem:[%s2796_s1 + $0xe] sm:$0x1] %vm3_vm0, %v405_v58  }
  0xe7   :  { %1079 = vst.msk [vmem:[%s2796_s1 + $0x2d] sm:$0x2] %vm3_vm0, %v405_v58  }
  0xe8   :  { %1080 = vst.msk [vmem:[%s2796_s1 + $0x4c] sm:$0x4] %vm3_vm0, %v405_v58  }
  0xe9   :  { %1081 = vst.msk [vmem:[%s2796_s1 + $0x6b] sm:$0x8] %vm3_vm0, %v405_v58  }
  0xea   :  { %1082 = vst.msk [vmem:[%s2796_s1 + $0x8a] sm:$0x10] %vm3_vm0, %v405_v58  }
  0xeb   :  { %1083 = vst.msk [vmem:[%s2796_s1 + $0xa9] sm:$0x20] %vm3_vm0, %v405_v58  }
  0xec   :  { %1084 = vst.msk [vmem:[%s2796_s1 + $0xc8] sm:$0x40] %vm3_vm0, %v405_v58   ;;  %v695_v13 = vpop.permute.xlu1 %694   ;;  %v687_v14 = vpop.permute.xlu0 %686  }
  0xed   :  { %1085 = vst.msk [vmem:[%s2796_s1 + $0xe7] sm:$0x80] %vm3_vm0, %v405_v58   ;;  %v840_v24 = vpop.permute.xlu2 %839  }
  0xee   :  { %1089 = vst.msk [vmem:[%s2796_s1 + $0xf] sm:$0x1] %vm3_vm0, %v434_v59  }
  0xef   :  { %1090 = vst.msk [vmem:[%s2796_s1 + $0x2e] sm:$0x2] %vm3_vm0, %v434_v59  }
  0xf0   :  { %1091 = vst.msk [vmem:[%s2796_s1 + $0x4d] sm:$0x4] %vm3_vm0, %v434_v59  }
  0xf1   :  { %1092 = vst.msk [vmem:[%s2796_s1 + $0x6c] sm:$0x8] %vm3_vm0, %v434_v59  }
  0xf2   :  { %1093 = vst.msk [vmem:[%s2796_s1 + $0x8b] sm:$0x10] %vm3_vm0, %v434_v59  }
  0xf3   :  { %1094 = vst.msk [vmem:[%s2796_s1 + $0xaa] sm:$0x20] %vm3_vm0, %v434_v59  }
  0xf4   :  { %1095 = vst.msk [vmem:[%s2796_s1 + $0xc9] sm:$0x40] %vm3_vm0, %v434_v59   ;;  %v745_v16 = vpop.permute.xlu1 %744   ;;  %v724_v17 = vpop.permute.xlu0 %723  }
  0xf5   :  { %1096 = vst.msk [vmem:[%s2796_s1 + $0xe8] sm:$0x80] %vm3_vm0, %v434_v59   ;;  %v890_v27 = vpop.permute.xlu2 %889  }
  0xf6   :  { %1087 = vst.msk [vmem:[%s2796_s1 + $0x10e] sm:$0x1] %vm3_vm0, %v426_v60  }
  0xf7   :  { %1088 = vst.msk [vmem:[%s2796_s1 + $0x12d] sm:$0x2] %vm3_vm0, %v426_v60  }
  0xf8   :  { %1098 = vst.msk [vmem:[%s2796_s1 + $0x10f] sm:$0x1] %vm3_vm0, %v455_v61  }
  0xf9   :  { %1099 = vst.msk [vmem:[%s2796_s1 + $0x12e] sm:$0x2] %vm3_vm0, %v455_v61  }
  0xfa   :  { %1109 = vst.msk [vmem:[%s2796_s1 + $0x110] sm:$0x1] %vm3_vm0, %v484_v62  }
  0xfb   :  { %1110 = vst.msk [vmem:[%s2796_s1 + $0x12f] sm:$0x2] %vm3_vm0, %v484_v62  }
  0xfc   :  { %1100 = vst.msk [vmem:[%s2796_s1 + $0x10] sm:$0x1] %vm3_vm0, %v463_v63   ;;  %v782_v19 = vpop.permute.xlu1 %781   ;;  %v774_v20 = vpop.permute.xlu0 %773  }
  0xfd   :  { %1101 = vst.msk [vmem:[%s2796_s1 + $0x2f] sm:$0x2] %vm3_vm0, %v463_v63  }
  0xfe   :  { %1102 = vst.msk [vmem:[%s2796_s1 + $0x4e] sm:$0x4] %vm3_vm0, %v463_v63  }
  0xff   :  { %1103 = vst.msk [vmem:[%s2796_s1 + $0x6d] sm:$0x8] %vm3_vm0, %v463_v63  }
 0x100   :  { %1104 = vst.msk [vmem:[%s2796_s1 + $0x8c] sm:$0x10] %vm3_vm0, %v463_v63  }
 0x101   :  { %1105 = vst.msk [vmem:[%s2796_s1 + $0xab] sm:$0x20] %vm3_vm0, %v463_v63  }
 0x102   :  { %1106 = vst.msk [vmem:[%s2796_s1 + $0xca] sm:$0x40] %vm3_vm0, %v463_v63  }
 0x103   :  { %1107 = vst.msk [vmem:[%s2796_s1 + $0xe9] sm:$0x80] %vm3_vm0, %v463_v63  }
 0x104   :  { %1111 = vst.msk [vmem:[%s2796_s1 + $0x11] sm:$0x1] %vm3_vm0, %v492_v0   ;;  %v832_v22 = vpop.permute.xlu1 %831   ;;  %v811_v23 = vpop.permute.xlu0 %810  }
 0x105   :  { %1112 = vst.msk [vmem:[%s2796_s1 + $0x30] sm:$0x2] %vm3_vm0, %v492_v0  }
 0x106   :  { %1113 = vst.msk [vmem:[%s2796_s1 + $0x4f] sm:$0x4] %vm3_vm0, %v492_v0  }
 0x107   :  { %1114 = vst.msk [vmem:[%s2796_s1 + $0x6e] sm:$0x8] %vm3_vm0, %v492_v0  }
 0x108   :  { %1115 = vst.msk [vmem:[%s2796_s1 + $0x8d] sm:$0x10] %vm3_vm0, %v492_v0  }
 0x109   :  { %1116 = vst.msk [vmem:[%s2796_s1 + $0xac] sm:$0x20] %vm3_vm0, %v492_v0  }
 0x10a   :  { %1117 = vst.msk [vmem:[%s2796_s1 + $0xcb] sm:$0x40] %vm3_vm0, %v492_v0  }
 0x10b   :  { %1118 = vst.msk [vmem:[%s2796_s1 + $0xea] sm:$0x80] %vm3_vm0, %v492_v0  }
 0x10c   :  { %1122 = vst.msk [vmem:[%s2796_s1 + $0x12] sm:$0x1] %vm3_vm0, %v521_v1   ;;  %v869_v25 = vpop.permute.xlu1 %868   ;;  %v861_v26 = vpop.permute.xlu0 %860  }
 0x10d   :  { %1123 = vst.msk [vmem:[%s2796_s1 + $0x31] sm:$0x2] %vm3_vm0, %v521_v1  }
 0x10e   :  { %1124 = vst.msk [vmem:[%s2796_s1 + $0x50] sm:$0x4] %vm3_vm0, %v521_v1  }
 0x10f   :  { %1125 = vst.msk [vmem:[%s2796_s1 + $0x6f] sm:$0x8] %vm3_vm0, %v521_v1  }
 0x110   :  { %1126 = vst.msk [vmem:[%s2796_s1 + $0x8e] sm:$0x10] %vm3_vm0, %v521_v1  }
 0x111   :  { %1127 = vst.msk [vmem:[%s2796_s1 + $0xad] sm:$0x20] %vm3_vm0, %v521_v1  }
 0x112   :  { %1128 = vst.msk [vmem:[%s2796_s1 + $0xcc] sm:$0x40] %vm3_vm0, %v521_v1  }
 0x113   :  { %1129 = vst.msk [vmem:[%s2796_s1 + $0xeb] sm:$0x80] %vm3_vm0, %v521_v1  }
 0x114   :  { %1120 = vst.msk [vmem:[%s2796_s1 + $0x111] sm:$0x1] %vm3_vm0, %v513_v2   ;;  %v919_v28 = vpop.permute.xlu1 %918   ;;  %v898_v29 = vpop.permute.xlu0 %897  }
 0x115   :  { %1121 = vst.msk [vmem:[%s2796_s1 + $0x130] sm:$0x2] %vm3_vm0, %v513_v2  }
 0x116   :  { %1131 = vst.msk [vmem:[%s2796_s1 + $0x112] sm:$0x1] %vm3_vm0, %v542_v3  }
 0x117   :  { %1132 = vst.msk [vmem:[%s2796_s1 + $0x131] sm:$0x2] %vm3_vm0, %v542_v3  }
 0x118   :  { %1142 = vst.msk [vmem:[%s2796_s1 + $0x113] sm:$0x1] %vm3_vm0, %v571_v4  }
 0x119   :  { %1143 = vst.msk [vmem:[%s2796_s1 + $0x132] sm:$0x2] %vm3_vm0, %v571_v4  }
 0x11a   :  { %1133 = vst.msk [vmem:[%s2796_s1 + $0x13] sm:$0x1] %vm3_vm0, %v550_v5  }
 0x11b   :  { %1134 = vst.msk [vmem:[%s2796_s1 + $0x32] sm:$0x2] %vm3_vm0, %v550_v5  }
 0x11c   :  { %1135 = vst.msk [vmem:[%s2796_s1 + $0x51] sm:$0x4] %vm3_vm0, %v550_v5  }
 0x11d   :  { %1136 = vst.msk [vmem:[%s2796_s1 + $0x70] sm:$0x8] %vm3_vm0, %v550_v5  }
 0x11e   :  { %1137 = vst.msk [vmem:[%s2796_s1 + $0x8f] sm:$0x10] %vm3_vm0, %v550_v5  }
 0x11f   :  { %1138 = vst.msk [vmem:[%s2796_s1 + $0xae] sm:$0x20] %vm3_vm0, %v550_v5  }
 0x120   :  { %1139 = vst.msk [vmem:[%s2796_s1 + $0xcd] sm:$0x40] %vm3_vm0, %v550_v5  }
 0x121   :  { %1140 = vst.msk [vmem:[%s2796_s1 + $0xec] sm:$0x80] %vm3_vm0, %v550_v5  }
 0x122   :  { %1144 = vst.msk [vmem:[%s2796_s1 + $0x14] sm:$0x1] %vm3_vm0, %v579_v6  }
 0x123   :  { %1145 = vst.msk [vmem:[%s2796_s1 + $0x33] sm:$0x2] %vm3_vm0, %v579_v6  }
 0x124   :  { %1146 = vst.msk [vmem:[%s2796_s1 + $0x52] sm:$0x4] %vm3_vm0, %v579_v6  }
 0x125   :  { %1147 = vst.msk [vmem:[%s2796_s1 + $0x71] sm:$0x8] %vm3_vm0, %v579_v6  }
 0x126   :  { %1148 = vst.msk [vmem:[%s2796_s1 + $0x90] sm:$0x10] %vm3_vm0, %v579_v6  }
 0x127   :  { %1149 = vst.msk [vmem:[%s2796_s1 + $0xaf] sm:$0x20] %vm3_vm0, %v579_v6  }
 0x128   :  { %1150 = vst.msk [vmem:[%s2796_s1 + $0xce] sm:$0x40] %vm3_vm0, %v579_v6  }
 0x129   :  { %1151 = vst.msk [vmem:[%s2796_s1 + $0xed] sm:$0x80] %vm3_vm0, %v579_v6  }
 0x12a   :  { %1155 = vst.msk [vmem:[%s2796_s1 + $0x15] sm:$0x1] %vm3_vm0, %v608_v7  }
 0x12b   :  { %1156 = vst.msk [vmem:[%s2796_s1 + $0x34] sm:$0x2] %vm3_vm0, %v608_v7  }
 0x12c   :  { %1157 = vst.msk [vmem:[%s2796_s1 + $0x53] sm:$0x4] %vm3_vm0, %v608_v7  }
 0x12d   :  { %1158 = vst.msk [vmem:[%s2796_s1 + $0x72] sm:$0x8] %vm3_vm0, %v608_v7  }
 0x12e   :  { %1159 = vst.msk [vmem:[%s2796_s1 + $0x91] sm:$0x10] %vm3_vm0, %v608_v7  }
 0x12f   :  { %1160 = vst.msk [vmem:[%s2796_s1 + $0xb0] sm:$0x20] %vm3_vm0, %v608_v7  }
 0x130   :  { %1161 = vst.msk [vmem:[%s2796_s1 + $0xcf] sm:$0x40] %vm3_vm0, %v608_v7  }
 0x131   :  { %1162 = vst.msk [vmem:[%s2796_s1 + $0xee] sm:$0x80] %vm3_vm0, %v608_v7  }
 0x132   :  { %1153 = vst.msk [vmem:[%s2796_s1 + $0x114] sm:$0x1] %vm3_vm0, %v600_v8  }
 0x133   :  { %1154 = vst.msk [vmem:[%s2796_s1 + $0x133] sm:$0x2] %vm3_vm0, %v600_v8  }
 0x134   :  { %1164 = vst.msk [vmem:[%s2796_s1 + $0x115] sm:$0x1] %vm3_vm0, %v629_v9  }
 0x135   :  { %1165 = vst.msk [vmem:[%s2796_s1 + $0x134] sm:$0x2] %vm3_vm0, %v629_v9  }
 0x136   :  { %1175 = vst.msk [vmem:[%s2796_s1 + $0x116] sm:$0x1] %vm3_vm0, %v658_v10  }
 0x137   :  { %1176 = vst.msk [vmem:[%s2796_s1 + $0x135] sm:$0x2] %vm3_vm0, %v658_v10  }
 0x138   :  { %1166 = vst.msk [vmem:[%s2796_s1 + $0x16] sm:$0x1] %vm3_vm0, %v637_v11  }
 0x139   :  { %1167 = vst.msk [vmem:[%s2796_s1 + $0x35] sm:$0x2] %vm3_vm0, %v637_v11  }
 0x13a   :  { %1168 = vst.msk [vmem:[%s2796_s1 + $0x54] sm:$0x4] %vm3_vm0, %v637_v11  }
 0x13b   :  { %1169 = vst.msk [vmem:[%s2796_s1 + $0x73] sm:$0x8] %vm3_vm0, %v637_v11  }
 0x13c   :  { %1170 = vst.msk [vmem:[%s2796_s1 + $0x92] sm:$0x10] %vm3_vm0, %v637_v11  }
 0x13d   :  { %1171 = vst.msk [vmem:[%s2796_s1 + $0xb1] sm:$0x20] %vm3_vm0, %v637_v11  }
 0x13e   :  { %1172 = vst.msk [vmem:[%s2796_s1 + $0xd0] sm:$0x40] %vm3_vm0, %v637_v11  }
 0x13f   :  { %1173 = vst.msk [vmem:[%s2796_s1 + $0xef] sm:$0x80] %vm3_vm0, %v637_v11  }
 0x140   :  { %1177 = vst.msk [vmem:[%s2796_s1 + $0x17] sm:$0x1] %vm3_vm0, %v666_v12  }
 0x141   :  { %1178 = vst.msk [vmem:[%s2796_s1 + $0x36] sm:$0x2] %vm3_vm0, %v666_v12  }
 0x142   :  { %1179 = vst.msk [vmem:[%s2796_s1 + $0x55] sm:$0x4] %vm3_vm0, %v666_v12  }
 0x143   :  { %1180 = vst.msk [vmem:[%s2796_s1 + $0x74] sm:$0x8] %vm3_vm0, %v666_v12  }
 0x144   :  { %1181 = vst.msk [vmem:[%s2796_s1 + $0x93] sm:$0x10] %vm3_vm0, %v666_v12  }
 0x145   :  { %1182 = vst.msk [vmem:[%s2796_s1 + $0xb2] sm:$0x20] %vm3_vm0, %v666_v12  }
 0x146   :  { %1183 = vst.msk [vmem:[%s2796_s1 + $0xd1] sm:$0x40] %vm3_vm0, %v666_v12  }
 0x147   :  { %1184 = vst.msk [vmem:[%s2796_s1 + $0xf0] sm:$0x80] %vm3_vm0, %v666_v12  }
 0x148   :  { %1188 = vst.msk [vmem:[%s2796_s1 + $0x18] sm:$0x1] %vm3_vm0, %v695_v13  }
 0x149   :  { %1189 = vst.msk [vmem:[%s2796_s1 + $0x37] sm:$0x2] %vm3_vm0, %v695_v13  }
 0x14a   :  { %1190 = vst.msk [vmem:[%s2796_s1 + $0x56] sm:$0x4] %vm3_vm0, %v695_v13  }
 0x14b   :  { %1191 = vst.msk [vmem:[%s2796_s1 + $0x75] sm:$0x8] %vm3_vm0, %v695_v13  }
 0x14c   :  { %1192 = vst.msk [vmem:[%s2796_s1 + $0x94] sm:$0x10] %vm3_vm0, %v695_v13  }
 0x14d   :  { %1193 = vst.msk [vmem:[%s2796_s1 + $0xb3] sm:$0x20] %vm3_vm0, %v695_v13  }
 0x14e   :  { %1194 = vst.msk [vmem:[%s2796_s1 + $0xd2] sm:$0x40] %vm3_vm0, %v695_v13  }
 0x14f   :  { %1195 = vst.msk [vmem:[%s2796_s1 + $0xf1] sm:$0x80] %vm3_vm0, %v695_v13  }
 0x150   :  { %1186 = vst.msk [vmem:[%s2796_s1 + $0x117] sm:$0x1] %vm3_vm0, %v687_v14  }
 0x151   :  { %1187 = vst.msk [vmem:[%s2796_s1 + $0x136] sm:$0x2] %vm3_vm0, %v687_v14  }
 0x152   :  { %1197 = vst.msk [vmem:[%s2796_s1 + $0x118] sm:$0x1] %vm3_vm0, %v716_v15  }
 0x153   :  { %1198 = vst.msk [vmem:[%s2796_s1 + $0x137] sm:$0x2] %vm3_vm0, %v716_v15  }
 0x154   :  { %1208 = vst.msk [vmem:[%s2796_s1 + $0x119] sm:$0x1] %vm3_vm0, %v745_v16  }
 0x155   :  { %1209 = vst.msk [vmem:[%s2796_s1 + $0x138] sm:$0x2] %vm3_vm0, %v745_v16  }
 0x156   :  { %1199 = vst.msk [vmem:[%s2796_s1 + $0x19] sm:$0x1] %vm3_vm0, %v724_v17  }
 0x157   :  { %1200 = vst.msk [vmem:[%s2796_s1 + $0x38] sm:$0x2] %vm3_vm0, %v724_v17  }
 0x158   :  { %1201 = vst.msk [vmem:[%s2796_s1 + $0x57] sm:$0x4] %vm3_vm0, %v724_v17  }
 0x159   :  { %1202 = vst.msk [vmem:[%s2796_s1 + $0x76] sm:$0x8] %vm3_vm0, %v724_v17  }
 0x15a   :  { %1203 = vst.msk [vmem:[%s2796_s1 + $0x95] sm:$0x10] %vm3_vm0, %v724_v17  }
 0x15b   :  { %1204 = vst.msk [vmem:[%s2796_s1 + $0xb4] sm:$0x20] %vm3_vm0, %v724_v17  }
 0x15c   :  { %1205 = vst.msk [vmem:[%s2796_s1 + $0xd3] sm:$0x40] %vm3_vm0, %v724_v17  }
 0x15d   :  { %1206 = vst.msk [vmem:[%s2796_s1 + $0xf2] sm:$0x80] %vm3_vm0, %v724_v17  }
 0x15e   :  { %1210 = vst.msk [vmem:[%s2796_s1 + $0x1a] sm:$0x1] %vm3_vm0, %v753_v18  }
 0x15f   :  { %1211 = vst.msk [vmem:[%s2796_s1 + $0x39] sm:$0x2] %vm3_vm0, %v753_v18  }
 0x160   :  { %1212 = vst.msk [vmem:[%s2796_s1 + $0x58] sm:$0x4] %vm3_vm0, %v753_v18  }
 0x161   :  { %1213 = vst.msk [vmem:[%s2796_s1 + $0x77] sm:$0x8] %vm3_vm0, %v753_v18  }
 0x162   :  { %1214 = vst.msk [vmem:[%s2796_s1 + $0x96] sm:$0x10] %vm3_vm0, %v753_v18  }
 0x163   :  { %1215 = vst.msk [vmem:[%s2796_s1 + $0xb5] sm:$0x20] %vm3_vm0, %v753_v18  }
 0x164   :  { %1216 = vst.msk [vmem:[%s2796_s1 + $0xd4] sm:$0x40] %vm3_vm0, %v753_v18  }
 0x165   :  { %1217 = vst.msk [vmem:[%s2796_s1 + $0xf3] sm:$0x80] %vm3_vm0, %v753_v18  }
 0x166   :  { %1221 = vst.msk [vmem:[%s2796_s1 + $0x1b] sm:$0x1] %vm3_vm0, %v782_v19  }
 0x167   :  { %1222 = vst.msk [vmem:[%s2796_s1 + $0x3a] sm:$0x2] %vm3_vm0, %v782_v19  }
 0x168   :  { %1223 = vst.msk [vmem:[%s2796_s1 + $0x59] sm:$0x4] %vm3_vm0, %v782_v19  }
 0x169   :  { %1224 = vst.msk [vmem:[%s2796_s1 + $0x78] sm:$0x8] %vm3_vm0, %v782_v19  }
 0x16a   :  { %1225 = vst.msk [vmem:[%s2796_s1 + $0x97] sm:$0x10] %vm3_vm0, %v782_v19  }
 0x16b   :  { %1226 = vst.msk [vmem:[%s2796_s1 + $0xb6] sm:$0x20] %vm3_vm0, %v782_v19  }
 0x16c   :  { %1227 = vst.msk [vmem:[%s2796_s1 + $0xd5] sm:$0x40] %vm3_vm0, %v782_v19  }
 0x16d   :  { %1228 = vst.msk [vmem:[%s2796_s1 + $0xf4] sm:$0x80] %vm3_vm0, %v782_v19  }
 0x16e   :  { %1219 = vst.msk [vmem:[%s2796_s1 + $0x11a] sm:$0x1] %vm3_vm0, %v774_v20  }
 0x16f   :  { %1220 = vst.msk [vmem:[%s2796_s1 + $0x139] sm:$0x2] %vm3_vm0, %v774_v20  }
 0x170   :  { %1230 = vst.msk [vmem:[%s2796_s1 + $0x11b] sm:$0x1] %vm3_vm0, %v803_v21  }
 0x171   :  { %1231 = vst.msk [vmem:[%s2796_s1 + $0x13a] sm:$0x2] %vm3_vm0, %v803_v21  }
 0x172   :  { %1241 = vst.msk [vmem:[%s2796_s1 + $0x11c] sm:$0x1] %vm3_vm0, %v832_v22  }
 0x173   :  { %1242 = vst.msk [vmem:[%s2796_s1 + $0x13b] sm:$0x2] %vm3_vm0, %v832_v22  }
 0x174   :  { %1232 = vst.msk [vmem:[%s2796_s1 + $0x1c] sm:$0x1] %vm3_vm0, %v811_v23  }
 0x175   :  { %1233 = vst.msk [vmem:[%s2796_s1 + $0x3b] sm:$0x2] %vm3_vm0, %v811_v23  }
 0x176   :  { %1234 = vst.msk [vmem:[%s2796_s1 + $0x5a] sm:$0x4] %vm3_vm0, %v811_v23  }
 0x177   :  { %1235 = vst.msk [vmem:[%s2796_s1 + $0x79] sm:$0x8] %vm3_vm0, %v811_v23  }
 0x178   :  { %1236 = vst.msk [vmem:[%s2796_s1 + $0x98] sm:$0x10] %vm3_vm0, %v811_v23  }
 0x179   :  { %1237 = vst.msk [vmem:[%s2796_s1 + $0xb7] sm:$0x20] %vm3_vm0, %v811_v23  }
 0x17a   :  { %1238 = vst.msk [vmem:[%s2796_s1 + $0xd6] sm:$0x40] %vm3_vm0, %v811_v23  }
 0x17b   :  { %1239 = vst.msk [vmem:[%s2796_s1 + $0xf5] sm:$0x80] %vm3_vm0, %v811_v23  }
 0x17c   :  { %1243 = vst.msk [vmem:[%s2796_s1 + $0x1d] sm:$0x1] %vm3_vm0, %v840_v24  }
 0x17d   :  { %1244 = vst.msk [vmem:[%s2796_s1 + $0x3c] sm:$0x2] %vm3_vm0, %v840_v24  }
 0x17e   :  { %1245 = vst.msk [vmem:[%s2796_s1 + $0x5b] sm:$0x4] %vm3_vm0, %v840_v24  }
 0x17f   :  { %1246 = vst.msk [vmem:[%s2796_s1 + $0x7a] sm:$0x8] %vm3_vm0, %v840_v24  }
 0x180   :  { %1247 = vst.msk [vmem:[%s2796_s1 + $0x99] sm:$0x10] %vm3_vm0, %v840_v24  }
 0x181   :  { %1248 = vst.msk [vmem:[%s2796_s1 + $0xb8] sm:$0x20] %vm3_vm0, %v840_v24  }
 0x182   :  { %1249 = vst.msk [vmem:[%s2796_s1 + $0xd7] sm:$0x40] %vm3_vm0, %v840_v24  }
 0x183   :  { %1250 = vst.msk [vmem:[%s2796_s1 + $0xf6] sm:$0x80] %vm3_vm0, %v840_v24  }
 0x184   :  { %1254 = vst.msk [vmem:[%s2796_s1 + $0x1e] sm:$0x1] %vm3_vm0, %v869_v25  }
 0x185   :  { %1255 = vst.msk [vmem:[%s2796_s1 + $0x3d] sm:$0x2] %vm3_vm0, %v869_v25  }
 0x186   :  { %1256 = vst.msk [vmem:[%s2796_s1 + $0x5c] sm:$0x4] %vm3_vm0, %v869_v25  }
 0x187   :  { %1257 = vst.msk [vmem:[%s2796_s1 + $0x7b] sm:$0x8] %vm3_vm0, %v869_v25  }
 0x188   :  { %1258 = vst.msk [vmem:[%s2796_s1 + $0x9a] sm:$0x10] %vm3_vm0, %v869_v25  }
 0x189   :  { %1259 = vst.msk [vmem:[%s2796_s1 + $0xb9] sm:$0x20] %vm3_vm0, %v869_v25  }
 0x18a   :  { %1260 = vst.msk [vmem:[%s2796_s1 + $0xd8] sm:$0x40] %vm3_vm0, %v869_v25  }
 0x18b   :  { %1261 = vst.msk [vmem:[%s2796_s1 + $0xf7] sm:$0x80] %vm3_vm0, %v869_v25  }
 0x18c   :  { %1252 = vst.msk [vmem:[%s2796_s1 + $0x11d] sm:$0x1] %vm3_vm0, %v861_v26  }
 0x18d   :  { %1253 = vst.msk [vmem:[%s2796_s1 + $0x13c] sm:$0x2] %vm3_vm0, %v861_v26  }
 0x18e   :  { %1263 = vst.msk [vmem:[%s2796_s1 + $0x11e] sm:$0x1] %vm3_vm0, %v890_v27  }
 0x18f   :  { %1264 = vst.msk [vmem:[%s2796_s1 + $0x13d] sm:$0x2] %vm3_vm0, %v890_v27  }
 0x190   :  { %1274 = vst.msk [vmem:[%s2796_s1 + $0x11f] sm:$0x1] %vm3_vm0, %v919_v28  }
 0x191   :  { %1275 = vst.msk [vmem:[%s2796_s1 + $0x13e] sm:$0x2] %vm3_vm0, %v919_v28  }
 0x192   :  { %1265 = vst.msk [vmem:[%s2796_s1 + $0x1f] sm:$0x1] %vm3_vm0, %v898_v29  }
 0x193   :  { %1266 = vst.msk [vmem:[%s2796_s1 + $0x3e] sm:$0x2] %vm3_vm0, %v898_v29  }
 0x194   :  { %1267 = vst.msk [vmem:[%s2796_s1 + $0x5d] sm:$0x4] %vm3_vm0, %v898_v29  }
 0x195   :  { %1268 = vst.msk [vmem:[%s2796_s1 + $0x7c] sm:$0x8] %vm3_vm0, %v898_v29  }
 0x196   :  { %1269 = vst.msk [vmem:[%s2796_s1 + $0x9b] sm:$0x10] %vm3_vm0, %v898_v29  }
 0x197   :  { %1270 = vst.msk [vmem:[%s2796_s1 + $0xba] sm:$0x20] %vm3_vm0, %v898_v29  }
 0x198   :  { %1271 = vst.msk [vmem:[%s2796_s1 + $0xd9] sm:$0x40] %vm3_vm0, %v898_v29  }
 0x199   :  { %1272 = vst.msk [vmem:[%s2796_s1 + $0xf8] sm:$0x80] %vm3_vm0, %v898_v29  }
 0x19a   :  { %4 = vst.msk [vmem:[%s2796_s1] sm:$0x1] %vm3_vm0, %v2_v30  }
 0x19b   :  { %925 = vst.msk [vmem:[%s2796_s1 + $0x1f] sm:$0x2] %vm3_vm0, %v2_v30  }
 0x19c   :  { %926 = vst.msk [vmem:[%s2796_s1 + $0x3e] sm:$0x4] %vm3_vm0, %v2_v30  }
 0x19d   :  { %927 = vst.msk [vmem:[%s2796_s1 + $0x5d] sm:$0x8] %vm3_vm0, %v2_v30  }
 0x19e   :  { %928 = vst.msk [vmem:[%s2796_s1 + $0x7c] sm:$0x10] %vm3_vm0, %v2_v30  }
 0x19f   :  { %929 = vst.msk [vmem:[%s2796_s1 + $0x9b] sm:$0x20] %vm3_vm0, %v2_v30  }
 0x1a0   :  { %930 = vst.msk [vmem:[%s2796_s1 + $0xba] sm:$0x40] %vm3_vm0, %v2_v30  }
 0x1a1   :  { %931 = vst.msk [vmem:[%s2796_s1 + $0xd9] sm:$0x80] %vm3_vm0, %v2_v30  }
 0x1a2   :  { %933 = vst.msk [vmem:[%s2796_s1 + $0x100] sm:$0x1] %vm3_vm0, %v932_v31  }
 0x1a3   :  { %934 = vst.msk [vmem:[%s2796_s1 + $0x11f] sm:$0x2] %vm3_vm0, %v932_v31  }

// kernel: tile.23
= control target key start
LH: loop header
LB: loop body
LE: loop exit
PB: predicated region body
PF: predicated region fallthrough
CT: control target
= control target key end

     0   :  { %s28_s0 = inlined_call_operand.vmem [shape: f32[12], index: 0, kind: input, shape index: {}]   ;;  %s29_s1 = inlined_call_operand.vmem [shape: f32[10,12], index: 1, kind: output, shape index: {}]  }
   0x1   :  { %v4_v0 = vld [vmem:[%s28_s0] ss:$0 sm:$0xff] }
   0x2   :  { %5 = vst [vmem:[%s29_s1] sm:$0xff] %v4_v0 }
   0x3   :  { %8 = vst [vmem:[%s29_s1 + $0x8] sm:$0xff] %v4_v0 }

// kernel: resblock_forward.1
= control target key start
LH: loop header
LB: loop body
LE: loop exit
PB: predicated region body
PF: predicated region fallthrough
CT: control target
= control target key end

     0   :  { %s2880_s30 = smov 0   ;;  %s2882_s10 = smov 0   ;;  %s4434_s0 = inlined_call_operand.vmem [shape: f32[120,384], index: 0, kind: input, shape index: {}]   ;;  %s4435_s1 = inlined_call_operand.vmem [shape: f32[320,120], index: 1, kind: input, shape index: {}]   ;;  %s4436_s2 = inlined_call_operand.vmem [shape: f32[320,1], index: 2, kind: input, shape index: {}]   ;;  %s4437_s3 = inlined_call_operand.vmem [shape: f32[120,320], index: 3, kind: input, shape index: {}]   ;;  %s4438_s4 = inlined_call_operand.vmem [shape: f32[120,1], index: 4, kind: input, shape index: {}]   ;;  %s4439_s5 = inlined_call_operand.vmem [shape: f32[384,120], index: 5, kind: input, shape index: {}]   ;;  %s4440_s6 = inlined_call_operand.vmem [shape: f32[384,1], index: 6, kind: input, shape index: {}]   ;;  %s4441_s7 = inlined_call_operand.vmem [shape: f32[120,384], index: 7, kind: input, shape index: {}]   ;;  %s4442_s8 = inlined_call_operand.vmem [shape: f32[120,1], index: 8, kind: input, shape index: {}]   ;;  %s4443_s9 = inlined_call_operand.vmem [shape: f32[120,384], index: 9, kind: output, shape index: {}]  }
   0x1   :  { %s2884_s11 = smov 0  }
   0x2 LB: > { %s2617_s12 = sadd.s32 4294967295, %s2827_s11   ;;  %s2897_s13 = sadd.s32 1, %s2827_s11   ;;  %s2827_s11 = sphi %s2884_s11, %s4522_s11   ;;  %s2823_s10 = sphi %s2882_s10, %s4521_s10   ;;  %s2819_s30 = sphi %s2880_s30, %s4520_s30  }
   0x3   : > { %s23_s14 = ssub.s32 %s2827_s11, %s2897_s13  ;;  %s26_s15 = sadd.s32 1, %s2823_s10 }
   0x4   : > { %p24_p0 = scmp.eq.s32.totalorder %s23_s14, 0  ;;  %p33_p1 = scmp.ne.s32.totalorder %s2823_s10, %s2819_s30 }
   0x5   : > { %p34_p2 = scmp.eq.s32.totalorder %s2827_s11, 0  ;;  %p231_p3 = scmp.eq.s32.totalorder %s2617_s12, 2 }
   0x6   : > { %s2908_s16 = scalar_select %p24_p0, %s2823_s10, %s26_s15  }
   0x7   : > { %p35_p4 = por %p34_p2, %p33_p1  ;;  %p2910_p5 = por %p231_p3, %p33_p1 }
   0x8   : > { %p2620_p6 = scmp.ge.s32.totalorder %s2827_s11, 3 }
   0xa   : > { %277 = sbr.rel (%p2620_p6) target bundleno = 34 (0x22), region = 48 }
   0xf   : > { %280 = sbr.rel (!%p35_p4) target bundleno = 34 (0x22), region = 52  ;;  %s282_s18 = sand.u32 (%p35_p4), 1, %s2823_s10  }
  0x10   : > { %s2621_s19 = sshll.u32 (%p35_p4), %s2827_s11, 3  ;;  %s2760_s20 = smul.u32 (%p35_p4), 120, %s282_s18 }
  0x11   : > { %s286_s23 = scalar_lea.vmem (%p35_p4), %s4434_s0, %s2621_s19 }
  0x12   : > { %v343_v0 = vld [vmem:[%s286_s23] sm:$0xff] (%p35_p4)  ;;  %v345_v1 = vld [vmem:[%s286_s23 + $0x18] sm:$0xff] (%p35_p4)  ;;  %v347_v2 = vld [vmem:[%s286_s23 + $0x30] sm:$0xff] (%p35_p4)  ;;  %s284_s24 = scalar_lea.vmem (%p35_p4), [#allocation2], %s2760_s20 }
  0x13   : > { %344 = vst [vmem:[%s284_s24] sm:$0xff] (%p35_p4), %v343_v0  ;;  %v349_v3 = vld [vmem:[%s286_s23 + $0x48] sm:$0xff] (%p35_p4)  ;;  %v351_v4 = vld [vmem:[%s286_s23 + $0x60] sm:$0xff] (%p35_p4)  ;;  %v353_v5 = vld [vmem:[%s286_s23 + $0x78] sm:$0xff] (%p35_p4) }
  0x14   : > { %346 = vst [vmem:[%s284_s24 + $0x8] sm:$0xff] %v345_v1  ;;  %v355_v6 = vld [vmem:[%s286_s23 + $0x90] sm:$0xff]  ;;  %v357_v7 = vld [vmem:[%s286_s23 + $0xa8] sm:$0xff]  ;;  %v359_v8 = vld [vmem:[%s286_s23 + $0xc0] sm:$0xff] }
  0x15   : > { %348 = vst [vmem:[%s284_s24 + $0x10] sm:$0xff] %v347_v2  ;;  %v361_v9 = vld [vmem:[%s286_s23 + $0xd8] sm:$0xff]  ;;  %v363_v10 = vld [vmem:[%s286_s23 + $0xf0] sm:$0xff]  ;;  %v365_v11 = vld [vmem:[%s286_s23 + $0x108] sm:$0xff] }
  0x16   : > { %350 = vst [vmem:[%s284_s24 + $0x18] sm:$0xff] %v349_v3  ;;  %v367_v12 = vld [vmem:[%s286_s23 + $0x120] sm:$0xff]  ;;  %v369_v13 = vld [vmem:[%s286_s23 + $0x138] sm:$0xff]  ;;  %v371_v14 = vld [vmem:[%s286_s23 + $0x150] sm:$0xff] }
  0x17   : > { %352 = vst [vmem:[%s284_s24 + $0x20] sm:$0xff] %v351_v4 }
  0x18   : > { %354 = vst [vmem:[%s284_s24 + $0x28] sm:$0xff] %v353_v5 }
  0x19   : > { %356 = vst [vmem:[%s284_s24 + $0x30] sm:$0xff] %v355_v6 }
  0x1a   : > { %358 = vst [vmem:[%s284_s24 + $0x38] sm:$0xff] %v357_v7 }
  0x1b   : > { %360 = vst [vmem:[%s284_s24 + $0x40] sm:$0xff] %v359_v8 }
  0x1c   : > { %362 = vst [vmem:[%s284_s24 + $0x48] sm:$0xff] %v361_v9 }
  0x1d   : > { %364 = vst [vmem:[%s284_s24 + $0x50] sm:$0xff] %v363_v10 }
  0x1e   : > { %366 = vst [vmem:[%s284_s24 + $0x58] sm:$0xff] %v365_v11 }
  0x1f   : > { %368 = vst [vmem:[%s284_s24 + $0x60] sm:$0xff] %v367_v12 }
  0x20   : > { %370 = vst [vmem:[%s284_s24 + $0x68] sm:$0xff] %v369_v13 }
  0x21   : > { %372 = vst [vmem:[%s284_s24 + $0x70] sm:$0xff] %v371_v14 }
  0x22 PF: > { %p2622_p7 = scmp.ge.s32.totalorder %s2827_s11, 1  ;;  %p377_p8 = scmp.lt.s32.totalorder %s2827_s11, 4 }
  0x24   : > { %p378_p9 = pnand %p2622_p7, %p377_p8 }
  0x26   : > { %381 = sbr.rel (%p378_p9) target bundleno = 1475 (0x5c3), region = 90 }
  0x2b   : > { %v488_v15 = vld [vmem:[%s4436_s2 + $0x78] sm:$0xff]  ;;  %v486_v16 = vld [vmem:[%s4436_s2 + $0x68] sm:$0xff]  ;;  %s384_s15 = sand.u32 1, %s2819_s30   ;;  %v2829_v18 = vmov 0   ;;  %v485_v22 = vld [vmem:[%s4436_s2 + $0x60] sm:$0xff]  ;;  %vm713_vm0 = vcmask 982016  }
  0x2c   : > { %v484_v17 = vld [vmem:[%s4436_s2 + $0x58] sm:$0xff]  ;;  %2789 = vset.pattern.permute.xlu2 %v2829_v18  ;;  %2788 = vset.pattern.permute.xlu1 %v2829_v18  ;;  %s2932_s18 = smul.u32 120, %s384_s15  ;;  %v487_v23 = vld [vmem:[%s4436_s2 + $0x70] sm:$0xff]  ;;  %v482_v30 = vld [vmem:[%s4436_s2 + $0x48] sm:$0xff]  ;;  %vm1056_vm1 = vcmask 523264  }
  0x2d   : > { %2787 = vset.pattern.permute.xlu0 %v2829_v18  ;;  %580 = vperm.xlu1 %2788, %v486_v16   ;;  %v483_v24 = vld [vmem:[%s4436_s2 + $0x50] sm:$0xff]  ;;  %v512_v29 = vld [vmem:[%s4436_s2 + $0x138] sm:$0xff]  ;;  %v481_v31 = vld [vmem:[%s4436_s2 + $0x40] sm:$0xff] }
  0x2e   : > { %590 = vperm.xlu0 %2787, %v488_v15   ;;  %570 = vperm.xlu2 %2789, %v484_v17   ;;  %s2935_s19 = scalar_lea.vmem [#allocation2], %s2932_s18  ;;  %v480_v36 = vld [vmem:[%s4436_s2 + $0x38] sm:$0xff]  ;;  %v511_v37 = vld [vmem:[%s4436_s2 + $0x130] sm:$0xff]  ;;  %v510_v38 = vld [vmem:[%s4436_s2 + $0x128] sm:$0xff]  ;;  %s4360_s30 = scalar_lea.vmem [#allocation3], %s2932_s18 }
  0x2f   : > { %v432_v19 = vld [vmem:[%s2935_s19 + $0x70] sm:$0xff]  ;;  %v431_v20 = vld [vmem:[%s2935_s19 + $0x68] sm:$0xff]  ;;  %v430_v21 = vld [vmem:[%s2935_s19 + $0x60] sm:$0xff]  ;;  %s2726_s18 = sshll.u32 (%p2910_p5), %s2617_s12, 3 }
  0x30   : > { %835 = vmatpush.msra.mxu0 %v432_v19  ;;  %v429_v25 = vld [vmem:[%s2935_s19 + $0x58] sm:$0xff]  ;;  %v428_v26 = vld [vmem:[%s2935_s19 + $0x50] sm:$0xff]  ;;  %v427_v27 = vld [vmem:[%s2935_s19 + $0x48] sm:$0xff]  ;;  %s2471_s17 = scalar_lea.vmem (%p2910_p5), %s4443_s9, %s2726_s18 }
  0x31   : > { %v426_v28 = vld [vmem:[%s2935_s19 + $0x40] sm:$0xff]  ;;  %v425_v32 = vld [vmem:[%s2935_s19 + $0x38] sm:$0xff]  ;;  %v424_v33 = vld [vmem:[%s2935_s19 + $0x30] sm:$0xff] }
  0x32   : > { %836 = vmatpush.msra.mxu0 %v431_v20  ;;  %v423_v34 = vld [vmem:[%s2935_s19 + $0x28] sm:$0xff]  ;;  %v422_v35 = vld [vmem:[%s2935_s19 + $0x20] sm:$0xff]  ;;  %v421_v39 = vld [vmem:[%s2935_s19 + $0x18] sm:$0xff] }
  0x33   : > { %v420_v40 = vld [vmem:[%s2935_s19 + $0x10] sm:$0xff]  ;;  %v419_v41 = vld [vmem:[%s2935_s19 + $0x8] sm:$0xff]  ;;  %v418_v42 = vld [vmem:[%s2935_s19] sm:$0xff] }
  0x34   : > { %837 = vmatpush.msra.mxu0 %v430_v21  ;;  %v504_v43 = vld [vmem:[%s4436_s2 + $0xf8] sm:$0xff]  ;;  %v509_v44 = vld [vmem:[%s4436_s2 + $0x120] sm:$0xff]  ;;  %v479_v45 = vld [vmem:[%s4436_s2 + $0x30] sm:$0xff] }
  0x35   : > { %575 = vperm.xlu1 %2788, %v485_v22   ;;  %v433_v46 = vld [vmem:[%s4435_s1] sm:$0xff]  ;;  %v503_v47 = vld [vmem:[%s4436_s2 + $0xf0] sm:$0xff]  ;;  %v508_v48 = vld [vmem:[%s4436_s2 + $0x118] sm:$0xff] }
  0x36   : > { %585 = vperm.xlu0 %2787, %v487_v23   ;;  %565 = vperm.xlu2 %2789, %v483_v24   ;;  %v478_v49 = vld [vmem:[%s4436_s2 + $0x28] sm:$0xff]  ;;  %v507_v52 = vld [vmem:[%s4436_s2 + $0x110] sm:$0xff]  ;;  %v477_v53 = vld [vmem:[%s4436_s2 + $0x20] sm:$0xff] }
  0x37   : > { %838 = vmatpush.msra.mxu0 %v429_v25  ;;  %v434_v50 = vld [vmem:[%s4435_s1 + $0x8] sm:$0xff]  ;;  %v435_v54 = vld [vmem:[%s4435_s1 + $0x10] sm:$0xff]  ;;  %v501_v55 = vld [vmem:[%s4436_s2 + $0xe0] sm:$0xff] }
  0x38   : > { %v502_v51 = vld [vmem:[%s4436_s2 + $0xe8] sm:$0xff]  ;;  %v476_v57 = vld [vmem:[%s4436_s2 + $0x18] sm:$0xff]  ;;  %v505_v60 = vld [vmem:[%s4436_s2 + $0x100] sm:$0xff] }
  0x39   : > { %839 = vmatpush.msra.mxu0 %v428_v26  ;;  %v506_v56 = vld [vmem:[%s4436_s2 + $0x108] sm:$0xff]  ;;  %v436_v58 = vld [vmem:[%s4435_s1 + $0x18] sm:$0xff]  ;;  %v475_v61 = vld [vmem:[%s4436_s2 + $0x10] sm:$0xff] }
  0x3a   : > { %v500_v59 = vld [vmem:[%s4436_s2 + $0xd8] sm:$0xff]  ;;  %v437_v62 = vld [vmem:[%s4435_s1 + $0x20] sm:$0xff]  ;;  %v499_v63 = vld [vmem:[%s4436_s2 + $0xd0] sm:$0xff] }
  0x3b   : > { %840 = vmatpush.msra.mxu0 %v427_v27  ;;  %v474_v0 = vld [vmem:[%s4436_s2 + $0x8] sm:$0xff]  ;;  %v473_v1 = vld [vmem:[%s4436_s2] sm:$0xff]  ;;  %v496_v5 = vld [vmem:[%s4436_s2 + $0xb8] sm:$0xff] }
  0x3c   : > { %v438_v2 = vld [vmem:[%s4435_s1 + $0x28] sm:$0xff]  ;;  %v497_v3 = vld [vmem:[%s4436_s2 + $0xc0] sm:$0xff]  ;;  %v439_v6 = vld [vmem:[%s4435_s1 + $0x30] sm:$0xff] }
  0x3d   : > { %841 = vmatpush.msra.mxu0 %v426_v28  ;;  %710 = vperm.xlu1 %2788, %v512_v29   ;;  %v498_v4 = vld [vmem:[%s4436_s2 + $0xc8] sm:$0xff]  ;;  %v495_v8 = vld [vmem:[%s4436_s2 + $0xb0] sm:$0xff]  ;;  %v493_v9 = vld [vmem:[%s4436_s2 + $0xa0] sm:$0xff] }
  0x3e   : > { %560 = vperm.xlu0 %2787, %v482_v30   ;;  %555 = vperm.xlu2 %2789, %v481_v31   ;;  %v494_v7 = vld [vmem:[%s4436_s2 + $0xa8] sm:$0xff]  ;;  %v440_v10 = vld [vmem:[%s4435_s1 + $0x38] sm:$0xff]  ;;  %v491_v11 = vld [vmem:[%s4436_s2 + $0x90] sm:$0xff] }
  0x3f   : > { %842 = vmatpush.msra.mxu0 %v425_v32  ;;  %v492_v12 = vld [vmem:[%s4436_s2 + $0x98] sm:$0xff]  ;;  %v490_v13 = vld [vmem:[%s4436_s2 + $0x88] sm:$0xff]  ;;  %v441_v14 = vld [vmem:[%s4435_s1 + $0x40] sm:$0xff] }
  0x40   : > { %v1317_v15 = vld [vmem:[%s4438_s4 + $0x70] sm:$0xff]  ;;  %v489_v16 = vld [vmem:[%s4436_s2 + $0x80] sm:$0xff]  ;;  %v1316_v17 = vld [vmem:[%s4438_s4 + $0x68] sm:$0xff] }
  0x41   : > { %843 = vmatpush.msra.mxu0 %v424_v33  ;;  %v442_v18 = vld [vmem:[%s4435_s1 + $0x48] sm:$0xff]  ;;  %v1314_v19 = vld [vmem:[%s4438_s4 + $0x58] sm:$0xff]  ;;  %v1315_v20 = vld [vmem:[%s4438_s4 + $0x60] sm:$0xff] }
  0x42   : > { %v1313_v21 = vld [vmem:[%s4438_s4 + $0x50] sm:$0xff]  ;;  %v1311_v23 = vld [vmem:[%s4438_s4 + $0x40] sm:$0xff]  ;;  %v1312_v24 = vld [vmem:[%s4438_s4 + $0x48] sm:$0xff] }
  0x43   : > { %844 = vmatpush.msra.mxu0 %v423_v34  ;;  %v443_v22 = vld [vmem:[%s4435_s1 + $0x50] sm:$0xff]  ;;  %v1310_v25 = vld [vmem:[%s4438_s4 + $0x38] sm:$0xff]  ;;  %v1308_v27 = vld [vmem:[%s4438_s4 + $0x28] sm:$0xff] }
  0x44   : > { %v444_v26 = vld [vmem:[%s4435_s1 + $0x58] sm:$0xff]  ;;  %v1309_v28 = vld [vmem:[%s4438_s4 + $0x30] sm:$0xff]  ;;  %v1307_v29 = vld [vmem:[%s4438_s4 + $0x20] sm:$0xff] }
  0x45   : > { %845 = vmatpush.msra.mxu0 %v422_v35  ;;  %550 = vperm.xlu1 %2788, %v480_v36   ;;  %v445_v30 = vld [vmem:[%s4435_s1 + $0x60] sm:$0xff]  ;;  %v1305_v31 = vld [vmem:[%s4438_s4 + $0x10] sm:$0xff]  ;;  %v1306_v32 = vld [vmem:[%s4438_s4 + $0x18] sm:$0xff] }
  0x46   : > { %705 = vperm.xlu0 %2787, %v511_v37   ;;  %700 = vperm.xlu2 %2789, %v510_v38   ;;  %v1304_v33 = vld [vmem:[%s4438_s4 + $0x8] sm:$0xff]  ;;  %v1471_v35 = vld [vmem:[%s4440_s6 + $0x78] sm:$0xff]  ;;  %v1303_v36 = vld [vmem:[%s4438_s4] sm:$0xff] }
  0x47   : > { %846 = vmatpush.msra.mxu0 %v421_v39  ;;  %v446_v34 = vld [vmem:[%s4435_s1 + $0x68] sm:$0xff]  ;;  %v1470_v37 = vld [vmem:[%s4440_s6 + $0x70] sm:$0xff]  ;;  %v1468_v39 = vld [vmem:[%s4440_s6 + $0x60] sm:$0xff] }
  0x48   : > { %v447_v38 = vld [vmem:[%s4435_s1 + $0x70] sm:$0xff] }
  0x49   : > { %847 = vmatpush.msra.mxu0 %v420_v40  ;;  %v1469_v40 = vld [vmem:[%s4440_s6 + $0x68] sm:$0xff] }
  0x4b   : > { %848 = vmatpush.msra.mxu0 %v419_v41  ;;  %v1467_v41 = vld [vmem:[%s4440_s6 + $0x58] sm:$0xff] }
  0x4d   : > { %849 = vmatpush.msra.mxu0 %v418_v42  ;;  %670 = vperm.xlu1 %2788, %v504_v43   ;;  %v448_v42 = vld [vmem:[%s4435_s1 + $0x78] sm:$0xff]  ;;  %v1465_v43 = vld [vmem:[%s4440_s6 + $0x48] sm:$0xff] }
  0x4e   : > { %695 = vperm.xlu2 %2789, %v509_v44   ;;  %545 = vperm.xlu0 %2787, %v479_v45   ;;  %v1466_v44 = vld [vmem:[%s4440_s6 + $0x50] sm:$0xff]  ;;  %v1464_v45 = vld [vmem:[%s4440_s6 + $0x40] sm:$0xff] }
  0x4f   : > { %2623 = vmatmul.msk.f32.vlgmr.msra.gmra.mxu0 %vm713_vm0, %v433_v46 }
  0x55   : > { %665 = vperm.xlu1 %2788, %v503_v47   ;;  %v449_v47 = vld [vmem:[%s4435_s1 + $0x80] sm:$0xff] }
  0x56   : > { %690 = vperm.xlu2 %2789, %v508_v48   ;;  %540 = vperm.xlu0 %2787, %v478_v49   ;;  %v1462_v48 = vld [vmem:[%s4440_s6 + $0x30] sm:$0xff]  ;;  %v1463_v49 = vld [vmem:[%s4440_s6 + $0x38] sm:$0xff] }
  0x57   : > { %2624 = vmatmul.msk.f32.gmra.mxu0 %vm713_vm0, %v434_v50  ;;  %v1461_v50 = vld [vmem:[%s4440_s6 + $0x28] sm:$0xff] }
  0x5d   : > { %660 = vperm.xlu1 %2788, %v502_v51  }
  0x5e   : > { %685 = vperm.xlu2 %2789, %v507_v52   ;;  %535 = vperm.xlu0 %2787, %v477_v53   ;;  %v450_v52 = vld [vmem:[%s4435_s1 + $0x88] sm:$0xff]  ;;  %v1459_v53 = vld [vmem:[%s4440_s6 + $0x18] sm:$0xff] }
  0x5f   : > { %2625 = vmatmul.msk.f32.gmra.mxu0 %vm713_vm0, %v435_v54  ;;  %v1460_v54 = vld [vmem:[%s4440_s6 + $0x20] sm:$0xff] }
  0x65   : > { %655 = vperm.xlu1 %2788, %v501_v55   ;;  %v1458_v55 = vld [vmem:[%s4440_s6 + $0x10] sm:$0xff] }
  0x66   : > { %680 = vperm.xlu2 %2789, %v506_v56   ;;  %530 = vperm.xlu0 %2787, %v476_v57   ;;  %v451_v57 = vld [vmem:[%s4435_s1 + $0x90] sm:$0xff] }
  0x67   : > { %2626 = vmatmul.msk.f32.gmra.mxu0 %vm713_vm0, %v436_v58  ;;  %v1456_v58 = vld [vmem:[%s4440_s6] sm:$0xff] }
  0x6d   : > { %650 = vperm.xlu1 %2788, %v500_v59   ;;  %v1457_v59 = vld [vmem:[%s4440_s6 + $0x8] sm:$0xff] }
  0x6e   : > { %675 = vperm.xlu2 %2789, %v505_v60   ;;  %525 = vperm.xlu0 %2787, %v475_v61   ;;  %v1487_v60 = vld [vmem:[%s4440_s6 + $0xf8] sm:$0xff] }
  0x6f   : > { %2627 = vmatmul.msk.f32.gmra.mxu0 %vm713_vm0, %v437_v62  ;;  %v452_v62 = vld [vmem:[%s4435_s1 + $0x98] sm:$0xff] }
  0x75   : > { %645 = vperm.xlu1 %2788, %v499_v63   ;;  %v1485_v63 = vld [vmem:[%s4440_s6 + $0xe8] sm:$0xff] }
  0x76   : > { %520 = vperm.xlu0 %2787, %v474_v0   ;;  %515 = vperm.xlu2 %2789, %v473_v1   ;;  %v1486_v0 = vld [vmem:[%s4440_s6 + $0xf0] sm:$0xff]  ;;  %v1484_v1 = vld [vmem:[%s4440_s6 + $0xe0] sm:$0xff] }
  0x77   : > { %2628 = vmatmul.msk.f32.gmra.mxu0 %vm713_vm0, %v438_v2 }
  0x7d   : > { %635 = vperm.xlu1 %2788, %v497_v3   ;;  %v453_v3 = vld [vmem:[%s4435_s1 + $0xa0] sm:$0xff] }
  0x7e   : > { %640 = vperm.xlu0 %2787, %v498_v4   ;;  %630 = vperm.xlu2 %2789, %v496_v5   ;;  %v1503_v4 = vld [vmem:[%s4440_s6 + $0x178] sm:$0xff] }
  0x7f   : > { %2629 = vmatmul.msk.f32.gmra.mxu0 %vm713_vm0, %v439_v6  ;;  %v1483_v5 = vld [vmem:[%s4440_s6 + $0xd8] sm:$0xff]  ;;  %v1482_v6 = vld [vmem:[%s4440_s6 + $0xd0] sm:$0xff] }
  0x85   : > { %620 = vperm.xlu1 %2788, %v494_v7  }
  0x86   : > { %625 = vperm.xlu0 %2787, %v495_v8   ;;  %615 = vperm.xlu2 %2789, %v493_v9   ;;  %v454_v8 = vld [vmem:[%s4435_s1 + $0xa8] sm:$0xff] }
  0x87   : > { %2630 = vmatmul.msk.f32.gmra.mxu0 %vm713_vm0, %v440_v10  ;;  %v1481_v9 = vld [vmem:[%s4440_s6 + $0xc8] sm:$0xff]  ;;  %v1502_v10 = vld [vmem:[%s4440_s6 + $0x170] sm:$0xff] }
  0x8d   : > { %605 = vperm.xlu1 %2788, %v491_v11   ;;  %v1501_v11 = vld [vmem:[%s4440_s6 + $0x168] sm:$0xff] }
  0x8e   : > { %610 = vperm.xlu0 %2787, %v492_v12   ;;  %600 = vperm.xlu2 %2789, %v490_v13   ;;  %v455_v13 = vld [vmem:[%s4435_s1 + $0xb0] sm:$0xff] }
  0x8f   : > { %2631 = vmatmul.msk.f32.gmra.mxu0 %vm713_vm0, %v441_v14 }
  0x95   : > { %1390 = vperm.xlu1 %2788, %v1317_v15   ;;  %v1500_v15 = vld [vmem:[%s4440_s6 + $0x160] sm:$0xff] }
  0x96   : > { %595 = vperm.xlu0 %2787, %v489_v16   ;;  %1385 = vperm.xlu2 %2789, %v1316_v17   ;;  %v1480_v16 = vld [vmem:[%s4440_s6 + $0xc0] sm:$0xff]  ;;  %v1479_v17 = vld [vmem:[%s4440_s6 + $0xb8] sm:$0xff] }
  0x97   : > { %2632 = vmatmul.msk.f32.gmra.mxu0 %vm713_vm0, %v442_v18  ;;  %v3303_v18 = vpop.permute.xlu2 %570 }
  0x9d   : > { %1375 = vperm.xlu1 %2788, %v1314_v19  }
  0x9e   : > { %1380 = vperm.xlu0 %2787, %v1315_v20   ;;  %1370 = vperm.xlu2 %2789, %v1313_v21   ;;  %v456_v20 = vld [vmem:[%s4435_s1 + $0xb8] sm:$0xff]  ;;  %v1478_v21 = vld [vmem:[%s4440_s6 + $0xb0] sm:$0xff] }
  0x9f   : > { %2633 = vmatmul.msk.f32.gmra.mxu0 %vm713_vm0, %v443_v22  ;;  %v1499_v22 = vld [vmem:[%s4440_s6 + $0x158] sm:$0xff] }
  0xa0   : > { %v3292_v14 = vpop.permute.xlu0 %590 }
  0xa5   : > { %1360 = vperm.xlu1 %2788, %v1311_v23   ;;  %v1498_v23 = vld [vmem:[%s4440_s6 + $0x150] sm:$0xff] }
  0xa6   : > { %1365 = vperm.xlu0 %2787, %v1312_v24   ;;  %1355 = vperm.xlu2 %2789, %v1310_v25  }
  0xa7   : > { %2634 = vmatmul.msk.f32.gmra.mxu0 %vm713_vm0, %v444_v26  ;;  %v457_v26 = vld [vmem:[%s4435_s1 + $0xc0] sm:$0xff] }
  0xa8   : > { %v3320_v24 = vpop.permute.xlu0 %585 }
  0xad   : > { %1345 = vperm.xlu1 %2788, %v1308_v27   ;;  %v3327_v27 = vpop.permute.xlu2 %565 }
  0xae   : > { %1350 = vperm.xlu0 %2787, %v1309_v28   ;;  %1340 = vperm.xlu2 %2789, %v1307_v29   ;;  %v1497_v28 = vld [vmem:[%s4440_s6 + $0x148] sm:$0xff] }
  0xaf   : > { %2635 = vmatmul.msk.f32.gmra.mxu0 %vm713_vm0, %v445_v30  ;;  %v1477_v29 = vld [vmem:[%s4440_s6 + $0xa8] sm:$0xff]  ;;  %v1476_v30 = vld [vmem:[%s4440_s6 + $0xa0] sm:$0xff] }
  0xb5   : > { %1330 = vperm.xlu1 %2788, %v1305_v31  }
  0xb6   : > { %1335 = vperm.xlu0 %2787, %v1306_v32   ;;  %1325 = vperm.xlu2 %2789, %v1304_v33   ;;  %v458_v32 = vld [vmem:[%s4435_s1 + $0xc8] sm:$0xff]  ;;  %v3344_v33 = vpop.permute.xlu0 %560 }
  0xb7   : > { %2636 = vmatmul.msk.f32.gmra.mxu0 %vm713_vm0, %v446_v34  ;;  %v3347_v34 = vpop.permute.xlu2 %555 }
  0xbd   : > { %1581 = vperm.xlu1 %2788, %v1471_v35   ;;  %v1475_v35 = vld [vmem:[%s4440_s6 + $0x98] sm:$0xff] }
  0xbe   : > { %1320 = vperm.xlu0 %2787, %v1303_v36   ;;  %1576 = vperm.xlu2 %2789, %v1470_v37   ;;  %v1496_v36 = vld [vmem:[%s4440_s6 + $0x140] sm:$0xff]  ;;  %v1495_v37 = vld [vmem:[%s4440_s6 + $0x138] sm:$0xff] }
  0xbf   : > { %2637 = vmatmul.msk.f32.gmra.mxu0 %vm713_vm0, %v447_v38 }
  0xc5   : > { %1566 = vperm.xlu1 %2788, %v1468_v39   ;;  %v459_v39 = vld [vmem:[%s4435_s1 + $0xd0] sm:$0xff] }
  0xc6   : > { %1571 = vperm.xlu0 %2787, %v1469_v40   ;;  %1561 = vperm.xlu2 %2789, %v1467_v41   ;;  %v3364_v40 = vpop.permute.xlu0 %705  ;;  %v3366_v41 = vpop.permute.xlu2 %700 }
  0xc7   : > { %2638 = vmatmul.msk.f32.gmra.mxu0 %vm713_vm0, %v448_v42  ;;  %v1494_v42 = vld [vmem:[%s4440_s6 + $0x130] sm:$0xff] }
  0xcc   : > { %v3196_v46 = vpop.f32.mrf.mxu0 }
  0xcd   : > { %1551 = vperm.xlu1 %2788, %v1465_v43   ;;  %v1474_v43 = vld [vmem:[%s4440_s6 + $0x90] sm:$0xff] }
  0xce   : > { %1556 = vperm.xlu0 %2787, %v1466_v44   ;;  %1546 = vperm.xlu2 %2789, %v1464_v45   ;;  %v1473_v44 = vld [vmem:[%s4440_s6 + $0x88] sm:$0xff] }
  0xcf   : > { %2639 = vmatmul.msk.f32.gmra.mxu0 %vm713_vm0, %v449_v47  ;;  %v460_v47 = vld [vmem:[%s4435_s1 + $0xd8] sm:$0xff] }
  0xd4   : > { %v3211_v51 = vpop.f32.mrf.mxu0 }
  0xd5   : > { %1536 = vperm.xlu1 %2788, %v1462_v48   ;;  %v3381_v48 = vpop.permute.xlu0 %545 }
  0xd6   : > { %1541 = vperm.xlu0 %2787, %v1463_v49   ;;  %1531 = vperm.xlu2 %2789, %v1461_v50   ;;  %v1472_v49 = vld [vmem:[%s4440_s6 + $0x80] sm:$0xff]  ;;  %v1493_v50 = vld [vmem:[%s4440_s6 + $0x128] sm:$0xff] }
  0xd7   : > { %2640 = vmatmul.msk.f32.gmra.mxu0 %vm713_vm0, %v450_v52  ;;  %v1492_v52 = vld [vmem:[%s4440_s6 + $0x120] sm:$0xff] }
  0xdc   : > { %v3226_v56 = vpop.f32.mrf.mxu0 }
  0xdd   : > { %1521 = vperm.xlu1 %2788, %v1459_v53   ;;  %v3392_v53 = vpop.permute.xlu2 %695 }
  0xde   : > { %1526 = vperm.xlu0 %2787, %v1460_v54   ;;  %1516 = vperm.xlu2 %2789, %v1458_v55   ;;  %v461_v55 = vld [vmem:[%s4435_s1 + $0xe0] sm:$0xff] }
  0xdf   : > { %2641 = vmatmul.msk.f32.gmra.mxu0 %vm713_vm0, %v451_v57  ;;  %v1490_v57 = vld [vmem:[%s4440_s6 + $0x110] sm:$0xff] }
  0xe4   : > { %v3241_v61 = vpop.f32.mrf.mxu0 }
  0xe5   : > { %1506 = vperm.xlu1 %2788, %v1456_v58   ;;  %v581_v58 = vpop.permute.xlu1 %580 }
  0xe6   : > { %1511 = vperm.xlu0 %2787, %v1457_v59   ;;  %1661 = vperm.xlu2 %2789, %v1487_v60   ;;  %v1491_v59 = vld [vmem:[%s4440_s6 + $0x118] sm:$0xff]  ;;  %v1489_v60 = vld [vmem:[%s4440_s6 + $0x108] sm:$0xff] }
  0xe7   : > { %2642 = vmatmul.msk.f32.gmra.mxu0 %vm713_vm0, %v452_v62  ;;  %v3407_v62 = vpop.permute.xlu0 %540 }
  0xec   : > { %v3256_v2 = vpop.f32.mrf.mxu0 }
  0xed   : > { %1651 = vperm.xlu1 %2788, %v1485_v63  }
  0xee   : > { %1656 = vperm.xlu0 %2787, %v1486_v0   ;;  %1646 = vperm.xlu2 %2789, %v1484_v1   ;;  %v462_v0 = vld [vmem:[%s4435_s1 + $0xe8] sm:$0xff]  ;;  %v3412_v1 = vpop.permute.xlu2 %690 }
  0xef   : > { %2643 = vmatmul.msk.f32.gmra.mxu0 %vm713_vm0, %v453_v3  ;;  %v2343_v3 = vld [vmem:[%s4442_s8] sm:$0xff] }
  0xf4   : > { %v3271_v7 = vpop.f32.mrf.mxu0 }
  0xf5   : > { %1741 = vperm.xlu1 %2788, %v1503_v4   ;;  %v1488_v4 = vld [vmem:[%s4440_s6 + $0x100] sm:$0xff] }
  0xf6   : > { %1641 = vperm.xlu0 %2787, %v1483_v5   ;;  %1636 = vperm.xlu2 %2789, %v1482_v6   ;;  %v2344_v5 = vld [vmem:[%s4442_s8 + $0x8] sm:$0xff] }
  0xf7   : > { %2644 = vmatmul.msk.f32.gmra.mxu0 %vm713_vm0, %v454_v8  ;;  %v463_v8 = vld [vmem:[%s4435_s1 + $0xf0] sm:$0xff] }
  0xfc   : > { %v3286_v12 = vpop.f32.mrf.mxu0 }
  0xfd   : > { %1631 = vperm.xlu1 %2788, %v1481_v9   ;;  %v576_v9 = vpop.permute.xlu1 %575 }
  0xfe   : > { %1736 = vperm.xlu0 %2787, %v1502_v10   ;;  %1731 = vperm.xlu2 %2789, %v1501_v11   ;;  %v3427_v10 = vpop.permute.xlu0 %535  ;;  %v3430_v11 = vpop.permute.xlu2 %685 }
  0xff   : > { %2645 = vmatmul.msk.f32.gmra.mxu0 %vm713_vm0, %v455_v13  ;;  %v2346_v13 = vld [vmem:[%s4442_s8 + $0x18] sm:$0xff] }
 0x104   : > { %v3305_v19 = vpop.f32.mrf.mxu0 }
 0x105   : > { %1726 = vperm.xlu1 %2788, %v1500_v15   ;;  %v2345_v15 = vld [vmem:[%s4442_s8 + $0x10] sm:$0xff] }
 0x106   : > { %1626 = vperm.xlu0 %2787, %v1480_v16   ;;  %1621 = vperm.xlu2 %2789, %v1479_v17   ;;  %v2347_v16 = vld [vmem:[%s4442_s8 + $0x20] sm:$0xff] }
 0x107   : > { %2646 = vmatmul.msk.f32.gmra.mxu0 %vm713_vm0, %v456_v20  ;;  %v464_v20 = vld [vmem:[%s4435_s1 + $0xf8] sm:$0xff] }
 0x10c   : > { %v3322_v25 = vpop.f32.mrf.mxu0 }
 0x10d   : > { %1616 = vperm.xlu1 %2788, %v1478_v21  }
 0x10e   : > { %1721 = vperm.xlu0 %2787, %v1499_v22   ;;  %1716 = vperm.xlu2 %2789, %v1498_v23  }
 0x10f   : > { %2647 = vmatmul.msk.f32.gmra.mxu0 %vm713_vm0, %v457_v26 }
 0x114   : > { %v3339_v31 = vpop.f32.mrf.mxu0 }
 0x115   : > { %1711 = vperm.xlu1 %2788, %v1497_v28   ;;  %v3447_v28 = vpop.permute.xlu1 %710 }
 0x116   : > { %1611 = vperm.xlu0 %2787, %v1477_v29   ;;  %1606 = vperm.xlu2 %2789, %v1476_v30   ;;  %v531_v29 = vpop.permute.xlu0 %530 }
 0x117   : > { %2648 = vmatmul.msk.f32.gmra.mxu0 %vm713_vm0, %v458_v32 }
 0x11c   : > { %v3358_v38 = vpop.f32.mrf.mxu0 }
 0x11d   : > { %1601 = vperm.xlu1 %2788, %v1475_v35   ;;  %v3449_v35 = vpop.permute.xlu2 %680 }
 0x11e   : > { %1706 = vperm.xlu0 %2787, %v1496_v36   ;;  %1701 = vperm.xlu2 %2789, %v1495_v37   ;;  %v2348_v37 = vld [vmem:[%s4442_s8 + $0x28] sm:$0xff] }
 0x11f   : > { %2649 = vmatmul.msk.f32.gmra.mxu0 %vm713_vm0, %v459_v39  ;;  %v2350_v39 = vld [vmem:[%s4442_s8 + $0x38] sm:$0xff] }
 0x124   : > { %v884_v45 = vpop.f32.mrf.mxu0 }
 0x125   : > { %1696 = vperm.xlu1 %2788, %v1494_v42  }
 0x126   : > { %1596 = vperm.xlu0 %2787, %v1474_v43   ;;  %1591 = vperm.xlu2 %2789, %v1473_v44   ;;  %v465_v43 = vld [vmem:[%s4435_s1 + $0x100] sm:$0xff]  ;;  %v882_v44 = vadd.f32 %v3358_v38, %v3327_v27  ;;  %v2352_v27 = vld [vmem:[%s4442_s8 + $0x48] sm:$0xff] }
 0x127   : > { %2650 = vmatmul.msk.f32.gmra.mxu0 %vm713_vm0, %v460_v47 }
 0x12c   : > { %v887_v54 = vpop.f32.mrf.mxu0 }
 0x12d   : > { %1586 = vperm.xlu1 %2788, %v1472_v49   ;;  %v888_v30 = vadd.f32 %v887_v54, %v576_v9  ;;  %v876_v49 = vadd.f32 %v3322_v25, %v3347_v34  ;;  %v526_v54 = vpop.permute.xlu0 %525  ;;  %v2353_v25 = vld [vmem:[%s4442_s8 + $0x50] sm:$0xff] }
 0x12e   : > { %1691 = vperm.xlu0 %2787, %v1493_v50   ;;  %1686 = vperm.xlu2 %2789, %v1492_v52   ;;  %v981_v50 = vmax.f32 %v882_v44, 0.0  ;;  %v551_v52 = vpop.permute.xlu1 %550 }
 0x12f   : > { %2651 = vmatmul.msk.f32.gmra.mxu0 %vm713_vm0, %v461_v55  ;;  %v873_v38 = vadd.f32 %v3305_v19, %v551_v52  ;;  %v870_v19 = vadd.f32 %v3286_v12, %v3381_v48  ;;  %v2355_v12 = vld [vmem:[%s4442_s8 + $0x60] sm:$0xff]  ;;  %v861_v48 = vadd.f32 %v3241_v61, %v531_v29  ;;  %v471_v29 = vld [vmem:[%s4435_s1 + $0x130] sm:$0xff] }
 0x134   : > { %v890_v63 = vpop.f32.mrf.mxu0 }
 0x135   : > { %1676 = vperm.xlu1 %2788, %v1490_v57   ;;  %v891_v23 = vadd.f32 %v890_v63, %v581_v58  ;;  %v466_v57 = vld [vmem:[%s4435_s1 + $0x108] sm:$0xff]  ;;  %v979_v58 = vmax.f32 %v876_v49, 0.0  ;;  %v864_v63 = vadd.f32 %v3256_v2, %v3427_v10  ;;  %v974_v10 = vmax.f32 %v861_v48, 0.0 }
 0x136   : > { %1681 = vperm.xlu0 %2787, %v1491_v59   ;;  %1671 = vperm.xlu2 %2789, %v1489_v60   ;;  %v867_v59 = vadd.f32 %v3271_v7, %v3407_v62  ;;  %v978_v60 = vmax.f32 %v873_v38, 0.0  ;;  %v2354_v7 = vld [vmem:[%s4442_s8 + $0x58] sm:$0xff]  ;;  %v2356_v62 = vld [vmem:[%s4442_s8 + $0x68] sm:$0xff] }
 0x137   : > { %2652 = vmatmul.msk.f32.gmra.mxu0 %vm713_vm0, %v462_v0  ;;  %v984_v36 = vmax.f32 %v891_v23, 0.0  ;;  %v977_v0 = vmax.f32 %v870_v19, 0.0  ;;  %v975_v61 = vmax.f32 %v864_v63, 0.0  ;;  %v470_v23 = vld [vmem:[%s4435_s1 + $0x128] sm:$0xff] }
 0x13c   : > { %v893_v6 = vpop.f32.mrf.mxu0 }
 0x13d   : > { %2360 = vperm.xlu1 %2788, %v2343_v3   ;;  %v894_v21 = vadd.f32 %v893_v6, %v3320_v24  ;;  %v2349_v24 = vld [vmem:[%s4442_s8 + $0x30] sm:$0xff]  ;;  %v976_v3 = vmax.f32 %v867_v59, 0.0  ;;  %v858_v6 = vadd.f32 %v3226_v56, %v526_v54 }
 0x13e   : > { %1666 = vperm.xlu0 %2787, %v1488_v4   ;;  %2365 = vperm.xlu2 %2789, %v2344_v5   ;;  %v521_v4 = vpop.permute.xlu0 %520  ;;  %v467_v5 = vld [vmem:[%s4435_s1 + $0x110] sm:$0xff] }
 0x13f   : > { %2653 = vmatmul.msk.f32.gmra.mxu0 %vm713_vm0, %v463_v8  ;;  %v985_v32 = vmax.f32 %v894_v21, 0.0  ;;  %v855_v9 = vadd.f32 %v3211_v51, %v521_v4  ;;  %v2357_v56 = vld [vmem:[%s4442_s8 + $0x70] sm:$0xff]  ;;  %v468_v51 = vld [vmem:[%s4435_s1 + $0x118] sm:$0xff]  ;;  %v469_v21 = vld [vmem:[%s4435_s1 + $0x120] sm:$0xff] }
 0x144   : > { %v896_v17 = vpop.f32.mrf.mxu0 }
 0x145   : > { %2375 = vperm.xlu1 %2788, %v2346_v13   ;;  %v897_v22 = vadd.f32 %v896_v17, %v3292_v14  ;;  %v885_v14 = vadd.f32 %v884_v45, %v3303_v18  ;;  %v983_v18 = vmax.f32 %v888_v30, 0.0  ;;  %v879_v45 = vadd.f32 %v3339_v31, %v3344_v33  ;;  %v2351_v31 = vld [vmem:[%s4442_s8 + $0x40] sm:$0xff]  ;;  %v3483_v33 = vpop.permute.xlu2 %675 }
 0x146   : > { %2370 = vperm.xlu0 %2787, %v2345_v15   ;;  %2380 = vperm.xlu2 %2789, %v2347_v16   ;;  %v973_v15 = vmax.f32 %v858_v6, 0.0  ;;  %v972_v16 = vmax.f32 %v855_v9, 0.0  ;;  %v641_v54 = vpop.permute.xlu0 %640 }
 0x147   : > { %2654 = vmatmul.msk.f32.gmra.mxu0 %vm713_vm0, %v464_v20  ;;  %v986_v26 = vmax.f32 %v897_v22, 0.0  ;;  %v982_v47 = vmax.f32 %v885_v14, 0.0  ;;  %v980_v55 = vmax.f32 %v879_v45, 0.0 }
 0x149   : > { %1102 = vmatpush.msra.mxu1 %v986_v26 }
 0x14b   : > { %1103 = vmatpush.msra.mxu1 %v985_v32  ;;  %v472_v32 = vld [vmem:[%s4435_s1 + $0x138] sm:$0xff] }
 0x14c   : > { %v3461_v42 = vpop.f32.mrf.mxu0 }
 0x14d   : > { %1104 = vmatpush.msra.mxu1 %v984_v36  ;;  %2390 = vperm.xlu1 %2788, %v2349_v24   ;;  %v516_v8 = vpop.permute.xlu2 %515  ;;  %v671_v24 = vpop.permute.xlu1 %670 }
 0x14e   : > { %2385 = vperm.xlu0 %2787, %v2348_v37   ;;  %2395 = vperm.xlu2 %2789, %v2350_v39   ;;  %v852_v13 = vadd.f32 %v3196_v46, %v516_v8 }
 0x14f   : > { %2655 = vmatmul.msk.f32.gmra.mxu0 %vm713_vm0, %v465_v43  ;;  %1105 = vmatpush.msra.mxu1 %v983_v18 }
 0x150   : > { %v971_v20 = vmax.f32 %v852_v13, 0.0 }
 0x151   : > { %1106 = vmatpush.msra.mxu1 %v982_v47 }
 0x153   : > { %1107 = vmatpush.msra.mxu1 %v981_v50 }
 0x154   : > { %v3485_v34 = vpop.f32.mrf.mxu0 }
 0x155   : > { %1108 = vmatpush.msra.mxu1 %v980_v55  ;;  %2405 = vperm.xlu1 %2788, %v2352_v27   ;;  %v666_v37 = vpop.permute.xlu1 %665  ;;  %v631_v59 = vpop.permute.xlu2 %630 }
 0x156   : > { %2400 = vperm.xlu0 %2787, %v2351_v31   ;;  %2410 = vperm.xlu2 %2789, %v2353_v25  }
 0x157   : > { %2656 = vmatmul.msk.f32.gmra.mxu0 %vm713_vm0, %v466_v57  ;;  %1109 = vmatpush.msra.mxu1 %v979_v58 }
 0x159   : > { %1110 = vmatpush.msra.mxu1 %v978_v60 }
 0x15b   : > { %1111 = vmatpush.msra.mxu1 %v977_v0  ;;  %v626_v0 = vpop.permute.xlu0 %625 }
 0x15c   : > { %v3507_v2 = vpop.f32.mrf.mxu0 }
 0x15d   : > { %1112 = vmatpush.msra.mxu1 %v976_v3  ;;  %2420 = vperm.xlu1 %2788, %v2355_v12   ;;  %v661_v43 = vpop.permute.xlu1 %660  ;;  %v616_v9 = vpop.permute.xlu2 %615 }
 0x15e   : > { %2415 = vperm.xlu0 %2787, %v2354_v7   ;;  %2425 = vperm.xlu2 %2789, %v2356_v62  }
 0x15f   : > { %2657 = vmatmul.msk.f32.gmra.mxu0 %vm713_vm0, %v467_v5  ;;  %1113 = vmatpush.msra.mxu1 %v975_v61 }
 0x161   : > { %1114 = vmatpush.msra.mxu1 %v974_v10 }
 0x163   : > { %1115 = vmatpush.msra.mxu1 %v973_v15 }
 0x164   : > { %v3519_v17 = vpop.f32.mrf.mxu0 }
 0x165   : > { %1116 = vmatpush.msra.mxu1 %v972_v16  ;;  %v656_v18 = vpop.permute.xlu1 %655  ;;  %v611_v16 = vpop.permute.xlu0 %610 }
 0x166   : > { %2430 = vperm.xlu0 %2787, %v2357_v56  }
 0x167   : > { %2658 = vmatmul.msk.f32.gmra.mxu0 %vm713_vm0, %v468_v51  ;;  %1117 = vmatpush.msra.mxu1 %v971_v20 }
 0x16c   : > { %v3525_v46 = vpop.f32.mrf.mxu0 }
 0x16d   : > { %v651_v47 = vpop.permute.xlu1 %650  ;;  %v912_v20 = vadd.f32 %v3525_v46, %v616_v9  ;;  %v596_v46 = vpop.permute.xlu0 %595  ;;  %v1036_v9 = vld [vmem:[%s4437_s3 + $0xc8] sm:$0xff] }
 0x16f   : > { %2659 = vmatmul.msk.f32.gmra.mxu0 %vm713_vm0, %v469_v21 }
 0x174   : > { %v3531_v22 = vpop.f32.mrf.mxu0 }
 0x175   : > { %v646_v52 = vpop.permute.xlu1 %645 }
 0x177   : > { %2660 = vmatmul.msk.f32.gmra.mxu0 %vm713_vm0, %v470_v23  ;;  %v909_v23 = vadd.f32 %v3519_v17, %v611_v16  ;;  %v1028_v16 = vld [vmem:[%s4437_s3 + $0x88] sm:$0xff] }
 0x17c   : > { %v917_v26 = vpop.f32.mrf.mxu0 }
 0x17d   : > { %v636_v57 = vpop.permute.xlu1 %635  ;;  %v918_v13 = vadd.f32 %v917_v26, %v626_v0 }
 0x17f   : > { %2661 = vmatmul.msk.f32.gmra.mxu0 %vm713_vm0, %v471_v29  ;;  %v993_v21 = vmax.f32 %v918_v13, 0.0  ;;  %v1035_v13 = vld [vmem:[%s4437_s3 + $0xc0] sm:$0xff] }
 0x184   : > { %v920_v30 = vpop.f32.mrf.mxu0 }
 0x185   : > { %v621_v6 = vpop.permute.xlu1 %620  ;;  %v921_v61 = vadd.f32 %v920_v30, %v631_v59 }
 0x186   : > { %v915_v56 = vadd.f32 %v3531_v22, %v621_v6  ;;  %v601_v22 = vpop.permute.xlu2 %600  ;;  %v1033_v6 = vld [vmem:[%s4437_s3 + $0xb0] sm:$0xff] }
 0x187   : > { %2662 = vmatmul.msk.f32.gmra.mxu0 %vm713_vm0, %v472_v32  ;;  %v994_v51 = vmax.f32 %v921_v61, 0.0  ;;  %v1022_v61 = vld [vmem:[%s4437_s3 + $0x58] sm:$0xff] }
 0x188   : > { %v992_v29 = vmax.f32 %v915_v56, 0.0  ;;  %v1038_v56 = vld [vmem:[%s4437_s3 + $0xd8] sm:$0xff] }
 0x18c   : > { %v923_v14 = vpop.f32.mrf.mxu0 }
 0x18d   : > { %v924_v4 = vadd.f32 %v923_v14, %v636_v57  ;;  %v606_v26 = vpop.permute.xlu1 %605  ;;  %v903_v14 = vadd.f32 %v3485_v34, %v601_v22  ;;  %v1051_v22 = vld [vmem:[%s4437_s3 + $0x140] sm:$0xff] }
 0x18e   : > { %v906_v32 = vadd.f32 %v3507_v2, %v606_v26  ;;  %v1044_v26 = vld [vmem:[%s4437_s3 + $0x108] sm:$0xff] }
 0x18f   : > { %v995_v15 = vmax.f32 %v924_v4, 0.0  ;;  %v1019_v4 = vld [vmem:[%s4437_s3 + $0x40] sm:$0xff] }
 0x190   : > { %v989_v17 = vmax.f32 %v906_v32, 0.0  ;;  %v1037_v32 = vld [vmem:[%s4437_s3 + $0xd0] sm:$0xff] }
 0x194   : > { %v926_v36 = vpop.f32.mrf.mxu0 }
 0x195   : > { %v927_v7 = vadd.f32 %v926_v36, %v641_v54  ;;  %v990_v36 = vmax.f32 %v909_v23, 0.0  ;;  %v1045_v23 = vld [vmem:[%s4437_s3 + $0x110] sm:$0xff] }
 0x197   : > { %v996_v8 = vmax.f32 %v927_v7, 0.0  ;;  %v1026_v7 = vld [vmem:[%s4437_s3 + $0x78] sm:$0xff] }
 0x19c   : > { %v929_v39 = vpop.f32.mrf.mxu0 }
 0x19d   : > { %v930_v48 = vadd.f32 %v929_v39, %v646_v52  ;;  %v988_v39 = vmax.f32 %v903_v14, 0.0  ;;  %v1040_v14 = vld [vmem:[%s4437_s3 + $0xe8] sm:$0xff] }
 0x19f   : > { %v997_v5 = vmax.f32 %v930_v48, 0.0  ;;  %v1013_v48 = vld [vmem:[%s4437_s3 + $0x10] sm:$0xff] }
 0x1a4   : > { %v932_v44 = vpop.f32.mrf.mxu0 }
 0x1a5   : > { %v933_v60 = vadd.f32 %v932_v44, %v651_v47  ;;  %v1014_v47 = vld [vmem:[%s4437_s3 + $0x18] sm:$0xff] }
 0x1a7   : > { %v998_v62 = vmax.f32 %v933_v60, 0.0 }
 0x1ac   : > { %v935_v45 = vpop.f32.mrf.mxu0 }
 0x1ad   : > { %v936_v19 = vadd.f32 %v935_v45, %v656_v18  ;;  %v1011_v18 = vld [vmem:[%s4437_s3] sm:$0xff] }
 0x1ae   : > { %1118 = vmatmul.f32.vlgmr.msra.gmra.mxu1 %v1011_v18  ;;  %v1055_v18 = vld [vmem:[%s4437_s3 + $0x160] sm:$0xff] }
 0x1af   : > { %v999_v3 = vmax.f32 %v936_v19, 0.0 }
 0x1b4   : > { %v938_v49 = vpop.f32.mrf.mxu0 }
 0x1b5   : > { %v939_v31 = vadd.f32 %v938_v49, %v661_v43  ;;  %v1015_v49 = vld [vmem:[%s4437_s3 + $0x20] sm:$0xff] }
 0x1b6   : > { %1121 = vmatmul.f32.gmra.mxu1 %v1014_v47 }
 0x1b7   : > { %v1000_v63 = vmax.f32 %v939_v31, 0.0  ;;  %v1018_v31 = vld [vmem:[%s4437_s3 + $0x38] sm:$0xff] }
 0x1bc   : > { %v941_v50 = vpop.f32.mrf.mxu0 }
 0x1bd   : > { %v942_v38 = vadd.f32 %v941_v50, %v666_v37  ;;  %v900_v37 = vadd.f32 %v3461_v42, %v596_v46  ;;  %v1012_v42 = vld [vmem:[%s4437_s3 + $0x8] sm:$0xff]  ;;  %v1054_v46 = vld [vmem:[%s4437_s3 + $0x158] sm:$0xff] }
 0x1bf   : > { %v1001_v58 = vmax.f32 %v942_v38, 0.0  ;;  %v987_v2 = vmax.f32 %v900_v37, 0.0  ;;  %v1043_v37 = vld [vmem:[%s4437_s3 + $0x100] sm:$0xff] }
 0x1c4   : > { %v944_v27 = vpop.f32.mrf.mxu0 }
 0x1c5   : > { %v945_v55 = vadd.f32 %v944_v27, %v671_v24  ;;  %v991_v24 = vmax.f32 %v912_v20, 0.0  ;;  %v1031_v20 = vld [vmem:[%s4437_s3 + $0xa0] sm:$0xff] }
 0x1c7   : > { %v1002_v25 = vmax.f32 %v945_v55, 0.0  ;;  %v1017_v55 = vld [vmem:[%s4437_s3 + $0x30] sm:$0xff] }
 0x1c8   : > { %1124 = vmatmul.f32.gmra.mxu1 %v1017_v55 }
 0x1c9   : > { %1164 = vmatpush.msrb.mxu0 %v1002_v25  ;;  %2729 = vmatpush.msra.mxu2 %v1002_v25  ;;  %v1021_v25 = vld [vmem:[%s4437_s3 + $0x50] sm:$0xff] }
 0x1cb   : > { %1165 = vmatpush.msrb.mxu0 %v1001_v58  ;;  %2730 = vmatpush.msra.mxu2 %v1001_v58 }
 0x1cc   : > { %v3545_v12 = vpop.f32.mrf.mxu0 }
 0x1cd   : > { %1166 = vmatpush.msrb.mxu0 %v1000_v63  ;;  %2731 = vmatpush.msra.mxu2 %v1000_v63  ;;  %v1024_v63 = vld [vmem:[%s4437_s3 + $0x68] sm:$0xff] }
 0x1cf   : > { %1167 = vmatpush.msrb.mxu0 %v999_v3  ;;  %2732 = vmatpush.msra.mxu2 %v999_v3  ;;  %v1016_v3 = vld [vmem:[%s4437_s3 + $0x28] sm:$0xff] }
 0x1d1   : > { %1168 = vmatpush.msrb.mxu0 %v998_v62  ;;  %2733 = vmatpush.msra.mxu2 %v998_v62  ;;  %v1030_v62 = vld [vmem:[%s4437_s3 + $0x98] sm:$0xff] }
 0x1d3   : > { %1169 = vmatpush.msrb.mxu0 %v997_v5  ;;  %2734 = vmatpush.msra.mxu2 %v997_v5  ;;  %v1029_v5 = vld [vmem:[%s4437_s3 + $0x90] sm:$0xff] }
 0x1d4   : > { %v3547_v10 = vpop.f32.mrf.mxu0 }
 0x1d5   : > { %1170 = vmatpush.msrb.mxu0 %v996_v8  ;;  %2735 = vmatpush.msra.mxu2 %v996_v8  ;;  %v951_v59 = vadd.f32 %v3547_v10, %v3449_v35  ;;  %v1032_v8 = vld [vmem:[%s4437_s3 + $0xa8] sm:$0xff]  ;;  %v1025_v10 = vld [vmem:[%s4437_s3 + $0x70] sm:$0xff] }
 0x1d7   : > { %1171 = vmatpush.msrb.mxu0 %v995_v15  ;;  %2736 = vmatpush.msra.mxu2 %v995_v15  ;;  %v1039_v15 = vld [vmem:[%s4437_s3 + $0xe0] sm:$0xff] }
 0x1d9   : > { %1172 = vmatpush.msrb.mxu0 %v994_v51  ;;  %2737 = vmatpush.msra.mxu2 %v994_v51  ;;  %v1042_v51 = vld [vmem:[%s4437_s3 + $0xf8] sm:$0xff] }
 0x1db   : > { %1173 = vmatpush.msrb.mxu0 %v993_v21  ;;  %2738 = vmatpush.msra.mxu2 %v993_v21  ;;  %v1041_v21 = vld [vmem:[%s4437_s3 + $0xf0] sm:$0xff] }
 0x1dc   : > { %v953_v30 = vpop.f32.mrf.mxu0 }
 0x1dd   : > { %1174 = vmatpush.msrb.mxu0 %v992_v29  ;;  %2739 = vmatpush.msra.mxu2 %v992_v29  ;;  %v954_v19 = vadd.f32 %v953_v30, %v3430_v11  ;;  %v1004_v11 = vmax.f32 %v951_v59, 0.0  ;;  %v1034_v29 = vld [vmem:[%s4437_s3 + $0xb8] sm:$0xff]  ;;  %v1048_v30 = vld [vmem:[%s4437_s3 + $0x128] sm:$0xff] }
 0x1df   : > { %1175 = vmatpush.msrb.mxu0 %v991_v24  ;;  %2740 = vmatpush.msra.mxu2 %v991_v24  ;;  %v1005_v0 = vmax.f32 %v954_v19, 0.0  ;;  %v1047_v24 = vld [vmem:[%s4437_s3 + $0x120] sm:$0xff] }
 0x1e1   : > { %1176 = vmatpush.msrb.mxu0 %v990_v36  ;;  %2741 = vmatpush.msra.mxu2 %v990_v36  ;;  %v1050_v36 = vld [vmem:[%s4437_s3 + $0x138] sm:$0xff] }
 0x1e3   : > { %1177 = vmatpush.msrb.mxu0 %v989_v17  ;;  %2742 = vmatpush.msra.mxu2 %v989_v17  ;;  %v1053_v17 = vld [vmem:[%s4437_s3 + $0x150] sm:$0xff] }
 0x1e4   : > { %v956_v43 = vpop.f32.mrf.mxu0 }
 0x1e5   : > { %1178 = vmatpush.msrb.mxu0 %v988_v39  ;;  %2743 = vmatpush.msra.mxu2 %v988_v39  ;;  %v1046_v39 = vld [vmem:[%s4437_s3 + $0x118] sm:$0xff] }
 0x1e7   : > { %1179 = vmatpush.msrb.mxu0 %v987_v2  ;;  %2744 = vmatpush.msra.mxu2 %v987_v2 }
 0x1e8   : > { %1180 = vmatmul.f32.vlgmr.msrb.gmra.mxu0 %v1012_v42  ;;  %1189 = vmatmul.f32.vlgmr.msra.gmra.mxu2 %v1021_v25 }
 0x1ec   : > { %v959_v44 = vpop.f32.mrf.mxu0 }
 0x1ed   : > { %v960_v57 = vadd.f32 %v959_v44, %v3392_v53  ;;  %v1020_v53 = vld [vmem:[%s4437_s3 + $0x48] sm:$0xff] }
 0x1ee   : > { %1127 = vmatmul.f32.gmra.mxu1 %v1020_v53  ;;  %v1052_v44 = vld [vmem:[%s4437_s3 + $0x148] sm:$0xff] }
 0x1ef   : > { %v1007_v58 = vmax.f32 %v960_v57, 0.0 }
 0x1f0   : > { %1183 = vmatmul.f32.gmra.mxu0 %v1015_v49  ;;  %1192 = vmatmul.f32.gmra.mxu2 %v1024_v63 }
 0x1f4   : > { %v962_v34 = vpop.f32.mrf.mxu0 }
 0x1f5   : > { %v963_v27 = vadd.f32 %v962_v34, %v3366_v41  ;;  %v957_v41 = vadd.f32 %v956_v43, %v3412_v1  ;;  %v948_v1 = vadd.f32 %v3545_v12, %v3483_v33  ;;  %v1023_v33 = vld [vmem:[%s4437_s3 + $0x60] sm:$0xff]  ;;  %v1049_v43 = vld [vmem:[%s4437_s3 + $0x130] sm:$0xff] }
 0x1f6   : > { %v1027_v12 = vld [vmem:[%s4437_s3 + $0x80] sm:$0xff]  ;;  %1130 = vmatmul.f32.gmra.mxu1 %v1023_v33 }
 0x1f7   : > { %v1006_v60 = vmax.f32 %v957_v41, 0.0  ;;  %v1003_v35 = vmax.f32 %v948_v1, 0.0 }
 0x1f8   : > { %1186 = vmatmul.f32.gmra.mxu0 %v1018_v31  ;;  %1195 = vmatmul.f32.gmra.mxu2 %v1027_v12 }
 0x1fc   : > { %v965_v45 = vpop.f32.mrf.mxu0 }
 0x1fd   : > { %v966_v52 = vadd.f32 %v965_v45, %v3364_v40 }
 0x1fe   : > { %1133 = vmatmul.f32.gmra.mxu1 %v1026_v7 }
 0x1ff   : > { %v1009_v40 = vmax.f32 %v966_v52, 0.0 }
 0x200   : > { %1198 = vmatmul.f32.gmra.mxu2 %v1030_v62 }
 0x204   : > { %v968_v50 = vpop.f32.mrf.mxu0 }
 0x205   : > { %v969_v54 = vadd.f32 %v968_v50, %v3447_v28  ;;  %v1008_v28 = vmax.f32 %v963_v27, 0.0 }
 0x206   : > { %1136 = vmatmul.f32.gmra.mxu1 %v1029_v5 }
 0x207   : > { %v1010_v38 = vmax.f32 %v969_v54, 0.0 }
 0x208   : > { %1201 = vmatmul.f32.gmra.mxu2 %v1033_v6 }
 0x209   : > { %1234 = vmatpush.msra.mxu3 %v1010_v38 }
 0x20b   : > { %1235 = vmatpush.msra.mxu3 %v1009_v40 }
 0x20d   : > { %1236 = vmatpush.msra.mxu3 %v1008_v28 }
 0x20e   : > { %1139 = vmatmul.f32.gmra.mxu1 %v1032_v8  ;;  %v1391_v8 = vpop.permute.xlu1 %1390 }
 0x20f   : > { %1237 = vmatpush.msra.mxu3 %v1007_v58 }
 0x210   : > { %1204 = vmatmul.f32.gmra.mxu2 %v1036_v9  ;;  %v1386_v9 = vpop.permute.xlu2 %1385 }
 0x211   : > { %1238 = vmatpush.msra.mxu3 %v1006_v60 }
 0x213   : > { %1239 = vmatpush.msra.mxu3 %v1005_v0 }
 0x215   : > { %1240 = vmatpush.msra.mxu3 %v1004_v11 }
 0x216   : > { %1142 = vmatmul.f32.gmra.mxu1 %v1035_v13 }
 0x217   : > { %1241 = vmatpush.msra.mxu3 %v1003_v35 }
 0x218   : > { %2663 = vmatmul.msk.f32.vlgmr.msra.gmra.mxu3 %vm1056_vm1, %v1013_v48  ;;  %1207 = vmatmul.f32.gmra.mxu2 %v1039_v15 }
 0x21e   : > { %1145 = vmatmul.f32.gmra.mxu1 %v1038_v56 }
 0x220   : > { %2664 = vmatmul.msk.f32.gmra.mxu3 %vm1056_vm1, %v1016_v3  ;;  %1210 = vmatmul.f32.gmra.mxu2 %v1042_v51 }
 0x226   : > { %1148 = vmatmul.f32.gmra.mxu1 %v1041_v21 }
 0x228   : > { %2665 = vmatmul.msk.f32.gmra.mxu3 %vm1056_vm1, %v1019_v4  ;;  %1213 = vmatmul.f32.gmra.mxu2 %v1045_v23  ;;  %v1376_v23 = vpop.permute.xlu1 %1375 }
 0x22b   : > { %v3707_v2 = vpop.f32.mrf.mxu1 }
 0x22e   : > { %1151 = vmatmul.f32.gmra.mxu1 %v1044_v26 }
 0x230   : > { %2666 = vmatmul.msk.f32.gmra.mxu3 %vm1056_vm1, %v1022_v61  ;;  %1216 = vmatmul.f32.gmra.mxu2 %v1048_v30  ;;  %v1371_v30 = vpop.permute.xlu2 %1370 }
 0x233   : > { %v3713_v34 = vpop.f32.mrf.mxu1 }
 0x236   : > { %1154 = vmatmul.f32.gmra.mxu1 %v1047_v24 }
 0x238   : > { %2667 = vmatmul.msk.f32.gmra.mxu3 %vm1056_vm1, %v1025_v10  ;;  %1219 = vmatmul.f32.gmra.mxu2 %v1051_v22  ;;  %v1381_v10 = vpop.permute.xlu0 %1380 }
 0x23e   : > { %1157 = vmatmul.f32.gmra.mxu1 %v1050_v36 }
 0x240   : > { %2668 = vmatmul.msk.f32.gmra.mxu3 %vm1056_vm1, %v1028_v16  ;;  %1222 = vmatmul.f32.gmra.mxu2 %v1054_v46  ;;  %v1366_v36 = vpop.permute.xlu0 %1365 }
 0x245   : > { %v3719_v42 = vpop.f32.mrf.mxu1 }
 0x246   : > { %1160 = vmatmul.f32.gmra.mxu1 %v1053_v17 }
 0x248   : > { %2669 = vmatmul.msk.f32.gmra.mxu3 %vm1056_vm1, %v1031_v20 }
 0x250   : > { %2670 = vmatmul.msk.f32.gmra.mxu3 %vm1056_vm1, %v1034_v29 }
 0x258   : > { %2671 = vmatmul.msk.f32.gmra.mxu3 %vm1056_vm1, %v1037_v32 }
 0x260   : > { %2672 = vmatmul.msk.f32.gmra.mxu3 %vm1056_vm1, %v1040_v14 }
 0x265   : > { %v3753_v15 = vpop.f32.mrf.mxu0 }
 0x268   : > { %2673 = vmatmul.msk.f32.gmra.mxu3 %vm1056_vm1, %v1043_v37 }
 0x26b   : > { %v3721_v45 = vpop.f32.mrf.mxu1  ;;  %v3723_v47 = vpop.f32.mrf.mxu2 }
 0x26d   : > { %v1184_v46 = vpop.f32.mrf.mxu0 }
 0x270   : > { %2674 = vmatmul.msk.f32.gmra.mxu3 %vm1056_vm1, %v1046_v39  ;;  %v2790_v39 = vld [vmem:[%s2935_s19 + $0x68] sm:$0xff] }
 0x273   : > { %v3727_v50 = vpop.f32.mrf.mxu1  ;;  %v3729_v52 = vpop.f32.mrf.mxu2 }
 0x278   : > { %2675 = vmatmul.msk.f32.gmra.mxu3 %vm1056_vm1, %v1049_v43 }
 0x27b   : > { %v3733_v27 = vpop.f32.mrf.mxu1  ;;  %v3737_v55 = vpop.f32.mrf.mxu2 }
 0x280   : > { %2676 = vmatmul.msk.f32.gmra.mxu3 %vm1056_vm1, %v1052_v44  ;;  %v2791_v44 = vld [vmem:[%s2935_s19 + $0x70] sm:$0xff] }
 0x283   : > { %v3741_v25 = vpop.f32.mrf.mxu1  ;;  %v3743_v57 = vpop.f32.mrf.mxu2 }
 0x288   : > { %2677 = vmatmul.msk.f32.gmra.mxu3 %vm1056_vm1, %v1055_v18 }
 0x28b   : > { %v1140_v41 = vpop.f32.mrf.mxu1  ;;  %v1202_v28 = vpop.f32.mrf.mxu2 }
 0x293   : > { %v1143_v58 = vpop.f32.mrf.mxu1  ;;  %v1205_v59 = vpop.f32.mrf.mxu2 }
 0x29b   : > { %v3725_v49 = vpop.f32.mrf.mxu3  ;;  %v1146_v53 = vpop.f32.mrf.mxu1 }
 0x29c   : > { %v1208_v1 = vpop.f32.mrf.mxu2 }
 0x29d   : > { %v1209_v37 = vadd.f32 %v1208_v1, %v1146_v53  ;;  %v1361_v1 = vpop.permute.xlu1 %1360 }
 0x2a3   : > { %v3731_v54 = vpop.f32.mrf.mxu3  ;;  %v1149_v11 = vpop.f32.mrf.mxu1 }
 0x2a4   : > { %v1211_v35 = vpop.f32.mrf.mxu2 }
 0x2a5   : > { %v1212_v24 = vadd.f32 %v1211_v35, %v1149_v11  ;;  %v2793_v35 = vld [vmem:[%s2935_s19 + $0x58] sm:$0xff] }
 0x2ab   : > { %v3735_v38 = vpop.f32.mrf.mxu3  ;;  %v1152_v33 = vpop.f32.mrf.mxu1 }
 0x2ac   : > { %v1214_v12 = vpop.f32.mrf.mxu2 }
 0x2ad   : > { %v1215_v29 = vadd.f32 %v1214_v12, %v1152_v33  ;;  %v2792_v33 = vld [vmem:[%s2935_s19 + $0x60] sm:$0xff] }
 0x2b3   : > { %v3739_v31 = vpop.f32.mrf.mxu3  ;;  %v1155_v7 = vpop.f32.mrf.mxu1 }
 0x2b4   : > { %v1217_v62 = vpop.f32.mrf.mxu2 }
 0x2b5   : > { %v1218_v20 = vadd.f32 %v1217_v62, %v1155_v7  ;;  %v1206_v7 = vadd.f32 %v1205_v59, %v1143_v58  ;;  %v1200_v58 = vadd.f32 %v3743_v57, %v3741_v25  ;;  %v1351_v57 = vpop.permute.xlu0 %1350 }
 0x2bb   : > { %v3745_v40 = vpop.f32.mrf.mxu3  ;;  %v1158_v5 = vpop.f32.mrf.mxu1 }
 0x2bc   : > { %v1220_v61 = vpop.f32.mrf.mxu2 }
 0x2bd   : > { %v1221_v51 = vadd.f32 %v1220_v61, %v1158_v5  ;;  %v1203_v61 = vadd.f32 %v1202_v28, %v1140_v41  ;;  %v1356_v28 = vpop.permute.xlu2 %1355 }
 0x2c3   : > { %v3747_v19 = vpop.f32.mrf.mxu3  ;;  %v1161_v16 = vpop.f32.mrf.mxu1 }
 0x2c4   : > { %v1223_v56 = vpop.f32.mrf.mxu2 }
 0x2c5   : > { %v1224_v21 = vadd.f32 %v1223_v56, %v1161_v16  ;;  %v1191_v56 = vadd.f32 %v3723_v47, %v3721_v45  ;;  %v1346_v47 = vpop.permute.xlu1 %1345 }
 0x2cb   : > { %v3749_v60 = vpop.f32.mrf.mxu3 }
 0x2cc   : > { %v1262_v16 = vadd.f32 %v3749_v60, %v1200_v58  ;;  %v1409_v58 = vld [vmem:[%s4439_s5 + $0x8] sm:$0xff] }
 0x2d3   : > { %v3751_v63 = vpop.f32.mrf.mxu3 }
 0x2db   : > { %v1267_v0 = vpop.f32.mrf.mxu3 }
 0x2dc   : > { %v1268_v59 = vadd.f32 %v1267_v0, %v1206_v7  ;;  %v1194_v0 = vadd.f32 %v3729_v52, %v3727_v50  ;;  %v1331_v7 = vpop.permute.xlu1 %1330 }
 0x2e3   : > { %v1270_v48 = vpop.f32.mrf.mxu3 }
 0x2e4   : > { %v1271_v11 = vadd.f32 %v1270_v48, %v1209_v37  ;;  %v1197_v48 = vadd.f32 %v3737_v55, %v3733_v27  ;;  %v2796_v27 = vld [vmem:[%s2935_s19 + $0x40] sm:$0xff]  ;;  %v2801_v37 = vld [vmem:[%s2935_s19 + $0x18] sm:$0xff] }
 0x2e5   : > { %v1296_v55 = vadd.f32 %v2796_v27, %v1268_v59  ;;  %v1426_v59 = vld [vmem:[%s4439_s5 + $0x90] sm:$0xff]  ;;  %v1432_v27 = vld [vmem:[%s4439_s5 + $0xc0] sm:$0xff] }
 0x2e7   : > { %v3801_v45 = vadd.f32 %v1361_v1, %v1296_v55  ;;  %v1425_v1 = vld [vmem:[%s4439_s5 + $0x88] sm:$0xff]  ;;  %v1416_v55 = vld [vmem:[%s4439_s5 + $0x40] sm:$0xff] }
 0x2e9   : > { %4466 = vst [vmem:[#allocation10_spill] sm:$0xff] %v3801_v45 }
 0x2eb   : > { %v1273_v3 = vpop.f32.mrf.mxu3 }
 0x2ec   : > { %v1274_v62 = vadd.f32 %v1273_v3, %v1212_v24  ;;  %v2794_v3 = vld [vmem:[%s2935_s19 + $0x50] sm:$0xff]  ;;  %v1182_v24 = vadd.f32 %v3753_v15, %v3707_v2 }
 0x2ed   : > { %v2802_v15 = vld [vmem:[%s2935_s19 + $0x10] sm:$0xff] }
 0x2f3   : > { %v1276_v4 = vpop.f32.mrf.mxu3 }
 0x2f4   : > { %v1277_v17 = vadd.f32 %v1276_v4, %v1215_v29  ;;  %v1298_v4 = vadd.f32 %v2794_v3, %v1274_v62  ;;  %v2804_v62 = vld [vmem:[%s2935_s19] sm:$0xff]  ;;  %v1410_v3 = vld [vmem:[%s4439_s5 + $0x10] sm:$0xff] }
 0x2fb   : > { %v1279_v6 = vpop.f32.mrf.mxu3 }
 0x2fc   : > { %v1280_v22 = vadd.f32 %v1279_v6, %v1218_v20  ;;  %v1299_v6 = vadd.f32 %v2793_v35, %v1277_v17  ;;  %v2797_v20 = vld [vmem:[%s2935_s19 + $0x38] sm:$0xff] }
 0x2fe   : > { %v1300_v12 = vadd.f32 %v2792_v33, %v1280_v22  ;;  %v3778_v25 = vadd.f32 %v1376_v23, %v1299_v6  ;;  %v2798_v23 = vld [vmem:[%s2935_s19 + $0x30] sm:$0xff]  ;;  %v1408_v6 = vld [vmem:[%s4439_s5] sm:$0xff] }
 0x2ff   : > { %v1294_v29 = vadd.f32 %v2798_v23, %v1262_v16  ;;  %v1415_v16 = vld [vmem:[%s4439_s5 + $0x38] sm:$0xff]  ;;  %v1436_v23 = vld [vmem:[%s4439_s5 + $0xe0] sm:$0xff] }
 0x300   : > { %v3770_v41 = vadd.f32 %v1381_v10, %v1300_v12  ;;  %4463 = vst [vmem:[#allocation7_spill] sm:$0xff] %v3778_v25  ;;  %v1187_v10 = vpop.f32.mrf.mxu0 }
 0x301   : > { %v1188_v60 = vadd.f32 %v1187_v10, %v3719_v42  ;;  %v1431_v10 = vld [vmem:[%s4439_s5 + $0xb8] sm:$0xff] }
 0x302   : > { %4462 = vst [vmem:[#allocation6_spill] sm:$0xff] %v3770_v41 }
 0x303   : > { %v1282_v13 = vpop.f32.mrf.mxu3  ;;  %v1250_v22 = vadd.f32 %v3735_v38, %v1188_v60  ;;  %v1244_v38 = vadd.f32 %v3725_v49, %v1182_v24  ;;  %v1435_v60 = vld [vmem:[%s4439_s5 + $0xd8] sm:$0xff]  ;;  %v1440_v24 = vld [vmem:[%s4439_s5 + $0x100] sm:$0xff] }
 0x304   : > { %v1283_v26 = vadd.f32 %v1282_v13, %v1221_v51  ;;  %v1259_v51 = vadd.f32 %v3747_v19, %v1197_v48  ;;  %v1185_v19 = vadd.f32 %v1184_v46, %v3713_v34  ;;  %v1428_v48 = vld [vmem:[%s4439_s5 + $0xa0] sm:$0xff] }
 0x305   : > { %v1288_v33 = vadd.f32 %v2804_v62, %v1244_v38 }
 0x306   : > { %v1301_v43 = vadd.f32 %v2790_v39, %v1283_v26  ;;  %v1253_v26 = vadd.f32 %v3739_v31, %v1191_v56  ;;  %v3816_v31 = vadd.f32 %v1351_v57, %v1294_v29  ;;  %v1247_v46 = vadd.f32 %v3731_v54, %v1185_v19  ;;  %v2803_v54 = vld [vmem:[%s2935_s19 + $0x8] sm:$0xff]  ;;  %v1430_v57 = vld [vmem:[%s4439_s5 + $0xb0] sm:$0xff] }
 0x307   : > { %v1290_v39 = vadd.f32 %v2802_v15, %v1250_v22  ;;  %v1433_v56 = vld [vmem:[%s4439_s5 + $0xc8] sm:$0xff]  ;;  %v1420_v29 = vld [vmem:[%s4439_s5 + $0x60] sm:$0xff] }
 0x308   : > { %v3763_v53 = vadd.f32 %v1386_v9, %v1301_v43  ;;  %v2795_v9 = vld [vmem:[%s2935_s19 + $0x48] sm:$0xff]  ;;  %4468 = vst [vmem:[#allocation12_spill] sm:$0xff] %v3816_v31  ;;  %v1291_v17 = vadd.f32 %v2801_v37, %v1253_v26  ;;  %v1438_v26 = vld [vmem:[%s4439_s5 + $0xf0] sm:$0xff] }
 0x309   : > { %v1297_v13 = vadd.f32 %v2795_v9, %v1271_v11  ;;  %v3838_v49 = vadd.f32 %v1331_v7, %v1290_v39  ;;  %v1429_v9 = vld [vmem:[%s4439_s5 + $0xa8] sm:$0xff]  ;;  %v1424_v22 = vld [vmem:[%s4439_s5 + $0x80] sm:$0xff]  ;;  %v1442_v37 = vld [vmem:[%s4439_s5 + $0x110] sm:$0xff] }
 0x30a   : > { %4461 = vst [vmem:[#allocation5_spill] sm:$0xff] %v3763_v53  ;;  %v1421_v19 = vld [vmem:[%s4439_s5 + $0x68] sm:$0xff] }
 0x30b   : > { %v1285_v32 = vpop.f32.mrf.mxu3  ;;  %v3794_v52 = vadd.f32 %v1366_v36, %v1297_v13  ;;  %v1336_v36 = vpop.permute.xlu0 %1335  ;;  %4472 = vst [vmem:[#allocation16_spill] sm:$0xff] %v3838_v49  ;;  %v1413_v13 = vld [vmem:[%s4439_s5 + $0x28] sm:$0xff] }
 0x30c   : > { %v1286_v14 = vadd.f32 %v1285_v32, %v1224_v21  ;;  %v1256_v21 = vadd.f32 %v3745_v40, %v1194_v0  ;;  %v1341_v40 = vpop.permute.xlu2 %1340  ;;  %v1414_v0 = vld [vmem:[%s4439_s5 + $0x30] sm:$0xff] }
 0x30d   : > { %4465 = vst [vmem:[#allocation9_spill] sm:$0xff] %v3794_v52 }
 0x30e   : > { %v1302_v18 = vadd.f32 %v2791_v44, %v1286_v14  ;;  %v2800_v14 = vld [vmem:[%s2935_s19 + $0x20] sm:$0xff]  ;;  %v1289_v44 = vadd.f32 %v2803_v54, %v1247_v46 }
 0x30f   : > { %v1292_v34 = vadd.f32 %v2800_v14, %v1256_v21  ;;  %v1419_v21 = vld [vmem:[%s4439_s5 + $0x58] sm:$0xff]  ;;  %v1441_v14 = vld [vmem:[%s4439_s5 + $0x108] sm:$0xff] }
 0x310   : > { %v3758_v5 = vadd.f32 %v1391_v8, %v1302_v18  ;;  %v1265_v8 = vadd.f32 %v3751_v63, %v1203_v61  ;;  %v3786_v63 = vadd.f32 %v1371_v30, %v1298_v4  ;;  %v2799_v30 = vld [vmem:[%s2935_s19 + $0x28] sm:$0xff]  ;;  %v3833_v18 = vadd.f32 %v1336_v36, %v1291_v17  ;;  %v1427_v4 = vld [vmem:[%s4439_s5 + $0x98] sm:$0xff] }
 0x311   : > { %v1293_v32 = vadd.f32 %v2799_v30, %v1259_v51  ;;  %v3828_v43 = vadd.f32 %v1341_v40, %v1292_v34  ;;  %v1417_v51 = vld [vmem:[%s4439_s5 + $0x48] sm:$0xff]  ;;  %v1422_v30 = vld [vmem:[%s4439_s5 + $0x70] sm:$0xff]  ;;  %v1423_v40 = vld [vmem:[%s4439_s5 + $0x78] sm:$0xff]  ;;  %v3986_v34 = vpop.permute.xlu1 %1581 }
 0x312   : > { %4460 = vst [vmem:[#allocation4_spill] sm:$0xff] %v3758_v5  ;;  %1889 = vmatpush.msrb.mxu2 %v3758_v5  ;;  %2745 = vmatpush.msrb.mxu3 %v3758_v5  ;;  %v1295_v50 = vadd.f32 %v2797_v20, %v1265_v8  ;;  %v1412_v8 = vld [vmem:[%s4439_s5 + $0x20] sm:$0xff]  ;;  %v1434_v20 = vld [vmem:[%s4439_s5 + $0xd0] sm:$0xff]  ;;  %v1443_v54 = vld [vmem:[%s4439_s5 + $0x118] sm:$0xff] }
 0x313   : > { %4464 = vst [vmem:[#allocation8_spill] sm:$0xff] %v3786_v63  ;;  %v3822_v2 = vadd.f32 %v1346_v47, %v1293_v32  ;;  %v1321_v11 = vpop.permute.xlu0 %1320  ;;  %v1437_v47 = vld [vmem:[%s4439_s5 + $0xe8] sm:$0xff]  ;;  %v1439_v32 = vld [vmem:[%s4439_s5 + $0xf8] sm:$0xff] }
 0x314   : > { %1890 = vmatpush.msrb.mxu2 %v3763_v53  ;;  %2746 = vmatpush.msrb.mxu3 %v3763_v53  ;;  %v3808_v42 = vadd.f32 %v1356_v28, %v1295_v50  ;;  %4470 = vst [vmem:[#allocation14_spill] sm:$0xff] %v3828_v43  ;;  %v1326_v12 = vpop.permute.xlu2 %1325  ;;  %v3846_v35 = vadd.f32 %v1321_v11, %v1288_v33  ;;  %v1411_v28 = vld [vmem:[%s4439_s5 + $0x18] sm:$0xff]  ;;  %v1418_v50 = vld [vmem:[%s4439_s5 + $0x50] sm:$0xff] }
 0x315   : > { %4469 = vst [vmem:[#allocation13_spill] sm:$0xff] %v3822_v2  ;;  %v3842_v61 = vadd.f32 %v1326_v12, %v1289_v44  ;;  %v1444_v12 = vld [vmem:[%s4439_s5 + $0x120] sm:$0xff] }
 0x316   : > { %1891 = vmatpush.msrb.mxu2 %v3770_v41  ;;  %2747 = vmatpush.msrb.mxu3 %v3770_v41  ;;  %4467 = vst [vmem:[#allocation11_spill] sm:$0xff] %v3808_v42 }
 0x317   : > { %4471 = vst [vmem:[#allocation15_spill] sm:$0xff] %v3833_v18 }
 0x318   : > { %1892 = vmatpush.msrb.mxu2 %v3778_v25  ;;  %2748 = vmatpush.msrb.mxu3 %v3778_v25  ;;  %4473 = vst [vmem:[#allocation17_spill] sm:$0xff] %v3842_v61 }
 0x319   : > { %4474 = vst [vmem:[#allocation18_spill] sm:$0xff] %v3846_v35  ;;  %v4002_v39 = vpop.permute.xlu1 %1566 }
 0x31a   : > { %1893 = vmatpush.msrb.mxu2 %v3786_v63  ;;  %2749 = vmatpush.msrb.mxu3 %v3786_v63 }
 0x31b   : > { %v4008_v44 = vpop.permute.xlu0 %1571 }
 0x31c   : > { %1894 = vmatpush.msrb.mxu2 %v3794_v52  ;;  %2750 = vmatpush.msrb.mxu3 %v3794_v52  ;;  %v3996_v17 = vpop.permute.xlu2 %1576 }
 0x31e   : > { %1895 = vmatpush.msrb.mxu2 %v3801_v45  ;;  %2751 = vmatpush.msrb.mxu3 %v3801_v45 }
 0x320   : > { %1896 = vmatpush.msrb.mxu2 %v3808_v42  ;;  %2752 = vmatpush.msrb.mxu3 %v3808_v42 }
 0x321   : > { %v4019_v11 = vpop.permute.xlu1 %1551 }
 0x322   : > { %1897 = vmatpush.msrb.mxu2 %v3816_v31  ;;  %2753 = vmatpush.msrb.mxu3 %v3816_v31 }
 0x324   : > { %1898 = vmatpush.msrb.mxu2 %v3822_v2  ;;  %2754 = vmatpush.msrb.mxu3 %v3822_v2  ;;  %v4014_v33 = vpop.permute.xlu2 %1561 }
 0x326   : > { %1899 = vmatpush.msrb.mxu2 %v3828_v43  ;;  %2755 = vmatpush.msrb.mxu3 %v3828_v43 }
 0x328   : > { %1900 = vmatpush.msrb.mxu2 %v3833_v18  ;;  %2756 = vmatpush.msrb.mxu3 %v3833_v18 }
 0x32a   : > { %1901 = vmatpush.msrb.mxu2 %v3838_v49  ;;  %2757 = vmatpush.msrb.mxu3 %v3838_v49  ;;  %v1455_v49 = vld [vmem:[%s4439_s5 + $0x178] sm:$0xff] }
 0x32c   : > { %1902 = vmatpush.msrb.mxu2 %v3842_v61  ;;  %2758 = vmatpush.msrb.mxu3 %v3842_v61 }
 0x32e   : > { %1903 = vmatpush.msrb.mxu2 %v3846_v35  ;;  %2759 = vmatpush.msrb.mxu3 %v3846_v35 }
 0x32f   : > { %2678 = vmatmul.msk.f32.vlgmr.msrb.gmra.mxu2 %vm713_vm0, %v1408_v6  ;;  %2695 = vmatmul.msk.f32.vlgmr.msrb.gmra.mxu3 %vm713_vm0, %v1425_v1 }
 0x337   : > { %2679 = vmatmul.msk.f32.gmra.mxu2 %vm713_vm0, %v1409_v58  ;;  %2696 = vmatmul.msk.f32.gmra.mxu3 %vm713_vm0, %v1426_v59  ;;  %v4026_v58 = vpop.permute.xlu0 %1556  ;;  %v1445_v59 = vld [vmem:[%s4439_s5 + $0x128] sm:$0xff] }
 0x33f   : > { %2680 = vmatmul.msk.f32.gmra.mxu2 %vm713_vm0, %v1410_v3  ;;  %2697 = vmatmul.msk.f32.gmra.mxu3 %vm713_vm0, %v1427_v4  ;;  %v4031_v3 = vpop.permute.xlu2 %1546  ;;  %v4033_v4 = vpop.permute.xlu1 %1536 }
 0x347   : > { %2681 = vmatmul.msk.f32.gmra.mxu2 %vm713_vm0, %v1411_v28  ;;  %2698 = vmatmul.msk.f32.gmra.mxu3 %vm713_vm0, %v1428_v48 }
 0x34f   : > { %2682 = vmatmul.msk.f32.gmra.mxu2 %vm713_vm0, %v1412_v8  ;;  %2699 = vmatmul.msk.f32.gmra.mxu3 %vm713_vm0, %v1429_v9  ;;  %v1446_v8 = vld [vmem:[%s4439_s5 + $0x130] sm:$0xff]  ;;  %v4043_v9 = vpop.permute.xlu0 %1541 }
 0x357   : > { %2683 = vmatmul.msk.f32.gmra.mxu2 %vm713_vm0, %v1413_v13  ;;  %2700 = vmatmul.msk.f32.gmra.mxu3 %vm713_vm0, %v1430_v57  ;;  %v4045_v13 = vpop.permute.xlu2 %1531  ;;  %v4048_v57 = vpop.permute.xlu1 %1521 }
 0x358   : > { %4479 = vst [vmem:[#allocation23_spill] sm:$0xff] %v4048_v57 }
 0x35f   : > { %2684 = vmatmul.msk.f32.gmra.mxu2 %vm713_vm0, %v1414_v0  ;;  %2701 = vmatmul.msk.f32.gmra.mxu3 %vm713_vm0, %v1431_v10 }
 0x367   : > { %2685 = vmatmul.msk.f32.gmra.mxu2 %vm713_vm0, %v1415_v16  ;;  %2702 = vmatmul.msk.f32.gmra.mxu3 %vm713_vm0, %v1432_v27  ;;  %v1447_v16 = vld [vmem:[%s4439_s5 + $0x138] sm:$0xff]  ;;  %v4057_v27 = vpop.permute.xlu0 %1526 }
 0x36f   : > { %2686 = vmatmul.msk.f32.gmra.mxu2 %vm713_vm0, %v1416_v55  ;;  %2703 = vmatmul.msk.f32.gmra.mxu3 %vm713_vm0, %v1433_v56  ;;  %v4060_v55 = vpop.permute.xlu2 %1516 }
 0x370   : > { %4480 = vst [vmem:[#allocation24_spill] sm:$0xff] %v4060_v55 }
 0x377   : > { %2687 = vmatmul.msk.f32.gmra.mxu2 %vm713_vm0, %v1417_v51  ;;  %2704 = vmatmul.msk.f32.gmra.mxu3 %vm713_vm0, %v1434_v20  ;;  %v4066_v20 = vpop.permute.xlu1 %1506 }
 0x378   : > { %4481 = vst [vmem:[#allocation25_spill] sm:$0xff] %v4066_v20 }
 0x37f   : > { %2688 = vmatmul.msk.f32.gmra.mxu2 %vm713_vm0, %v1418_v50  ;;  %2705 = vmatmul.msk.f32.gmra.mxu3 %vm713_vm0, %v1435_v60  ;;  %v1448_v50 = vld [vmem:[%s4439_s5 + $0x140] sm:$0xff]  ;;  %v4072_v60 = vpop.permute.xlu0 %1511 }
 0x380   : > { %4482 = vst [vmem:[#allocation26_spill] sm:$0xff] %v4072_v60 }
 0x387   : > { %2689 = vmatmul.msk.f32.gmra.mxu2 %vm713_vm0, %v1419_v21  ;;  %2706 = vmatmul.msk.f32.gmra.mxu3 %vm713_vm0, %v1436_v23 }
 0x38f   : > { %2690 = vmatmul.msk.f32.gmra.mxu2 %vm713_vm0, %v1420_v29  ;;  %2707 = vmatmul.msk.f32.gmra.mxu3 %vm713_vm0, %v1437_v47  ;;  %v1662_v29 = vpop.permute.xlu2 %1661  ;;  %v1449_v47 = vld [vmem:[%s4439_s5 + $0x148] sm:$0xff] }
 0x397   : > { %2691 = vmatmul.msk.f32.gmra.mxu2 %vm713_vm0, %v1421_v19  ;;  %2708 = vmatmul.msk.f32.gmra.mxu3 %vm713_vm0, %v1438_v26  ;;  %v1652_v19 = vpop.permute.xlu1 %1651 }
 0x39f   : > { %2692 = vmatmul.msk.f32.gmra.mxu2 %vm713_vm0, %v1422_v30  ;;  %2709 = vmatmul.msk.f32.gmra.mxu3 %vm713_vm0, %v1439_v32  ;;  %v1657_v32 = vpop.permute.xlu0 %1656 }
 0x3a7   : > { %2693 = vmatmul.msk.f32.gmra.mxu2 %vm713_vm0, %v1423_v40  ;;  %2710 = vmatmul.msk.f32.gmra.mxu3 %vm713_vm0, %v1440_v24  ;;  %v1450_v40 = vld [vmem:[%s4439_s5 + $0x150] sm:$0xff]  ;;  %v1647_v24 = vpop.permute.xlu2 %1646 }
 0x3af   : > { %2694 = vmatmul.msk.f32.gmra.mxu2 %vm713_vm0, %v1424_v22  ;;  %2711 = vmatmul.msk.f32.gmra.mxu3 %vm713_vm0, %v1441_v14  ;;  %v4087_v22 = vpop.permute.xlu1 %1741 }
 0x3b0   : > { %4483 = vst [vmem:[#allocation27_spill] sm:$0xff] %v4087_v22 }
 0x3b2   : > { %v3988_v36 = vpop.f32.mrf.mxu2  ;;  %v3990_v46 = vpop.f32.mrf.mxu3 }
 0x3b3   : > { %4475 = vst [vmem:[#allocation19_spill] sm:$0xff] %v3988_v36 }
 0x3b7   : > { %2712 = vmatmul.msk.f32.gmra.mxu3 %vm713_vm0, %v1442_v37 }
 0x3ba   : > { %v3998_v38 = vpop.f32.mrf.mxu2  ;;  %v4000_v15 = vpop.f32.mrf.mxu3 }
 0x3bb   : > { %4476 = vst [vmem:[#allocation20_spill] sm:$0xff] %v3998_v38 }
 0x3bf   : > { %2713 = vmatmul.msk.f32.gmra.mxu3 %vm713_vm0, %v1443_v54  ;;  %v1451_v54 = vld [vmem:[%s4439_s5 + $0x158] sm:$0xff] }
 0x3c2   : > { %v4010_v7 = vpop.f32.mrf.mxu2  ;;  %v4012_v62 = vpop.f32.mrf.mxu3 }
 0x3c3   : > { %4477 = vst [vmem:[#allocation21_spill] sm:$0xff] %v4010_v7 }
 0x3c7   : > { %2714 = vmatmul.msk.f32.gmra.mxu3 %vm713_vm0, %v1444_v12  ;;  %v1642_v12 = vpop.permute.xlu0 %1641 }
 0x3ca   : > { %v4022_v6 = vpop.f32.mrf.mxu2  ;;  %v4024_v1 = vpop.f32.mrf.mxu3 }
 0x3cb   : > { %4478 = vst [vmem:[#allocation22_spill] sm:$0xff] %v4022_v6 }
 0x3cf   : > { %2715 = vmatmul.msk.f32.gmra.mxu3 %vm713_vm0, %v1445_v59  ;;  %v1637_v59 = vpop.permute.xlu2 %1636 }
 0x3d2   : > { %v4036_v28 = vpop.f32.mrf.mxu2  ;;  %v4038_v48 = vpop.f32.mrf.mxu3 }
 0x3d7   : > { %2716 = vmatmul.msk.f32.gmra.mxu3 %vm713_vm0, %v1446_v8  ;;  %v1632_v8 = vpop.permute.xlu1 %1631  ;;  %v4104_v5 = vpop.permute.xlu2 %1731 }
 0x3d8   : > { %4485 = vst [vmem:[#allocation29_spill] sm:$0xff] %v4104_v5 }
 0x3da   : > { %v4050_v0 = vpop.f32.mrf.mxu2  ;;  %v4052_v10 = vpop.f32.mrf.mxu3 }
 0x3df   : > { %2717 = vmatmul.msk.f32.gmra.mxu3 %vm713_vm0, %v1447_v16  ;;  %v4106_v25 = vpop.permute.xlu1 %1726  ;;  %v1622_v42 = vpop.permute.xlu2 %1621 }
 0x3e0   : > { %4486 = vst [vmem:[#allocation30_spill] sm:$0xff] %v4106_v25 }
 0x3e2   : > { %v4062_v56 = vpop.f32.mrf.mxu2  ;;  %v4064_v51 = vpop.f32.mrf.mxu3 }
 0x3e7   : > { %2718 = vmatmul.msk.f32.gmra.mxu3 %vm713_vm0, %v1448_v50  ;;  %v1617_v31 = vpop.permute.xlu1 %1616 }
 0x3ea   : > { %v4074_v21 = vpop.f32.mrf.mxu2  ;;  %v4076_v23 = vpop.f32.mrf.mxu3 }
 0x3ef   : > { %2719 = vmatmul.msk.f32.gmra.mxu3 %vm713_vm0, %v1449_v47  ;;  %v1452_v47 = vld [vmem:[%s4439_s5 + $0x160] sm:$0xff]  ;;  %v4123_v61 = vpop.permute.xlu1 %1711 }
 0x3f0   : > { %4489 = vst [vmem:[#allocation33_spill] sm:$0xff] %v4123_v61 }
 0x3f2   : > { %v4082_v26 = vpop.f32.mrf.mxu2  ;;  %v1980_v30 = vpop.f32.mrf.mxu3 }
 0x3f7   : > { %2720 = vmatmul.msk.f32.gmra.mxu3 %vm713_vm0, %v1450_v40  ;;  %v4101_v40 = vpop.permute.xlu0 %1736  ;;  %v1602_v60 = vpop.permute.xlu1 %1601 }
 0x3f8   : > { %4484 = vst [vmem:[#allocation28_spill] sm:$0xff] %v4101_v40 }
 0x3fa   : > { %v4090_v14 = vpop.f32.mrf.mxu2  ;;  %v1983_v37 = vpop.f32.mrf.mxu3 }
 0x3fb   : > { %v1984_v61 = vadd.f32 %v1983_v37, %v1637_v59 }
 0x3ff   : > { %2721 = vmatmul.msk.f32.gmra.mxu3 %vm713_vm0, %v1451_v54  ;;  %v1453_v54 = vld [vmem:[%s4439_s5 + $0x168] sm:$0xff]  ;;  %v1627_v63 = vpop.permute.xlu0 %1626 }
 0x402   : > { %v4096_v16 = vpop.f32.mrf.mxu2  ;;  %v1986_v50 = vpop.f32.mrf.mxu3 }
 0x403   : > { %v1987_v7 = vadd.f32 %v1986_v50, %v1642_v12  ;;  %v1918_v12 = vadd.f32 %v4036_v28, %v4057_v27  ;;  %v2098_v27 = vld [vmem:[%s4441_s7 + $0x8] sm:$0xff] }
 0x405   : > { %v2053_v28 = vmax.f32 %v1918_v12, 0.0 }
 0x407   : > { %2722 = vmatmul.msk.f32.gmra.mxu3 %vm713_vm0, %v1452_v47  ;;  %v1454_v47 = vld [vmem:[%s4439_s5 + $0x170] sm:$0xff]  ;;  %v4116_v18 = vpop.permute.xlu0 %1721 }
 0x408   : > { %4487 = vst [vmem:[#allocation31_spill] sm:$0xff] %v4116_v18 }
 0x40a   : > { %v1938_v53 = vpop.f32.mrf.mxu2  ;;  %v1989_v41 = vpop.f32.mrf.mxu3 }
 0x40b   : > { %v1990_v20 = vadd.f32 %v1989_v41, %v1647_v24 }
 0x40f   : > { %2723 = vmatmul.msk.f32.gmra.mxu3 %vm713_vm0, %v1453_v54  ;;  %v4121_v54 = vpop.permute.xlu2 %1716  ;;  %v1612_v36 = vpop.permute.xlu0 %1611 }
 0x410   : > { %4488 = vst [vmem:[#allocation32_spill] sm:$0xff] %v4121_v54 }
 0x412   : > { %v1941_v52 = vpop.f32.mrf.mxu2  ;;  %v1992_v45 = vpop.f32.mrf.mxu3 }
 0x413   : > { %v1993_v40 = vadd.f32 %v1992_v45, %v1652_v19  ;;  %v1981_v45 = vadd.f32 %v1980_v30, %v1632_v8  ;;  %v2075_v19 = vmax.f32 %v1984_v61, 0.0  ;;  %v1936_v61 = vadd.f32 %v4096_v16, %v4026_v58  ;;  %v4490_v8 = vld [vmem:[#allocation23_spill] sm:$0xff]  ;;  %v4491_v16 = vld [vmem:[#allocation22_spill] sm:$0xff] }
 0x414   : > { %v1930_v58 = vadd.f32 %v4082_v26, %v4031_v3  ;;  %v1924_v3 = vadd.f32 %v4062_v56, %v4033_v4 }
 0x415   : > { %v2078_v55 = vmax.f32 %v1993_v40, 0.0  ;;  %v4493_v40 = vld [vmem:[#allocation21_spill] sm:$0xff] }
 0x416   : > { %v2057_v26 = vmax.f32 %v1930_v58, 0.0  ;;  %v2055_v56 = vmax.f32 %v1924_v3, 0.0  ;;  %v2113_v58 = vld [vmem:[%s4441_s7 + $0x80] sm:$0xff]  ;;  %v2122_v3 = vld [vmem:[%s4441_s7 + $0xc8] sm:$0xff] }
 0x417   : > { %2724 = vmatmul.msk.f32.gmra.mxu3 %vm713_vm0, %v1454_v47  ;;  %v1607_v18 = vpop.permute.xlu2 %1606 }
 0x41a   : > { %v1944_v2 = vpop.f32.mrf.mxu2  ;;  %v1995_v43 = vpop.f32.mrf.mxu3 }
 0x41b   : > { %v1996_v5 = vadd.f32 %v1995_v43, %v1657_v32  ;;  %v2076_v43 = vmax.f32 %v1987_v7, 0.0 }
 0x41d   : > { %v2079_v38 = vmax.f32 %v1996_v5, 0.0  ;;  %v1945_v5 = vadd.f32 %v1944_v2, %v4008_v44 }
 0x41f   : > { %2725 = vmatmul.msk.f32.gmra.mxu3 %vm713_vm0, %v1455_v49  ;;  %v2077_v49 = vmax.f32 %v1990_v20, 0.0  ;;  %v4133_v20 = vpop.permute.xlu0 %1706  ;;  %v2062_v7 = vmax.f32 %v1945_v5, 0.0  ;;  %v4137_v2 = vpop.permute.xlu2 %1701  ;;  %v4496_v5 = vld [vmem:[#allocation25_spill] sm:$0xff] }
 0x422   : > { %v1947_v35 = vpop.f32.mrf.mxu2  ;;  %v1998_v25 = vpop.f32.mrf.mxu3 }
 0x423   : > { %v1999_v22 = vadd.f32 %v1998_v25, %v1662_v29  ;;  %v1948_v57 = vadd.f32 %v1947_v35, %v3996_v17  ;;  %v1978_v29 = vadd.f32 %v4076_v23, %v1627_v63  ;;  %v1975_v35 = vadd.f32 %v4064_v51, %v1622_v42  ;;  %v4144_v42 = vpop.permute.xlu1 %1696 }
 0x424   : > { %v1939_v17 = vadd.f32 %v1938_v53, %v4014_v33  ;;  %v1972_v63 = vadd.f32 %v4052_v10, %v1617_v31  ;;  %v1969_v53 = vadd.f32 %v4038_v48, %v1612_v36  ;;  %v1966_v31 = vadd.f32 %v4024_v1, %v1607_v18 }
 0x425   : > { %v2080_v47 = vmax.f32 %v1999_v22, 0.0  ;;  %v2063_v32 = vmax.f32 %v1948_v57, 0.0  ;;  %v2072_v33 = vmax.f32 %v1975_v35, 0.0  ;;  %v1933_v57 = vadd.f32 %v4090_v14, %v4019_v11 }
 0x426   : > { %v2071_v10 = vmax.f32 %v1972_v63, 0.0  ;;  %v2059_v51 = vmax.f32 %v1936_v61, 0.0  ;;  %v1963_v23 = vadd.f32 %v4012_v62, %v1602_v60  ;;  %v2070_v30 = vmax.f32 %v1969_v53, 0.0  ;;  %v2100_v63 = vld [vmem:[%s4441_s7 + $0x18] sm:$0xff]  ;;  %v2107_v53 = vld [vmem:[%s4441_s7 + $0x50] sm:$0xff] }
 0x427   : > { %2204 = vmatpush.msra.mxu2 %v2080_v47  ;;  %v1927_v36 = vadd.f32 %v4074_v21, %v4043_v9  ;;  %v2058_v48 = vmax.f32 %v1933_v57, 0.0  ;;  %v1597_v11 = vpop.permute.xlu0 %1596  ;;  %v2069_v1 = vmax.f32 %v1966_v31, 0.0  ;;  %v1592_v62 = vpop.permute.xlu2 %1591  ;;  %v1921_v21 = vadd.f32 %v4050_v0, %v4045_v13  ;;  %v4492_v0 = vld [vmem:[#allocation24_spill] sm:$0xff]  ;;  %v2106_v57 = vld [vmem:[%s4441_s7 + $0x48] sm:$0xff] }
 0x428   : > { %v1960_v18 = vadd.f32 %v4000_v15, %v1597_v11  ;;  %v1957_v22 = vadd.f32 %v3990_v46, %v1592_v62  ;;  %v2068_v9 = vmax.f32 %v1963_v23, 0.0  ;;  %v1915_v46 = vadd.f32 %v4491_v16, %v4490_v8  ;;  %v2112_v23 = vld [vmem:[%s4441_s7 + $0x78] sm:$0xff]  ;;  %v2119_v11 = vld [vmem:[%s4441_s7 + $0xb0] sm:$0xff]  ;;  %v2121_v62 = vld [vmem:[%s4441_s7 + $0xc0] sm:$0xff] }
 0x429   : > { %2205 = vmatpush.msra.mxu2 %v2079_v38  ;;  %v1942_v38 = vadd.f32 %v1941_v52, %v4002_v39  ;;  %v2073_v52 = vmax.f32 %v1978_v29, 0.0  ;;  %v2056_v14 = vmax.f32 %v1927_v36, 0.0  ;;  %v2054_v50 = vmax.f32 %v1921_v21, 0.0  ;;  %v2128_v21 = vld [vmem:[%s4441_s7 + $0xf8] sm:$0xff]  ;;  %v2130_v16 = vld [vmem:[%s4441_s7 + $0x108] sm:$0xff] }
 0x42a   : > { %v1950_v54 = vpop.f32.mrf.mxu2  ;;  %v4126_v6 = vpop.f32.mrf.mxu3  ;;  %v2067_v15 = vmax.f32 %v1960_v18, 0.0  ;;  %v2066_v59 = vmax.f32 %v1957_v22, 0.0 }
 0x42b   : > { %v1951_v25 = vadd.f32 %v1950_v54, %v3986_v34  ;;  %2206 = vmatpush.msra.mxu2 %v2078_v55  ;;  %v2074_v34 = vmax.f32 %v1981_v45, 0.0  ;;  %v2061_v39 = vmax.f32 %v1942_v38, 0.0  ;;  %v2060_v55 = vmax.f32 %v1939_v17, 0.0  ;;  %v1587_v37 = vpop.permute.xlu1 %1586  ;;  %v2101_v17 = vld [vmem:[%s4441_s7 + $0x20] sm:$0xff] }
 0x42c   : > { %v1912_v54 = vadd.f32 %v4493_v40, %v4492_v0 }
 0x42d   : > { %v2064_v41 = vmax.f32 %v1951_v25, 0.0  ;;  %2207 = vmatpush.msra.mxu2 %v2077_v49  ;;  %v4494_v49 = vld [vmem:[#allocation26_spill] sm:$0xff]  ;;  %v4495_v25 = vld [vmem:[#allocation20_spill] sm:$0xff] }
 0x42e   : > { %v1909_v45 = vadd.f32 %v4495_v25, %v4494_v49 }
 0x42f   : > { %2142 = vmatpush.msrb.mxu1 %v2064_v41  ;;  %2208 = vmatpush.msra.mxu2 %v2076_v43  ;;  %v2052_v43 = vmax.f32 %v1915_v46, 0.0  ;;  %v4497_v41 = vld [vmem:[#allocation19_spill] sm:$0xff]  ;;  %v2134_v46 = vld [vmem:[%s4441_s7 + $0x128] sm:$0xff] }
 0x430   : > { %v1906_v29 = vadd.f32 %v4497_v41, %v4496_v5  ;;  %v2050_v38 = vmax.f32 %v1909_v45, 0.0  ;;  %v1692_v45 = vpop.permute.xlu0 %1691 }
 0x431   : > { %2143 = vmatpush.msrb.mxu1 %v2063_v32  ;;  %2209 = vmatpush.msra.mxu2 %v2075_v19  ;;  %v2051_v19 = vmax.f32 %v1912_v54, 0.0  ;;  %v4501_v54 = vld [vmem:[#allocation30_spill] sm:$0xff] }
 0x432   : > { %v4139_v44 = vpop.f32.mrf.mxu3  ;;  %v1953_v60 = vpop.f32.mrf.mxu2  ;;  %v2049_v35 = vmax.f32 %v1906_v29, 0.0  ;;  %v2133_v29 = vld [vmem:[%s4441_s7 + $0x120] sm:$0xff] }
 0x433   : > { %2144 = vmatpush.msrb.mxu1 %v2062_v7  ;;  %2210 = vmatpush.msra.mxu2 %v2074_v34  ;;  %v1954_v4 = vadd.f32 %v1953_v60, %v1587_v37  ;;  %v2097_v34 = vld [vmem:[%s4441_s7] sm:$0xff]  ;;  %v2127_v37 = vld [vmem:[%s4441_s7 + $0xf0] sm:$0xff] }
 0x434   : > { %v2125_v60 = vld [vmem:[%s4441_s7 + $0xe0] sm:$0xff] }
 0x435   : > { %2145 = vmatpush.msrb.mxu1 %v2061_v39  ;;  %2211 = vmatpush.msra.mxu2 %v2073_v52  ;;  %v2065_v47 = vmax.f32 %v1954_v4, 0.0  ;;  %v2104_v52 = vld [vmem:[%s4441_s7 + $0x38] sm:$0xff]  ;;  %v2103_v39 = vld [vmem:[%s4441_s7 + $0x30] sm:$0xff]  ;;  %v4498_v4 = vld [vmem:[#allocation28_spill] sm:$0xff] }
 0x437   : > { %2146 = vmatpush.msrb.mxu1 %v2060_v55  ;;  %2212 = vmatpush.msra.mxu2 %v2072_v33  ;;  %v2110_v55 = vld [vmem:[%s4441_s7 + $0x68] sm:$0xff] }
 0x439   : > { %2147 = vmatpush.msrb.mxu1 %v2059_v51  ;;  %2213 = vmatpush.msra.mxu2 %v2071_v10  ;;  %v2109_v10 = vld [vmem:[%s4441_s7 + $0x60] sm:$0xff] }
 0x43a   : > { %v4155_v24 = vpop.f32.mrf.mxu3 }
 0x43b   : > { %2148 = vmatpush.msrb.mxu1 %v2058_v48  ;;  %2214 = vmatpush.msra.mxu2 %v2070_v30  ;;  %v2116_v30 = vld [vmem:[%s4441_s7 + $0x98] sm:$0xff]  ;;  %v2115_v48 = vld [vmem:[%s4441_s7 + $0x90] sm:$0xff] }
 0x43d   : > { %2149 = vmatpush.msrb.mxu1 %v2057_v26  ;;  %2215 = vmatpush.msra.mxu2 %v2069_v1  ;;  %v2118_v1 = vld [vmem:[%s4441_s7 + $0xa8] sm:$0xff] }
 0x43f   : > { %2150 = vmatpush.msrb.mxu1 %v2056_v14  ;;  %2216 = vmatpush.msra.mxu2 %v2068_v9  ;;  %v2124_v9 = vld [vmem:[%s4441_s7 + $0xd8] sm:$0xff] }
 0x441   : > { %2151 = vmatpush.msrb.mxu1 %v2055_v56  ;;  %2217 = vmatpush.msra.mxu2 %v2067_v15  ;;  %v2131_v15 = vld [vmem:[%s4441_s7 + $0x110] sm:$0xff] }
 0x442   : > { %v4167_v13 = vpop.f32.mrf.mxu3 }
 0x443   : > { %2152 = vmatpush.msrb.mxu1 %v2054_v50  ;;  %2218 = vmatpush.msra.mxu2 %v2066_v59  ;;  %v4499_v59 = vld [vmem:[#allocation27_spill] sm:$0xff]  ;;  %v4500_v50 = vld [vmem:[#allocation29_spill] sm:$0xff] }
 0x445   : > { %2153 = vmatpush.msrb.mxu1 %v2053_v28  ;;  %2219 = vmatpush.msra.mxu2 %v2065_v47 }
 0x446   : > { %2220 = vmatmul.f32.vlgmr.msra.gmra.mxu2 %v2098_v27  ;;  %v4502_v27 = vld [vmem:[#allocation31_spill] sm:$0xff] }
 0x447   : > { %2154 = vmatpush.msrb.mxu1 %v2052_v43  ;;  %v4503_v43 = vld [vmem:[#allocation32_spill] sm:$0xff] }
 0x449   : > { %2155 = vmatpush.msrb.mxu1 %v2051_v19  ;;  %v2137_v19 = vld [vmem:[%s4441_s7 + $0x140] sm:$0xff] }
 0x44a   : > { %v4178_v32 = vpop.f32.mrf.mxu3 }
 0x44b   : > { %2156 = vmatpush.msrb.mxu1 %v2050_v38  ;;  %v4504_v38 = vld [vmem:[#allocation33_spill] sm:$0xff] }
 0x44d   : > { %2157 = vmatpush.msrb.mxu1 %v2049_v35 }
 0x44e   : > { %2158 = vmatmul.f32.vlgmr.msrb.gmra.mxu1 %v2097_v34  ;;  %2223 = vmatmul.f32.gmra.mxu2 %v2101_v17 }
 0x452   : > { %v4186_v7 = vpop.f32.mrf.mxu3 }
 0x456   : > { %2161 = vmatmul.f32.gmra.mxu1 %v2100_v63  ;;  %2226 = vmatmul.f32.gmra.mxu2 %v2104_v52 }
 0x45a   : > { %v4194_v61 = vpop.f32.mrf.mxu3 }
 0x45e   : > { %2164 = vmatmul.f32.gmra.mxu1 %v2103_v39  ;;  %2229 = vmatmul.f32.gmra.mxu2 %v2107_v53  ;;  %v1687_v53 = vpop.permute.xlu2 %1686 }
 0x462   : > { %v4202_v33 = vpop.f32.mrf.mxu3 }
 0x463   : > { %v2023_v52 = vadd.f32 %v4202_v33, %v4137_v2  ;;  %v2014_v33 = vadd.f32 %v4178_v32, %v1687_v53 }
 0x465   : > { %v2088_v2 = vmax.f32 %v2023_v52, 0.0 }
 0x466   : > { %2167 = vmatmul.f32.gmra.mxu1 %v2106_v57  ;;  %2232 = vmatmul.f32.gmra.mxu2 %v2110_v55  ;;  %v2020_v57 = vadd.f32 %v4194_v61, %v4144_v42 }
 0x468   : > { %v2087_v42 = vmax.f32 %v2020_v57, 0.0 }
 0x46a   : > { %v2025_v31 = vpop.f32.mrf.mxu3 }
 0x46b   : > { %v2026_v17 = vadd.f32 %v2025_v31, %v4133_v20  ;;  %v2140_v20 = vld [vmem:[%s4441_s7 + $0x158] sm:$0xff]  ;;  %v1682_v31 = vpop.permute.xlu0 %1681 }
 0x46c   : > { %v2011_v61 = vadd.f32 %v4167_v13, %v1682_v31  ;;  %v4506_v31 = vld [vmem:[#allocation17_spill] sm:$0xff] }
 0x46d   : > { %v2089_v55 = vmax.f32 %v2026_v17, 0.0 }
 0x46e   : > { %2170 = vmatmul.f32.gmra.mxu1 %v2109_v10  ;;  %2235 = vmatmul.f32.gmra.mxu2 %v2113_v58  ;;  %v2136_v10 = vld [vmem:[%s4441_s7 + $0x138] sm:$0xff]  ;;  %v2017_v58 = vadd.f32 %v4186_v7, %v1692_v45  ;;  %v2139_v7 = vld [vmem:[%s4441_s7 + $0x150] sm:$0xff]  ;;  %v2138_v45 = vld [vmem:[%s4441_s7 + $0x148] sm:$0xff] }
 0x472   : > { %v2028_v51 = vpop.f32.mrf.mxu3 }
 0x473   : > { %v2029_v35 = vadd.f32 %v2028_v51, %v4504_v38  ;;  %v2086_v51 = vmax.f32 %v2017_v58, 0.0  ;;  %v1667_v32 = vpop.permute.xlu0 %1666 }
 0x474   : > { %v2002_v13 = vadd.f32 %v4126_v6, %v1667_v32  ;;  %v2105_v6 = vld [vmem:[%s4441_s7 + $0x40] sm:$0xff] }
 0x475   : > { %v2090_v39 = vmax.f32 %v2029_v35, 0.0 }
 0x476   : > { %2173 = vmatmul.f32.gmra.mxu1 %v2112_v23  ;;  %2238 = vmatmul.f32.gmra.mxu2 %v2116_v30  ;;  %v1677_v23 = vpop.permute.xlu1 %1676 }
 0x477   : > { %v2008_v30 = vadd.f32 %v4155_v24, %v1677_v23  ;;  %v2081_v24 = vmax.f32 %v2002_v13, 0.0  ;;  %v4508_v13 = vld [vmem:[#allocation15_spill] sm:$0xff] }
 0x47a   : > { %v2031_v36 = vpop.f32.mrf.mxu3 }
 0x47b   : > { %v2032_v5 = vadd.f32 %v2031_v36, %v4503_v43  ;;  %v2085_v36 = vmax.f32 %v2014_v33, 0.0 }
 0x47d   : > { %v2091_v63 = vmax.f32 %v2032_v5, 0.0 }
 0x47e   : > { %2176 = vmatmul.f32.gmra.mxu1 %v2115_v48  ;;  %2241 = vmatmul.f32.gmra.mxu2 %v2119_v11  ;;  %v1672_v48 = vpop.permute.xlu2 %1671 }
 0x47f   : > { %v2005_v11 = vadd.f32 %v4139_v44, %v1672_v48  ;;  %v2102_v44 = vld [vmem:[%s4441_s7 + $0x28] sm:$0xff] }
 0x482   : > { %v2034_v18 = vpop.f32.mrf.mxu3 }
 0x483   : > { %v2035_v49 = vadd.f32 %v2034_v18, %v4502_v27  ;;  %v2084_v18 = vmax.f32 %v2011_v61, 0.0  ;;  %v2135_v27 = vld [vmem:[%s4441_s7 + $0x130] sm:$0xff] }
 0x485   : > { %v2092_v34 = vmax.f32 %v2035_v49, 0.0 }
 0x486   : > { %2179 = vmatmul.f32.gmra.mxu1 %v2118_v1  ;;  %2244 = vmatmul.f32.gmra.mxu2 %v2122_v3  ;;  %v2083_v1 = vmax.f32 %v2008_v30, 0.0  ;;  %v2082_v3 = vmax.f32 %v2005_v11, 0.0  ;;  %v4507_v30 = vld [vmem:[#allocation16_spill] sm:$0xff] }
 0x48a   : > { %v2037_v26 = vpop.f32.mrf.mxu3 }
 0x48b   : > { %v2038_v47 = vadd.f32 %v2037_v26, %v4501_v54  ;;  %v2099_v26 = vld [vmem:[%s4441_s7 + $0x10] sm:$0xff] }
 0x48d   : > { %v2093_v41 = vmax.f32 %v2038_v47, 0.0  ;;  %v2132_v47 = vld [vmem:[%s4441_s7 + $0x118] sm:$0xff] }
 0x48e   : > { %2182 = vmatmul.f32.gmra.mxu1 %v2121_v62  ;;  %2247 = vmatmul.f32.gmra.mxu2 %v2125_v60 }
 0x492   : > { %v2040_v22 = vpop.f32.mrf.mxu3 }
 0x493   : > { %v2041_v0 = vadd.f32 %v2040_v22, %v4500_v50  ;;  %v2126_v50 = vld [vmem:[%s4441_s7 + $0xe8] sm:$0xff] }
 0x495   : > { %v2094_v25 = vmax.f32 %v2041_v0, 0.0 }
 0x496   : > { %2185 = vmatmul.f32.gmra.mxu1 %v2124_v9  ;;  %2250 = vmatmul.f32.gmra.mxu2 %v2128_v21  ;;  %v2108_v9 = vld [vmem:[%s4441_s7 + $0x58] sm:$0xff] }
 0x49a   : > { %v2043_v14 = vpop.f32.mrf.mxu3 }
 0x49b   : > { %v2044_v56 = vadd.f32 %v2043_v14, %v4498_v4  ;;  %v2111_v14 = vld [vmem:[%s4441_s7 + $0x70] sm:$0xff]  ;;  %v2117_v4 = vld [vmem:[%s4441_s7 + $0xa0] sm:$0xff] }
 0x49d   : > { %v2095_v28 = vmax.f32 %v2044_v56, 0.0 }
 0x49e   : > { %2188 = vmatmul.f32.gmra.mxu1 %v2127_v37  ;;  %2253 = vmatmul.f32.gmra.mxu2 %v2131_v15  ;;  %v2114_v15 = vld [vmem:[%s4441_s7 + $0x88] sm:$0xff] }
 0x4a2   : > { %v2046_v12 = vpop.f32.mrf.mxu3 }
 0x4a3   : > { %v2047_v8 = vadd.f32 %v2046_v12, %v4499_v59  ;;  %v2120_v59 = vld [vmem:[%s4441_s7 + $0xb8] sm:$0xff] }
 0x4a5   : > { %v2096_v40 = vmax.f32 %v2047_v8, 0.0 }
 0x4a6   : > { %2191 = vmatmul.f32.gmra.mxu1 %v2130_v16  ;;  %2256 = vmatmul.f32.gmra.mxu2 %v2134_v46  ;;  %v2123_v16 = vld [vmem:[%s4441_s7 + $0xd0] sm:$0xff] }
 0x4a7   : > { %2266 = vmatpush.msra.mxu1 %v2096_v40  ;;  %v2129_v40 = vld [vmem:[%s4441_s7 + $0x100] sm:$0xff] }
 0x4a9   : > { %2267 = vmatpush.msra.mxu1 %v2095_v28 }
 0x4ab   : > { %2268 = vmatpush.msra.mxu1 %v2094_v25 }
 0x4ad   : > { %2269 = vmatpush.msra.mxu1 %v2093_v41  ;;  %v2141_v41 = vld [vmem:[%s4441_s7 + $0x160] sm:$0xff] }
 0x4ae   : > { %2194 = vmatmul.f32.gmra.mxu1 %v2133_v29  ;;  %2259 = vmatmul.f32.gmra.mxu2 %v2137_v19 }
 0x4af   : > { %2270 = vmatpush.msra.mxu1 %v2092_v34 }
 0x4b1   : > { %2271 = vmatpush.msra.mxu1 %v2091_v63  ;;  %v4505_v63 = vld [vmem:[#allocation18_spill] sm:$0xff] }
 0x4b3   : > { %2272 = vmatpush.msra.mxu1 %v2090_v39  ;;  %v2361_v39 = vpop.permute.xlu1 %2360 }
 0x4b5   : > { %2273 = vmatpush.msra.mxu1 %v2089_v55 }
 0x4b6   : > { %2197 = vmatmul.f32.gmra.mxu1 %v2136_v10  ;;  %2262 = vmatmul.f32.gmra.mxu2 %v2140_v20 }
 0x4b7   : > { %2274 = vmatpush.msra.mxu1 %v2088_v2  ;;  %v2366_v2 = vpop.permute.xlu2 %2365 }
 0x4b9   : > { %2275 = vmatpush.msra.mxu1 %v2087_v42 }
 0x4bb   : > { %2276 = vmatpush.msra.mxu1 %v2086_v51 }
 0x4bd   : > { %2277 = vmatpush.msra.mxu1 %v2085_v36 }
 0x4be   : > { %2200 = vmatmul.f32.gmra.mxu1 %v2139_v7  ;;  %v2371_v7 = vpop.permute.xlu0 %2370 }
 0x4bf   : > { %2278 = vmatpush.msra.mxu1 %v2084_v18 }
 0x4c1   : > { %2279 = vmatpush.msra.mxu1 %v2083_v1 }
 0x4c3   : > { %2280 = vmatpush.msra.mxu1 %v2082_v3  ;;  %v2376_v3 = vpop.permute.xlu1 %2375 }
 0x4c5   : > { %2281 = vmatpush.msra.mxu1 %v2081_v24 }
 0x4c6   : > { %2282 = vmatmul.f32.vlgmr.msra.gmra.mxu1 %v2099_v26 }
 0x4c9   : > { %v2221_v49 = vpop.f32.mrf.mxu2 }
 0x4cb   : > { %v2159_v62 = vpop.f32.mrf.mxu1 }
 0x4cc   : > { %v2222_v35 = vadd.f32 %v2221_v49, %v2159_v62 }
 0x4ce   : > { %2285 = vmatmul.f32.gmra.mxu1 %v2102_v44 }
 0x4d1   : > { %v2224_v43 = vpop.f32.mrf.mxu2 }
 0x4d3   : > { %v2162_v60 = vpop.f32.mrf.mxu1 }
 0x4d4   : > { %v2225_v57 = vadd.f32 %v2224_v43, %v2162_v60  ;;  %v4511_v43 = vld [vmem:[#allocation12_spill] sm:$0xff] }
 0x4d6   : > { %2288 = vmatmul.f32.gmra.mxu1 %v2105_v6  ;;  %v4509_v6 = vld [vmem:[#allocation14_spill] sm:$0xff] }
 0x4d9   : > { %v2227_v29 = vpop.f32.mrf.mxu2 }
 0x4db   : > { %v2165_v22 = vpop.f32.mrf.mxu1 }
 0x4dc   : > { %v2228_v42 = vadd.f32 %v2227_v29, %v2165_v22  ;;  %v2391_v29 = vpop.permute.xlu1 %2390 }
 0x4de   : > { %2291 = vmatmul.f32.gmra.mxu1 %v2108_v9  ;;  %v2381_v9 = vpop.permute.xlu2 %2380 }
 0x4e1   : > { %v2230_v38 = vpop.f32.mrf.mxu2 }
 0x4e3   : > { %v2168_v21 = vpop.f32.mrf.mxu1 }
 0x4e4   : > { %v2231_v11 = vadd.f32 %v2230_v38, %v2168_v21 }
 0x4e6   : > { %2294 = vmatmul.f32.gmra.mxu1 %v2111_v14 }
 0x4e9   : > { %v2233_v10 = vpop.f32.mrf.mxu2 }
 0x4eb   : > { %v4306_v37 = vpop.f32.mrf.mxu1 }
 0x4ec   : > { %v2234_v62 = vadd.f32 %v2233_v10, %v4306_v37  ;;  %v4513_v10 = vld [vmem:[#allocation10_spill] sm:$0xff] }
 0x4ee   : > { %2297 = vmatmul.f32.gmra.mxu1 %v2114_v15 }
 0x4f1   : > { %v2236_v23 = vpop.f32.mrf.mxu2 }
 0x4f3   : > { %v4311_v12 = vpop.f32.mrf.mxu1 }
 0x4f4   : > { %v2237_v21 = vadd.f32 %v2236_v23, %v4311_v12  ;;  %v2406_v23 = vpop.permute.xlu1 %2405 }
 0x4f6   : > { %2300 = vmatmul.f32.gmra.mxu1 %v2117_v4 }
 0x4f9   : > { %v2239_v24 = vpop.f32.mrf.mxu2 }
 0x4fb   : > { %v4316_v56 = vpop.f32.mrf.mxu1 }
 0x4fc   : > { %v2240_v37 = vadd.f32 %v2239_v24, %v4316_v56 }
 0x4fe   : > { %2303 = vmatmul.f32.gmra.mxu1 %v2120_v59 }
 0x501   : > { %v2242_v15 = vpop.f32.mrf.mxu2 }
 0x503   : > { %v4321_v8 = vpop.f32.mrf.mxu1 }
 0x504   : > { %v2243_v12 = vadd.f32 %v2242_v15, %v4321_v8 }
 0x506   : > { %2306 = vmatmul.f32.gmra.mxu1 %v2123_v16  ;;  %v4510_v16 = vld [vmem:[#allocation13_spill] sm:$0xff] }
 0x509   : > { %v2245_v49 = vpop.f32.mrf.mxu2 }
 0x50b   : > { %v4326_v46 = vpop.f32.mrf.mxu1 }
 0x50c   : > { %v2246_v56 = vadd.f32 %v2245_v49, %v4326_v46 }
 0x50e   : > { %2309 = vmatmul.f32.gmra.mxu1 %v2126_v50 }
 0x513   : > { %v4331_v0 = vpop.f32.mrf.mxu1 }
 0x516   : > { %2312 = vmatmul.f32.gmra.mxu1 %v2129_v40  ;;  %v2386_v40 = vpop.permute.xlu0 %2385 }
 0x51b   : > { %v4336_v54 = vpop.f32.mrf.mxu1 }
 0x51e   : > { %2315 = vmatmul.f32.gmra.mxu1 %v2132_v47 }
 0x523   : > { %v4341_v28 = vpop.f32.mrf.mxu1 }
 0x526   : > { %2318 = vmatmul.f32.gmra.mxu1 %v2135_v27 }
 0x52b   : > { %v4346_v25 = vpop.f32.mrf.mxu1 }
 0x52e   : > { %2321 = vmatmul.f32.gmra.mxu1 %v2138_v45 }
 0x533   : > { %v4351_v5 = vpop.f32.mrf.mxu1 }
 0x536   : > { %2324 = vmatmul.f32.gmra.mxu1 %v2141_v41 }
 0x53b   : > { %v4356_v19 = vpop.f32.mrf.mxu1 }
 0x543   : > { %v2283_v34 = vpop.f32.mrf.mxu1 }
 0x544   : > { %v2284_v17 = vadd.f32 %v2283_v34, %v2222_v35 }
 0x546   : > { %v2328_v52 = vadd.f32 %v2284_v17, %v4505_v63  ;;  %v2248_v17 = vpop.f32.mrf.mxu2  ;;  %v4512_v63 = vld [vmem:[#allocation11_spill] sm:$0xff] }
 0x547   : > { %v2249_v8 = vadd.f32 %v2248_v17, %v4331_v0 }
 0x548   : > { %v2433_v53 = vadd.f32 %v2361_v39, %v2328_v52  ;;  %v2396_v39 = vpop.permute.xlu2 %2395 }
 0x54a   : > { %2448 = vst [vmem:[%s4360_s30] sm:$0xff] %v2433_v53 }
 0x54b   : > { %v2286_v55 = vpop.f32.mrf.mxu1 }
 0x54c   : > { %v2287_v20 = vadd.f32 %v2286_v55, %v2225_v57 }
 0x54e   : > { %v2329_v58 = vadd.f32 %v2287_v20, %v4506_v31  ;;  %v2401_v31 = vpop.permute.xlu0 %2400 }
 0x550   : > { %v2434_v33 = vadd.f32 %v2366_v2, %v2329_v58  ;;  %v2251_v58 = vpop.f32.mrf.mxu2 }
 0x551   : > { %v2252_v46 = vadd.f32 %v2251_v58, %v4336_v54 }
 0x552   : > { %2449 = vst [vmem:[%s4360_s30 + $0x8] sm:$0xff] %v2434_v33 }
 0x553   : > { %v2289_v61 = vpop.f32.mrf.mxu1 }
 0x554   : > { %v2290_v51 = vadd.f32 %v2289_v61, %v2228_v42  ;;  %v4514_v61 = vld [vmem:[#allocation9_spill] sm:$0xff] }
 0x556   : > { %v2330_v36 = vadd.f32 %v2290_v51, %v4507_v30 }
 0x558   : > { %v2435_v48 = vadd.f32 %v2371_v7, %v2330_v36  ;;  %v2254_v36 = vpop.f32.mrf.mxu2 }
 0x559   : > { %v2255_v0 = vadd.f32 %v2254_v36, %v4341_v28 }
 0x55a   : > { %2450 = vst [vmem:[%s4360_s30 + $0x10] sm:$0xff] %v2435_v48 }
 0x55b   : > { %v2292_v18 = vpop.f32.mrf.mxu1 }
 0x55c   : > { %v2293_v32 = vadd.f32 %v2292_v18, %v2231_v11  ;;  %v4515_v11 = vld [vmem:[#allocation8_spill] sm:$0xff] }
 0x55e   : > { %v2331_v1 = vadd.f32 %v2293_v32, %v4508_v13  ;;  %v2411_v32 = vpop.permute.xlu2 %2410 }
 0x560   : > { %v2436_v26 = vadd.f32 %v2376_v3, %v2331_v1  ;;  %v2257_v3 = vpop.f32.mrf.mxu2 }
 0x561   : > { %v2258_v54 = vadd.f32 %v2257_v3, %v4346_v25 }
 0x562   : > { %2451 = vst [vmem:[%s4360_s30 + $0x18] sm:$0xff] %v2436_v26  ;;  %v4516_v26 = vld [vmem:[#allocation7_spill] sm:$0xff] }
 0x563   : > { %v2295_v44 = vpop.f32.mrf.mxu1 }
 0x564   : > { %v2296_v60 = vadd.f32 %v2295_v44, %v2234_v62  ;;  %v2416_v44 = vpop.permute.xlu0 %2415 }
 0x566   : > { %v2332_v22 = vadd.f32 %v2296_v60, %v4509_v6 }
 0x568   : > { %v2437_v14 = vadd.f32 %v2381_v9, %v2332_v22  ;;  %v2260_v9 = vpop.f32.mrf.mxu2 }
 0x569   : > { %v2261_v28 = vadd.f32 %v2260_v9, %v4351_v5  ;;  %v2528_v5 = vld [vmem:[%s4360_s30] sm:$0xff] (%p2910_p5) }
 0x56a   : > { %2452 = vst [vmem:[%s4360_s30 + $0x20] sm:$0xff] %v2437_v14  ;;  %v4517_v14 = vld [vmem:[#allocation6_spill] sm:$0xff] }
 0x56b   : > { %v2298_v4 = vpop.f32.mrf.mxu1  ;;  %2529 = vst [vmem:[%s2471_s17] sm:$0xff] (%p2910_p5), %v2528_v5 }
 0x56c   : > { %v2299_v59 = vadd.f32 %v2298_v4, %v2237_v21  ;;  %v2421_v21 = vpop.permute.xlu1 %2420 }
 0x56e   : > { %v2333_v50 = vadd.f32 %v2299_v59, %v4510_v16 }
 0x570   : > { %v2438_v47 = vadd.f32 %v2386_v40, %v2333_v50  ;;  %v4518_v50 = vld [vmem:[#allocation5_spill] sm:$0xff] }
 0x572   : > { %2453 = vst [vmem:[%s4360_s30 + $0x28] sm:$0xff] %v2438_v47  ;;  %v2426_v47 = vpop.permute.xlu2 %2425 }
 0x573   : > { %v2301_v27 = vpop.f32.mrf.mxu1 }
 0x574   : > { %v2302_v45 = vadd.f32 %v2301_v27, %v2240_v37  ;;  %v2263_v37 = vpop.f32.mrf.mxu2 }
 0x575   : > { %v2264_v25 = vadd.f32 %v2263_v37, %v4356_v19  ;;  %v2530_v19 = vld [vmem:[%s4360_s30 + $0x8] sm:$0xff] (%p2910_p5) }
 0x576   : > { %v2334_v41 = vadd.f32 %v2302_v45, %v4511_v43  ;;  %v4519_v43 = vld [vmem:[#allocation4_spill] sm:$0xff]  ;;  %2531 = vst [vmem:[%s2471_s17 + $0x18] sm:$0xff] (%p2910_p5), %v2530_v19 }
 0x578   : > { %v2439_v38 = vadd.f32 %v2391_v29, %v2334_v41  ;;  %v2431_v29 = vpop.permute.xlu0 %2430 }
 0x579   : > { %v2538_v17 = vld [vmem:[%s4360_s30 + $0x28] sm:$0xff] (%p2910_p5) }
 0x57a   : > { %2454 = vst [vmem:[%s4360_s30 + $0x30] sm:$0xff] %v2439_v38 }
 0x57b   : > { %v2304_v35 = vpop.f32.mrf.mxu1  ;;  %2539 = vst [vmem:[%s2471_s17 + $0x78] sm:$0xff] (%p2910_p5), %v2538_v17 }
 0x57c   : > { %v2305_v34 = vadd.f32 %v2304_v35, %v2243_v12  ;;  %v2532_v12 = vld [vmem:[%s4360_s30 + $0x10] sm:$0xff] (%p2910_p5)  ;;  %v2534_v35 = vld [vmem:[%s4360_s30 + $0x18] sm:$0xff] (%p2910_p5) }
 0x57d   : > { %2533 = vst [vmem:[%s2471_s17 + $0x30] sm:$0xff] (%p2910_p5), %v2532_v12 }
 0x57e   : > { %v2335_v52 = vadd.f32 %v2305_v34, %v4512_v63  ;;  %v2536_v34 = vld [vmem:[%s4360_s30 + $0x20] sm:$0xff] (%p2910_p5)  ;;  %2535 = vst [vmem:[%s2471_s17 + $0x48] sm:$0xff] (%p2910_p5), %v2534_v35 }
 0x57f   : > { %2537 = vst [vmem:[%s2471_s17 + $0x60] sm:$0xff] (%p2910_p5), %v2536_v34 }
 0x580   : > { %v2440_v53 = vadd.f32 %v2396_v39, %v2335_v52 }
 0x581   : > { %v2540_v63 = vld [vmem:[%s4360_s30 + $0x30] sm:$0xff] (%p2910_p5) }
 0x582   : > { %2455 = vst [vmem:[%s4360_s30 + $0x38] sm:$0xff] %v2440_v53 }
 0x583   : > { %v2307_v57 = vpop.f32.mrf.mxu1  ;;  %2541 = vst [vmem:[%s2471_s17 + $0x90] sm:$0xff] (%p2910_p5), %v2540_v63 }
 0x584   : > { %v2308_v55 = vadd.f32 %v2307_v57, %v2246_v56 }
 0x586   : > { %v2336_v20 = vadd.f32 %v2308_v55, %v4513_v10 }
 0x588   : > { %v2441_v2 = vadd.f32 %v2401_v31, %v2336_v20 }
 0x589   : > { %v2542_v52 = vld [vmem:[%s4360_s30 + $0x38] sm:$0xff] (%p2910_p5) }
 0x58a   : > { %2456 = vst [vmem:[%s4360_s30 + $0x40] sm:$0xff] %v2441_v2 }
 0x58b   : > { %v2310_v33 = vpop.f32.mrf.mxu1  ;;  %2543 = vst [vmem:[%s2471_s17 + $0xa8] sm:$0xff] (%p2910_p5), %v2542_v52 }
 0x58c   : > { %v2311_v42 = vadd.f32 %v2310_v33, %v2249_v8 }
 0x58e   : > { %v2337_v51 = vadd.f32 %v2311_v42, %v4514_v61 }
 0x590   : > { %v2442_v30 = vadd.f32 %v2406_v23, %v2337_v51 }
 0x591   : > { %v2544_v39 = vld [vmem:[%s4360_s30 + $0x40] sm:$0xff] (%p2910_p5) }
 0x592   : > { %2457 = vst [vmem:[%s4360_s30 + $0x48] sm:$0xff] %v2442_v30 }
 0x593   : > { %v2313_v7 = vpop.f32.mrf.mxu1  ;;  %2545 = vst [vmem:[%s2471_s17 + $0xc0] sm:$0xff] (%p2910_p5), %v2544_v39 }
 0x594   : > { %v2314_v48 = vadd.f32 %v2313_v7, %v2252_v46 }
 0x596   : > { %v2338_v18 = vadd.f32 %v2314_v48, %v4515_v11 }
 0x598   : > { %v2443_v13 = vadd.f32 %v2411_v32, %v2338_v18 }
 0x599   : > { %v2546_v53 = vld [vmem:[%s4360_s30 + $0x48] sm:$0xff] (%p2910_p5) }
 0x59a   : > { %2458 = vst [vmem:[%s4360_s30 + $0x50] sm:$0xff] %v2443_v13 }
 0x59b   : > { %v2316_v1 = vpop.f32.mrf.mxu1  ;;  %2547 = vst [vmem:[%s2471_s17 + $0xd8] sm:$0xff] (%p2910_p5), %v2546_v53 }
 0x59c   : > { %v2317_v24 = vadd.f32 %v2316_v1, %v2255_v0 }
 0x59e   : > { %v2339_v62 = vadd.f32 %v2317_v24, %v4516_v26 }
 0x5a0   : > { %v2444_v60 = vadd.f32 %v2416_v44, %v2339_v62 }
 0x5a1   : > { %v2548_v56 = vld [vmem:[%s4360_s30 + $0x50] sm:$0xff] (%p2910_p5) }
 0x5a2   : > { %2459 = vst [vmem:[%s4360_s30 + $0x58] sm:$0xff] %v2444_v60 }
 0x5a3   : > { %v2319_v6 = vpop.f32.mrf.mxu1  ;;  %2549 = vst [vmem:[%s2471_s17 + $0xf0] sm:$0xff] (%p2910_p5), %v2548_v56 }
 0x5a4   : > { %v2320_v22 = vadd.f32 %v2319_v6, %v2258_v54 }
 0x5a6   : > { %v2340_v15 = vadd.f32 %v2320_v22, %v4517_v14 }
 0x5a8   : > { %v2445_v4 = vadd.f32 %v2421_v21, %v2340_v15 }
 0x5a9   : > { %v2550_v57 = vld [vmem:[%s4360_s30 + $0x58] sm:$0xff] (%p2910_p5) }
 0x5aa   : > { %2460 = vst [vmem:[%s4360_s30 + $0x60] sm:$0xff] %v2445_v4 }
 0x5ab   : > { %v2322_v59 = vpop.f32.mrf.mxu1  ;;  %2551 = vst [vmem:[%s2471_s17 + $0x108] sm:$0xff] (%p2910_p5), %v2550_v57 }
 0x5ac   : > { %v2323_v16 = vadd.f32 %v2322_v59, %v2261_v28 }
 0x5ae   : > { %v2341_v40 = vadd.f32 %v2323_v16, %v4518_v50 }
 0x5b0   : > { %v2446_v27 = vadd.f32 %v2426_v47, %v2341_v40 }
 0x5b1   : > { %v2552_v55 = vld [vmem:[%s4360_s30 + $0x60] sm:$0xff] (%p2910_p5) }
 0x5b2   : > { %2461 = vst [vmem:[%s4360_s30 + $0x68] sm:$0xff] %v2446_v27 }
 0x5b3   : > { %v2325_v49 = vpop.f32.mrf.mxu1  ;;  %2553 = vst [vmem:[%s2471_s17 + $0x120] sm:$0xff] (%p2910_p5), %v2552_v55 }
 0x5b4   : > { %v2326_v45 = vadd.f32 %v2325_v49, %v2264_v25 }
 0x5b6   : > { %v2342_v41 = vadd.f32 %v2326_v45, %v4519_v43  ;;  %2469 = sbr.rel (!%p2910_p5) target bundleno = 1475 (0x5c3), region = 98 }
 0x5b8   : > { %v2447_v38 = vadd.f32 %v2431_v29, %v2342_v41 }
 0x5b9   : > { %v2554_v10 = vld [vmem:[%s4360_s30 + $0x68] sm:$0xff] (%p2910_p5) }
 0x5ba   : > { %2462 = vst [vmem:[%s4360_s30 + $0x70] sm:$0xff] %v2447_v38 }
 0x5bb   : > { %2555 = vst [vmem:[%s2471_s17 + $0x138] sm:$0xff] %v2554_v10 }
 0x5c1   : > { %v2556_v20 = vld [vmem:[%s4360_s30 + $0x70] sm:$0xff] }
 0x5c2   : > { %2557 = vst [vmem:[%s2471_s17 + $0x150] sm:$0xff] %v2556_v20 }
 0x5c3 PF: > { %p16_p10 = scmp.ge.s32.totalorder %s2897_s13, 5   ;;  %s4520_s30 = smov %s2823_s10 }
 0x5c4   : > { %s4521_s10 = smov %s2908_s16  ;;  %s4522_s11 = smov %s2897_s13 }
 0x5c5   :  { %18 = sbr.rel (!%p16_p10) target bundleno = 2 (0x2), region = 167 }

</bundles_post_ra>
